<compile_context>
chip_gen: v6e
topology: v6e:2x2x1
jax: 0.10.0
libtpu: 0.0.40
codegen_flags: <defaults>
</compile_context>

<pallas_src>
import functools

import jax
import jax.numpy as jnp
import numpy as np
from jax.experimental import pallas as pl
from jax.experimental.pallas import tpu as pltpu

# Module hyper-parameters (small, consistent with the PyTorch __init__ signature)
DIM = 32                   # model dim
HEADS = 4                  # heads
DIM_HEAD = 16              # dim_head
INNER = HEADS * DIM_HEAD   # inner_dim = 64
LN_EPS = 1e-5
MASK_VALUE = -1e30         # large finite negative (cleaner than -finfo.max -> -inf)


def lsa_kernel(x_ref, gamma_ref, beta_ref, wq_ref, wk_ref, wv_ref,
               wout_ref, bout_ref, temp_ref, o_ref, *,
               heads, dim_head, block_b, seq_len):
    bt, n = block_b, seq_len
    m = bt * n
    d_model = wout_ref.shape[1]
    x = x_ref[...].astype(jnp.float32)                      # (M, D), rows batch-major

    # ---- LayerNorm(dim) over the feature axis ----
    mean = jnp.mean(x, axis=-1, keepdims=True)
    var = jnp.mean((x - mean) ** 2, axis=-1, keepdims=True)
    xn = (x - mean) * jax.lax.rsqrt(var + LN_EPS)
    xn = xn * gamma_ref[...] + beta_ref[...]                # (M, D)

    # learned temperature (SMEM scalar); pre-scale q once so the (Bt*H, N, N) score
    # tensor never needs a separate broadcast multiply.
    scale = jnp.exp(temp_ref[0, 0])

    # ---- q/k/v projections (Linear, no bias) ----
    # TODO(synk): casting the matmul operands to bfloat16 (keeping
    # preferred_element_type=f32) cuts MXU passes ~3x on v5e, at the cost of ~1e-2
    # output tolerance; kept f32 so the check against the f32 reference stays tight.
    q = jnp.dot(xn, wq_ref[...], preferred_element_type=jnp.float32) * scale  # (M, inner)
    k = jnp.dot(xn, wk_ref[...], preferred_element_type=jnp.float32)
    v = jnp.dot(xn, wv_ref[...], preferred_element_type=jnp.float32)

    # ---- fused multi-head attention over a single (Bt*H) batch axis ----
    def to_heads(t):   # (M, H*dh) -> (Bt*H, N, dh), head-major batch
        return (t.reshape(bt, n, heads, dim_head)
                 .transpose(0, 2, 1, 3)
                 .reshape(bt * heads, n, dim_head))

    qh, kh, vh = to_heads(q), to_heads(k), to_heads(v)

    # diagonal (self-token) mask, built once and broadcast over all Bt*H batch rows.
    row = jax.lax.broadcasted_iota(jnp.int32, (1, n, n), 1)
    col = jax.lax.broadcasted_iota(jnp.int32, (1, n, n), 2)
    diag = row == col

    dots = jnp.einsum("bnd,bmd->bnm", qh, kh,
                      preferred_element_type=jnp.float32)                # (Bt*H, N, N)
    dots = jnp.where(diag, MASK_VALUE, dots)
    # numerically stable softmax along the key axis (exact denominator; the EUP
    # approx reciprocal failed the 2e-4 tolerance check)
    dots = dots - jnp.max(dots, axis=-1, keepdims=True)
    e = jnp.exp(dots)
    attn = e / jnp.sum(e, axis=-1, keepdims=True)
    # TODO(synk): attention dropout omitted (dropout=0.0 / eval mode).

    oh = jnp.einsum("bnm,bmd->bnd", attn, vh,
                    preferred_element_type=jnp.float32)                  # (Bt*H, N, dh)

    # ---- to_out (Linear with bias), accumulated per head ----
    # Replaces the former 4-way lane concatenate: heads stay a leading batch axis
    # (major<->major transpose only), one batched matmul against the head-split w_out,
    # then a cheap major-axis sum.
    ohh = (oh.reshape(bt, heads, n, dim_head)
             .transpose(1, 0, 2, 3)                          # swap two major dims only
             .reshape(heads, m, dim_head))                   # (H, M, dh)
    wout_h = wout_ref[...].reshape(heads, dim_head, d_model)  # sublane-only split
    yh = jnp.einsum("hmd,hdo->hmo", ohh, wout_h,
                    preferred_element_type=jnp.float32)                  # (H, M, D)
    y = jnp.sum(yh, axis=0) + bout_ref[...]
    # TODO(synk): a lane-dense (Bt, N*D) output block would give unmasked vst, but the
    # required in-kernel relayout likely costs more than the masked 32-lane stores save.
    o_ref[...] = y.astype(o_ref.dtype)


def _pick_block_b(batch, seq_len, *, max_block=256, rows_target=1024):
    """Batch elements per grid step.

    Small problems -> a single grid step (v5e/v6e have one TensorCore; splitting only
    multiplies the ~0.35us/step grid overhead).  Large problems -> >=2 steps so v7x's
    two TensorCores both get work, each step carrying ~rows_target rows.  Per-step
    VMEM footprint stays tiny (<2 MiB at max_block=256) on every generation.
    """
    if batch <= 1:
        return 1
    if batch <= max_block and batch * seq_len <= 2 * rows_target:
        return batch                                        # one grid step
    cap = max(1, min(batch // 2, max_block, max(1, rows_target // seq_len)))
    best_div = 1
    for bt in range(cap, 0, -1):
        if batch % bt == 0:
            best_div = bt
            break
    if best_div * seq_len >= 256:                           # good divisor: no padding
        return best_div
    return cap                                              # ragged batch: wrapper pads


def lsa_forward(x, gamma, beta, w_qkv, w_out, b_out, temperature, *, block_b=None):
    B, N, D = x.shape
    inner = w_out.shape[0]
    heads = HEADS
    dim_head = inner // heads

    bt = _pick_block_b(B, N) if block_b is None else block_b
    nsteps = pl.cdiv(B, bt)
    Bp = nsteps * bt
    if Bp != B:  # pad ragged batches so every grid step is full (padded rows stay finite)
        x = jnp.pad(x, ((0, Bp - B), (0, 0), (0, 0)))
    m = bt * N
    # Free row-major view: fold (B, N) into one M axis so the in-kernel matmuls see a
    # (Bt*N, D) operand; no data movement (N == 8 keeps the (8,128) tiling intact).
    x2 = x.reshape(Bp * N, D)

    # Split the fused qkv weight host-side (free) so the kernel avoids lane slicing.
    wq = w_qkv[:, 0 * inner:1 * inner]
    wk = w_qkv[:, 1 * inner:2 * inner]
    wv = w_qkv[:, 2 * inner:3 * inner]

    kernel = functools.partial(lsa_kernel, heads=heads, dim_head=dim_head,
                               block_b=bt, seq_len=N)
    out2 = pl.pallas_call(
        kernel,
        out_shape=jax.ShapeDtypeStruct((Bp * N, D), x.dtype),
        grid=(nsteps,),
        in_specs=[
            pl.BlockSpec((m, D), lambda i: (i, 0)),               # x rows (batch block)
            pl.BlockSpec((1, D), lambda i: (0, 0)),               # LayerNorm gamma
            pl.BlockSpec((1, D), lambda i: (0, 0)),               # LayerNorm beta
            pl.BlockSpec((D, inner), lambda i: (0, 0)),           # W_q
            pl.BlockSpec((D, inner), lambda i: (0, 0)),           # W_k
            pl.BlockSpec((D, inner), lambda i: (0, 0)),           # W_v
            pl.BlockSpec((inner, D), lambda i: (0, 0)),           # to_out weight
            pl.BlockSpec((1, D), lambda i: (0, 0)),               # to_out bias
            pl.BlockSpec(memory_space=pltpu.MemorySpace.SMEM),    # temperature (1,1)
        ],
        out_specs=pl.BlockSpec((m, D), lambda i: (i, 0)),
        compiler_params=pltpu.CompilerParams(
            dimension_semantics=("parallel",)),
    )(x2, gamma, beta, wq, wk, wv, w_out, b_out, temperature)
    out = out2.reshape(Bp, N, D)
    return out[:B] if Bp != B else out


def lsa_reference(x, gamma, beta, w_qkv, w_out, b_out, temperature):
    # Pure-JAX reference mirroring the PyTorch forward.
    xf = x.astype(jnp.float32)
    mean = jnp.mean(xf, -1, keepdims=True)
    var = jnp.mean((xf - mean) ** 2, -1, keepdims=True)
    xn = (xf - mean) / jnp.sqrt(var + LN_EPS) * gamma + beta
    qkv = xn @ w_qkv
    q, k, v = jnp.split(qkv, 3, axis=-1)

    def split_heads(t):  # b n (h d) -> b h n d
        B, N, _ = t.shape
        return t.reshape(B, N, HEADS, DIM_HEAD).transpose(0, 2, 1, 3)

    q, k, v = map(split_heads, (q, k, v))
    dots = jnp.einsum("bhnd,bhmd->bhnm", q, k) * jnp.exp(temperature[0, 0])
    eye = jnp.eye(dots.shape[-1], dtype=bool)
    dots = jnp.where(eye, -jnp.finfo(jnp.float32).max, dots)
    attn = jax.nn.softmax(dots, axis=-1)
    out = jnp.einsum("bhnm,bhmd->bhnd", attn, v)
    out = out.transpose(0, 2, 1, 3).reshape(x.shape[0], x.shape[1], INNER)
    return (out @ w_out + b_out).astype(x.dtype)


if __name__ == "__main__":
    key = jax.random.PRNGKey(0)
    k1, k2, k3, k4, k5, k6 = jax.random.split(key, 6)

    B, N = 8, 8   # small batch -> single grid step (bt = B)
    x = jax.random.normal(k1, (B, N, DIM), dtype=jnp.float32)

    # Deterministic synthetic parameters (shapes match the PyTorch module).
    gamma = 1.0 + 0.1 * jax.random.normal(k2, (1, DIM), dtype=jnp.float32)
    beta = 0.1 * jax.random.normal(k3, (1, DIM), dtype=jnp.float32)
    w_qkv = 0.05 * jax.random.normal(k4, (DIM, 3 * INNER), dtype=jnp.float32)
    w_out = 0.05 * jax.random.normal(k5, (INNER, DIM), dtype=jnp.float32)
    b_out = 0.1 * jax.random.normal(k6, (1, DIM), dtype=jnp.float32)
    temperature = jnp.full((1, 1), jnp.log(DIM_HEAD ** -0.5), dtype=jnp.float32)

    out = lsa_forward(x, gamma, beta, w_qkv, w_out, b_out, temperature)
    out = jax.block_until_ready(out)

    ref = lsa_reference(x, gamma, beta, w_qkv, w_out, b_out, temperature)
    # All-f32 math with an exact softmax; tolerance covers MXU default f32 precision
    # differences between the in-kernel dots and the XLA reference einsums.
    np.testing.assert_allclose(np.asarray(out), np.asarray(ref), rtol=1e-3, atol=1e-3)

    print("KERNEL_OK")
</pallas_src>

<mosaic_0001>
module attributes {stable_mosaic.version = 11 : i64} {
  func.func @lsa_kernel(%arg0: i32, %arg1: memref<64x32xf32, #tpu.memory_space<vmem>>, %arg2: memref<1x32xf32, #tpu.memory_space<vmem>>, %arg3: memref<1x32xf32, #tpu.memory_space<vmem>>, %arg4: memref<32x64xf32, #tpu.memory_space<vmem>>, %arg5: memref<32x64xf32, #tpu.memory_space<vmem>>, %arg6: memref<32x64xf32, #tpu.memory_space<vmem>>, %arg7: memref<64x32xf32, #tpu.memory_space<vmem>>, %arg8: memref<1x32xf32, #tpu.memory_space<vmem>>, %arg9: memref<1x1xf32, #tpu.memory_space<smem>>, %arg10: memref<64x32xf32, #tpu.memory_space<vmem>>) attributes {dimension_semantics = [#tpu.dimension_semantics<parallel>], iteration_bounds = array<i64: 1>, scalar_prefetch = 0 : i64, scratch_operands = 0 : i64, tpu.core_type = #tpu.core_type<tc>, window_params = [{transform_indices = @transform_0, window_bounds = array<i64: 64, 32>}, {pipeline_mode = #tpu.pipeline_mode<synchronous>, transform_indices = @transform_1, window_bounds = array<i64: 1, 32>}, {pipeline_mode = #tpu.pipeline_mode<synchronous>, transform_indices = @transform_2, window_bounds = array<i64: 1, 32>}, {pipeline_mode = #tpu.pipeline_mode<synchronous>, transform_indices = @transform_3, window_bounds = array<i64: 32, 64>}, {pipeline_mode = #tpu.pipeline_mode<synchronous>, transform_indices = @transform_4, window_bounds = array<i64: 32, 64>}, {pipeline_mode = #tpu.pipeline_mode<synchronous>, transform_indices = @transform_5, window_bounds = array<i64: 32, 64>}, {pipeline_mode = #tpu.pipeline_mode<synchronous>, transform_indices = @transform_6, window_bounds = array<i64: 64, 32>}, {pipeline_mode = #tpu.pipeline_mode<synchronous>, transform_indices = @transform_7, window_bounds = array<i64: 1, 32>}, {transform_indices = @transform_8, window_bounds = array<i64: 1, 1>}, {transform_indices = @transform_9, window_bounds = array<i64: 64, 32>}]} {
    %c0 = arith.constant 0 : index
    %c0_0 = arith.constant 0 : index
    %0 = vector.load %arg1[%c0, %c0_0] : memref<64x32xf32, #tpu.memory_space<vmem>>, vector<64x32xf32>
    %cst = arith.constant dense<0.000000e+00> : vector<64xf32>
    %1 = vector.multi_reduction <add>, %0, %cst [1] : vector<64x32xf32> to vector<64xf32>
    %2 = vector.shape_cast %1 : vector<64xf32> to vector<64x1xf32>
    %cst_1 = arith.constant 3.200000e+01 : f32
    %3 = vector.broadcast %cst_1 : f32 to vector<64x1xf32>
    %4 = arith.divf %2, %3 : vector<64x1xf32>
    %5 = vector.broadcast %4 : vector<64x1xf32> to vector<64x32xf32>
    %6 = arith.subf %0, %5 : vector<64x32xf32>
    %7 = arith.mulf %6, %6 : vector<64x32xf32>
    %cst_2 = arith.constant dense<0.000000e+00> : vector<64xf32>
    %8 = vector.multi_reduction <add>, %7, %cst_2 [1] : vector<64x32xf32> to vector<64xf32>
    %9 = vector.shape_cast %8 : vector<64xf32> to vector<64x1xf32>
    %cst_3 = arith.constant 3.200000e+01 : f32
    %10 = vector.broadcast %cst_3 : f32 to vector<64x1xf32>
    %11 = arith.divf %9, %10 : vector<64x1xf32>
    %12 = vector.broadcast %4 : vector<64x1xf32> to vector<64x32xf32>
    %13 = arith.subf %0, %12 : vector<64x32xf32>
    %cst_4 = arith.constant 9.99999974E-6 : f32
    %14 = vector.broadcast %cst_4 : f32 to vector<64x1xf32>
    %15 = arith.addf %11, %14 : vector<64x1xf32>
    %16 = math.rsqrt %15 : vector<64x1xf32>
    %17 = vector.broadcast %16 : vector<64x1xf32> to vector<64x32xf32>
    %18 = arith.mulf %13, %17 : vector<64x32xf32>
    %c0_5 = arith.constant 0 : index
    %c0_6 = arith.constant 0 : index
    %19 = vector.load %arg2[%c0_5, %c0_6] : memref<1x32xf32, #tpu.memory_space<vmem>>, vector<1x32xf32>
    %20 = vector.broadcast %19 : vector<1x32xf32> to vector<64x32xf32>
    %21 = arith.mulf %18, %20 : vector<64x32xf32>
    %c0_7 = arith.constant 0 : index
    %c0_8 = arith.constant 0 : index
    %22 = vector.load %arg3[%c0_7, %c0_8] : memref<1x32xf32, #tpu.memory_space<vmem>>, vector<1x32xf32>
    %23 = vector.broadcast %22 : vector<1x32xf32> to vector<64x32xf32>
    %24 = arith.addf %21, %23 : vector<64x32xf32>
    %c0_9 = arith.constant 0 : index
    %c0_10 = arith.constant 0 : index
    %25 = memref.load %arg9[%c0_9, %c0_10] : memref<1x1xf32, #tpu.memory_space<smem>>
    %26 = math.exp %25 : f32
    %c0_11 = arith.constant 0 : index
    %c0_12 = arith.constant 0 : index
    %27 = vector.load %arg4[%c0_11, %c0_12] : memref<32x64xf32, #tpu.memory_space<vmem>>, vector<32x64xf32>
    %cst_13 = arith.constant dense<0.000000e+00> : vector<64x64xf32>
    %28 = tpu.matmul %24, %27, %cst_13 {dimension_numbers = #tpu.dot_dimension_numbers<[1], [0], [0], [1], [0, 0, 1, 1], [], []>} : vector<64x32xf32>, vector<32x64xf32>, vector<64x64xf32> -> vector<64x64xf32>
    %29 = vector.broadcast %26 : f32 to vector<64x64xf32>
    %30 = arith.mulf %28, %29 : vector<64x64xf32>
    %c0_14 = arith.constant 0 : index
    %c0_15 = arith.constant 0 : index
    %31 = vector.load %arg5[%c0_14, %c0_15] : memref<32x64xf32, #tpu.memory_space<vmem>>, vector<32x64xf32>
    %cst_16 = arith.constant dense<0.000000e+00> : vector<64x64xf32>
    %32 = tpu.matmul %24, %31, %cst_16 {dimension_numbers = #tpu.dot_dimension_numbers<[1], [0], [0], [1], [0, 0, 1, 1], [], []>} : vector<64x32xf32>, vector<32x64xf32>, vector<64x64xf32> -> vector<64x64xf32>
    %c0_17 = arith.constant 0 : index
    %c0_18 = arith.constant 0 : index
    %33 = vector.load %arg6[%c0_17, %c0_18] : memref<32x64xf32, #tpu.memory_space<vmem>>, vector<32x64xf32>
    %cst_19 = arith.constant dense<0.000000e+00> : vector<64x64xf32>
    %34 = tpu.matmul %24, %33, %cst_19 {dimension_numbers = #tpu.dot_dimension_numbers<[1], [0], [0], [1], [0, 0, 1, 1], [], []>} : vector<64x32xf32>, vector<32x64xf32>, vector<64x64xf32> -> vector<64x64xf32>
    %35 = vector.shape_cast %30 : vector<64x64xf32> to vector<8x8x4x16xf32>
    %36 = tpu.transpose %35, [0, 2, 1, 3] : vector<8x8x4x16xf32> -> vector<8x4x8x16xf32>
    %37 = vector.shape_cast %36 : vector<8x4x8x16xf32> to vector<32x8x16xf32>
    %38 = vector.shape_cast %32 : vector<64x64xf32> to vector<8x8x4x16xf32>
    %39 = tpu.transpose %38, [0, 2, 1, 3] : vector<8x8x4x16xf32> -> vector<8x4x8x16xf32>
    %40 = vector.shape_cast %39 : vector<8x4x8x16xf32> to vector<32x8x16xf32>
    %41 = vector.shape_cast %34 : vector<64x64xf32> to vector<8x8x4x16xf32>
    %42 = tpu.transpose %41, [0, 2, 1, 3] : vector<8x8x4x16xf32> -> vector<8x4x8x16xf32>
    %43 = vector.shape_cast %42 : vector<8x4x8x16xf32> to vector<32x8x16xf32>
    %44 = tpu.iota {dimensions = array<i32: 1>} : vector<1x8x8xi32>
    %45 = tpu.iota {dimensions = array<i32: 2>} : vector<1x8x8xi32>
    %46 = arith.cmpi eq, %44, %45 : vector<1x8x8xi32>
    "tpu.trace_start"() <{level = 10 : i32, message = "bnd,bmd->bnm"}> : () -> ()
    %cst_20 = arith.constant dense<0.000000e+00> : vector<32x8x8xf32>
    %47 = tpu.matmul %37, %40, %cst_20 {dimension_numbers = #tpu.dot_dimension_numbers<[2], [2], [1], [1], [0, 0, 0, 1, 1, 1], [0], [0]>} : vector<32x8x16xf32>, vector<32x8x16xf32>, vector<32x8x8xf32> -> vector<32x8x8xf32>
    %cst_21 = arith.constant -1.000000e+30 : f32
    "tpu.trace_stop"() : () -> ()
    %48 = vector.shape_cast %46 : vector<1x8x8xi1> to vector<1x8x8xi1>
    %49 = vector.broadcast %48 : vector<1x8x8xi1> to vector<32x8x8xi1>
    %50 = vector.broadcast %cst_21 : f32 to vector<32x8x8xf32>
    %51 = arith.select %49, %50, %47 : vector<32x8x8xi1>, vector<32x8x8xf32>
    %cst_22 = arith.constant dense<0xFF800000> : vector<32x8xf32>
    %52 = vector.multi_reduction <maximumf>, %51, %cst_22 [2] : vector<32x8x8xf32> to vector<32x8xf32>
    %53 = vector.shape_cast %52 : vector<32x8xf32> to vector<32x8x1xf32>
    %54 = vector.broadcast %53 : vector<32x8x1xf32> to vector<32x8x8xf32>
    %55 = arith.subf %51, %54 : vector<32x8x8xf32>
    %56 = math.exp %55 : vector<32x8x8xf32>
    %cst_23 = arith.constant dense<0.000000e+00> : vector<32x8xf32>
    %57 = vector.multi_reduction <add>, %56, %cst_23 [2] : vector<32x8x8xf32> to vector<32x8xf32>
    %58 = vector.shape_cast %57 : vector<32x8xf32> to vector<32x8x1xf32>
    %59 = vector.broadcast %58 : vector<32x8x1xf32> to vector<32x8x8xf32>
    %60 = arith.divf %56, %59 : vector<32x8x8xf32>
    "tpu.trace_start"() <{level = 10 : i32, message = "bnm,bmd->bnd"}> : () -> ()
    %cst_24 = arith.constant dense<0.000000e+00> : vector<32x8x16xf32>
    %61 = tpu.matmul %60, %43, %cst_24 {dimension_numbers = #tpu.dot_dimension_numbers<[2], [1], [1], [2], [0, 0, 0, 1, 1, 2], [0], [0]>} : vector<32x8x8xf32>, vector<32x8x16xf32>, vector<32x8x16xf32> -> vector<32x8x16xf32>
    "tpu.trace_stop"() : () -> ()
    %62 = vector.shape_cast %61 : vector<32x8x16xf32> to vector<8x4x8x16xf32>
    %63 = tpu.transpose %62, [1, 0, 2, 3] : vector<8x4x8x16xf32> -> vector<4x8x8x16xf32>
    %64 = vector.shape_cast %63 : vector<4x8x8x16xf32> to vector<4x64x16xf32>
    %c0_25 = arith.constant 0 : index
    %c0_26 = arith.constant 0 : index
    %65 = vector.load %arg7[%c0_25, %c0_26] : memref<64x32xf32, #tpu.memory_space<vmem>>, vector<64x32xf32>
    %66 = vector.shape_cast %65 : vector<64x32xf32> to vector<4x16x32xf32>
    "tpu.trace_start"() <{level = 10 : i32, message = "hmd,hdo->hmo"}> : () -> ()
    %cst_27 = arith.constant dense<0.000000e+00> : vector<4x64x32xf32>
    %67 = tpu.matmul %64, %66, %cst_27 {dimension_numbers = #tpu.dot_dimension_numbers<[2], [1], [1], [2], [0, 0, 0, 1, 1, 2], [0], [0]>} : vector<4x64x16xf32>, vector<4x16x32xf32>, vector<4x64x32xf32> -> vector<4x64x32xf32>
    "tpu.trace_stop"() : () -> ()
    %cst_28 = arith.constant dense<0.000000e+00> : vector<64x32xf32>
    %68 = vector.multi_reduction <add>, %67, %cst_28 [0] : vector<4x64x32xf32> to vector<64x32xf32>
    %c0_29 = arith.constant 0 : index
    %c0_30 = arith.constant 0 : index
    %69 = vector.load %arg8[%c0_29, %c0_30] : memref<1x32xf32, #tpu.memory_space<vmem>>, vector<1x32xf32>
    %70 = vector.broadcast %69 : vector<1x32xf32> to vector<64x32xf32>
    %71 = arith.addf %68, %70 : vector<64x32xf32>
    %c0_31 = arith.constant 0 : index
    %c0_32 = arith.constant 0 : index
    %72 = vector.load %arg10[%c0_31, %c0_32] : memref<64x32xf32, #tpu.memory_space<vmem>>, vector<64x32xf32>
    tpu.vector_store %arg10[%c0_31, %c0_32], %71 {strides = array<i32>} : memref<64x32xf32, #tpu.memory_space<vmem>>, vector<64x32xf32>,
    return
  }
  func.func @transform_0(%arg0: i32) -> (i32, i32) {
    %c0_i32 = arith.constant 0 : i32
    %c0_i32_0 = arith.constant 0 : i32
    return %arg0, %c0_i32 : i32, i32
  }
  func.func @transform_1(%arg0: i32) -> (i32, i32) {
    %c0_i32 = arith.constant 0 : i32
    %c0_i32_0 = arith.constant 0 : i32
    %c0_i32_1 = arith.constant 0 : i32
    return %c0_i32, %c0_i32_0 : i32, i32
  }
  func.func @transform_2(%arg0: i32) -> (i32, i32) {
    %c0_i32 = arith.constant 0 : i32
    %c0_i32_0 = arith.constant 0 : i32
    %c0_i32_1 = arith.constant 0 : i32
    return %c0_i32, %c0_i32_0 : i32, i32
  }
  func.func @transform_3(%arg0: i32) -> (i32, i32) {
    %c0_i32 = arith.constant 0 : i32
    %c0_i32_0 = arith.constant 0 : i32
    %c0_i32_1 = arith.constant 0 : i32
    return %c0_i32, %c0_i32_0 : i32, i32
  }
  func.func @transform_4(%arg0: i32) -> (i32, i32) {
    %c0_i32 = arith.constant 0 : i32
    %c0_i32_0 = arith.constant 0 : i32
    %c0_i32_1 = arith.constant 0 : i32
    return %c0_i32, %c0_i32_0 : i32, i32
  }
  func.func @transform_5(%arg0: i32) -> (i32, i32) {
    %c0_i32 = arith.constant 0 : i32
    %c0_i32_0 = arith.constant 0 : i32
    %c0_i32_1 = arith.constant 0 : i32
    return %c0_i32, %c0_i32_0 : i32, i32
  }
  func.func @transform_6(%arg0: i32) -> (i32, i32) {
    %c0_i32 = arith.constant 0 : i32
    %c0_i32_0 = arith.constant 0 : i32
    %c0_i32_1 = arith.constant 0 : i32
    return %c0_i32, %c0_i32_0 : i32, i32
  }
  func.func @transform_7(%arg0: i32) -> (i32, i32) {
    %c0_i32 = arith.constant 0 : i32
    %c0_i32_0 = arith.constant 0 : i32
    %c0_i32_1 = arith.constant 0 : i32
    return %c0_i32, %c0_i32_0 : i32, i32
  }
  func.func @transform_8(%arg0: i32) -> (i32, i32) {
    %c0_i32 = arith.constant 0 : i32
    %c0_i32_0 = arith.constant 0 : i32
    %c0_i32_1 = arith.constant 0 : i32
    return %c0_i32, %c0_i32_0 : i32, i32
  }
  func.func @transform_9(%arg0: i32) -> (i32, i32) {
    %c0_i32 = arith.constant 0 : i32
    %c0_i32_0 = arith.constant 0 : i32
    return %arg0, %c0_i32 : i32, i32
  }
}

</mosaic_0001>

<bundles_post_ra>
// kernel: tpu_custom_call.1
= control target key start
LH: loop header
LB: loop body
LE: loop exit
PB: predicated region body
PF: predicated region fallthrough
CT: control target
= control target key end

     0   :  { %vm41_vm0 = vcmask 261120   ;;  %s10821_s27 = smov 112   ;;  %s10822_s29 = smov 80   ;;  %vm10824_vm1 = vmmov 0   ;;  %vm4051_vm2 = vcmask 130048   ;;  %vm6518_vm4 = vcmask 64512   ;;  %s13401_s0 = inlined_call_operand.vmem [shape: f32[64,32], index: 0, kind: input, shape index: {}]   ;;  %s13402_s3 = inlined_call_operand.vmem [shape: f32[32,64], index: 3, kind: input, shape index: {}]   ;;  %s13403_s4 = inlined_call_operand.vmem [shape: f32[32,64], index: 4, kind: input, shape index: {}]   ;;  %s13404_s5 = inlined_call_operand.vmem [shape: f32[32,64], index: 5, kind: input, shape index: {}]   ;;  %s13405_s8 = inlined_call_operand.<no memory space> [shape: f32[1,1], index: 8, kind: input, shape index: {}]   ;;  %s13406_s1 = inlined_call_operand.vmem [shape: f32[1,32], index: 1, kind: input, shape index: {}]   ;;  %s13407_s2 = inlined_call_operand.vmem [shape: f32[1,32], index: 2, kind: input, shape index: {}]   ;;  %s13408_s6 = inlined_call_operand.vmem [shape: f32[64,32], index: 6, kind: input, shape index: {}]   ;;  %s13409_s7 = inlined_call_operand.vmem [shape: f32[1,32], index: 7, kind: input, shape index: {}]   ;;  %s13410_s9 = inlined_call_operand.vmem [shape: f32[64,32], index: 9, kind: output, shape index: {}]  }
   0x1   :  { %v33_v0 = vld [vmem:[%s13401_s0] sm:$0xff]  ;;  %v35_v1 = vld [vmem:[%s13401_s0 + $0x10] sm:$0xff]  ;;  %v34_v2 = vld [vmem:[%s13401_s0 + $0x8] sm:$0xff] }
   0x2   :  { %v42_v3 = vsel %vm41_vm0, %v33_v0, 0.0  ;;  %v48_v4 = vsel %vm41_vm0, %v35_v1, 0.0  ;;  %v36_v5 = vld [vmem:[%s13401_s0 + $0x18] sm:$0xff]  ;;  %v45_v6 = vsel %vm41_vm0, %v34_v2, 0.0  ;;  %v37_v8 = vld [vmem:[%s13401_s0 + $0x20] sm:$0xff]  ;;  %v38_v9 = vld [vmem:[%s13401_s0 + $0x28] sm:$0xff] }
   0x3   :  { %43 = vadd.xlane.f32.xlu0 %v42_v3  ;;  %49 = vadd.xlane.f32.xlu1 %v48_v4  ;;  %v51_v7 = vsel %vm41_vm0, %v36_v5, 0.0  ;;  %v54_v10 = vsel %vm41_vm0, %v37_v8, 0.0  ;;  %v57_v11 = vsel %vm41_vm0, %v38_v9, 0.0  ;;  %v39_v12 = vld [vmem:[%s13401_s0 + $0x30] sm:$0xff]  ;;  %v40_v13 = vld [vmem:[%s13401_s0 + $0x38] sm:$0xff]  ;;  %v183_v60 = vld [vmem:[%s13402_s3 + $0x8] sm:$0xff] }
   0x4   :  { %v60_v14 = vsel %vm41_vm0, %v39_v12, 0.0  ;;  %v63_v15 = vsel %vm41_vm0, %v40_v13, 0.0  ;;  %v185_v56 = vld [vmem:[%s13402_s3 + $0x18] sm:$0xff]  ;;  %v184_v58 = vld [vmem:[%s13402_s3 + $0x10] sm:$0xff]  ;;  %v325_v61 = vld [vmem:[%s13403_s4 + $0x8] sm:$0xff] }
   0x5   :  { %v327_v57 = vld [vmem:[%s13403_s4 + $0x18] sm:$0xff]  ;;  %10221 = vmatprep.subr.mxu0 %v185_v56  ;;  %v326_v59 = vld [vmem:[%s13403_s4 + $0x10] sm:$0xff]  ;;  %v182_v62 = vld [vmem:[%s13402_s3] sm:$0xff] }
   0x6   :  { %10241 = vmatprep.subr.mxu1 %v327_v57  ;;  %10222 = vmatpush3.msra.mxu0 %v185_v56  ;;  %v324_v63 = vld [vmem:[%s13403_s4] sm:$0xff] }
   0x7   :  { %46 = vadd.xlane.f32.xlu0 %v45_v6  ;;  %52 = vadd.xlane.f32.xlu1 %v51_v7 }
   0x8   :  { %10242 = vmatpush3.msra.mxu1 %v327_v57  ;;  %10223 = vmatprep.subr.mxu0 %v184_v58 }
   0x9   :  { %10243 = vmatprep.subr.mxu1 %v326_v59  ;;  %10224 = vmatpush3.msra.mxu0 %v184_v58 }
   0xa   :  { %10244 = vmatpush3.msra.mxu1 %v326_v59  ;;  %10225 = vmatprep.subr.mxu0 %v183_v60  ;;  %v434_v59 = vld [vmem:[%s13404_s5 + $0x8] sm:$0xff] }
   0xb   :  { %55 = vadd.xlane.f32.xlu0 %v54_v10  ;;  %58 = vadd.xlane.f32.xlu1 %v57_v11 }
   0xc   :  { %10245 = vmatprep.subr.mxu1 %v325_v61  ;;  %10226 = vmatpush3.msra.mxu0 %v183_v60 }
   0xd   :  { %10246 = vmatpush3.msra.mxu1 %v325_v61  ;;  %10227 = vmatprep.subr.mxu0 %v182_v62 }
   0xe   :  { %10247 = vmatprep.subr.mxu1 %v324_v63  ;;  %10228 = vmatpush3.msra.mxu0 %v182_v62 }
   0xf   :  { %61 = vadd.xlane.f32.xlu0 %v60_v14  ;;  %64 = vadd.xlane.f32.xlu1 %v63_v15 }
  0x10   :  { %10248 = vmatpush3.msra.mxu1 %v324_v63 }
  0x8c   :  { %v44_v16 = vpop.xlane.xlu0 %43  ;;  %v50_v17 = vpop.xlane.xlu1 %49 }
  0x8d   :  { %v67_v18 = vmul.f32 0.03125, %v44_v16  ;;  %v69_v19 = vmul.f32 0.03125, %v50_v17 }
  0x8f   :  { %v10909_v20 = vsub.f32 %v33_v0, %v67_v18  ;;  %v10911_v21 = vsub.f32 %v35_v1, %v69_v19  ;;  %v10976_v0 = vld [vmem:[%s13404_s5 + $0x18] sm:$0xff]  ;;  %v178_v1 = vstv %s13405_s8 }
  0x90   :  { %v47_v22 = vpop.xlane.xlu0 %46  ;;  %v53_v23 = vpop.xlane.xlu1 %52  ;;  %10261 = vmatprep.subr.mxu0 %v10976_v0 }
  0x91   :  { %v68_v24 = vmul.f32 0.03125, %v47_v22  ;;  %v70_v25 = vmul.f32 0.03125, %v53_v23  ;;  %v83_v26 = vmul.f32 %v10909_v20, %v10909_v20  ;;  %v85_v27 = vmul.f32 %v10911_v21, %v10911_v21 }
  0x93   :  { %v10917_v28 = vsub.f32 %v34_v2, %v68_v24  ;;  %v10919_v29 = vsub.f32 %v36_v5, %v70_v25  ;;  %v91_v30 = vsel %vm41_vm0, %v83_v26, 0.0  ;;  %v97_v33 = vsel %vm41_vm0, %v85_v27, 0.0 }
  0x94   :  { %92 = vadd.xlane.f32.xlu0 %v91_v30  ;;  %v56_v31 = vpop.xlane.xlu0 %55  ;;  %v59_v32 = vpop.xlane.xlu1 %58  ;;  %v179_v2 = vmul.f32 1.442695, %v178_v1 }
  0x95   :  { %v71_v34 = vmul.f32 0.03125, %v56_v31  ;;  %v72_v35 = vmul.f32 0.03125, %v59_v32  ;;  %v84_v36 = vmul.f32 %v10917_v28, %v10917_v28  ;;  %v86_v37 = vmul.f32 %v10919_v29, %v10919_v29  ;;  %v9814_v32 = vld [vmem:[%s13406_s1] ss:$0 sm:$0xff] }
  0x96   :  { %10674 = vpow2.f32 %v179_v2 }
  0x97   :  { %v10927_v38 = vsub.f32 %v37_v8, %v71_v34  ;;  %v10929_v39 = vsub.f32 %v38_v9, %v72_v35  ;;  %v94_v40 = vsel %vm41_vm0, %v84_v36, 0.0  ;;  %v100_v43 = vsel %vm41_vm0, %v86_v37, 0.0  ;;  %v9815_v35 = vld [vmem:[%s13407_s2] ss:$0 sm:$0xff] }
  0x98   :  { %98 = vadd.xlane.f32.xlu0 %v97_v33  ;;  %95 = vadd.xlane.f32.xlu1 %v94_v40  ;;  %v62_v41 = vpop.xlane.xlu0 %61  ;;  %v65_v42 = vpop.xlane.xlu1 %64 }
  0x99   :  { %v73_v44 = vmul.f32 0.03125, %v62_v41  ;;  %v74_v45 = vmul.f32 0.03125, %v65_v42  ;;  %v87_v46 = vmul.f32 %v10927_v38, %v10927_v38  ;;  %v88_v47 = vmul.f32 %v10929_v39, %v10929_v39 }
  0x9b   :  { %v10937_v48 = vsub.f32 %v39_v12, %v73_v44  ;;  %v10939_v49 = vsub.f32 %v40_v13, %v74_v45  ;;  %v103_v50 = vsel %vm41_vm0, %v87_v46, 0.0  ;;  %v106_v51 = vsel %vm41_vm0, %v88_v47, 0.0 }
  0x9c   :  { %101 = vadd.xlane.f32.xlu1 %v100_v43  ;;  %104 = vadd.xlane.f32.xlu0 %v103_v50 }
  0x9d   :  { %v89_v52 = vmul.f32 %v10937_v48, %v10937_v48  ;;  %v90_v53 = vmul.f32 %v10939_v49, %v10939_v49 }
  0x9f   :  { %v109_v54 = vsel %vm41_vm0, %v89_v52, 0.0  ;;  %v112_v55 = vsel %vm41_vm0, %v90_v53, 0.0 }
  0xa0   :  { %107 = vadd.xlane.f32.xlu1 %v106_v51  ;;  %110 = vadd.xlane.f32.xlu0 %v109_v54 }
  0xa3   :  { %v10675_v3 = vpop.eup %10674 }
  0xa4   :  { %113 = vadd.xlane.f32.xlu1 %v112_v55  ;;  %10665 = vpush %v10675_v3 }
  0xd5   :  { %s10666_s28 = spop %10665 }
  0xd6   :  { %v11042_v3 = vstv %s10666_s28 }
 0x11d   :  { %v93_v4 = vpop.xlane.xlu0 %92 }
 0x11e   :  { %v115_v5 = vmul.f32 0.03125, %v93_v4 }
 0x120   :  { %v123_v6 = vadd.f32 1e-05, %v115_v5 }
 0x121   :  { %v96_v7 = vpop.xlane.xlu1 %95  ;;  %v99_v8 = vpop.xlane.xlu0 %98 }
 0x122   :  { %10676 = vrsqrt.f32 %v123_v6  ;;  %v116_v9 = vmul.f32 0.03125, %v96_v7  ;;  %v117_v10 = vmul.f32 0.03125, %v99_v8  ;;  %v13412_v8 = vmov 0.0  }
 0x123   :  { %10281 = vmatprep.subr.mxu1 %v13412_v8 }
 0x124   :  { %v124_v11 = vadd.f32 1e-05, %v116_v9  ;;  %v125_v12 = vadd.f32 1e-05, %v117_v10 }
 0x125   :  { %v102_v13 = vpop.xlane.xlu1 %101  ;;  %v105_v14 = vpop.xlane.xlu0 %104 }
 0x126   :  { %10678 = vrsqrt.f32 %v124_v11  ;;  %v118_v15 = vmul.f32 0.03125, %v102_v13  ;;  %v119_v16 = vmul.f32 0.03125, %v105_v14 }
 0x127   :  { %10680 = vrsqrt.f32 %v125_v12 }
 0x128   :  { %v126_v17 = vadd.f32 1e-05, %v118_v15  ;;  %v127_v18 = vadd.f32 1e-05, %v119_v16 }
 0x129   :  { %v108_v19 = vpop.xlane.xlu1 %107  ;;  %v111_v22 = vpop.xlane.xlu0 %110 }
 0x12a   :  { %10682 = vrsqrt.f32 %v126_v17  ;;  %v120_v23 = vmul.f32 0.03125, %v108_v19  ;;  %v121_v24 = vmul.f32 0.03125, %v111_v22 }
 0x12b   :  { %10684 = vrsqrt.f32 %v127_v18 }
 0x12c   :  { %v128_v25 = vadd.f32 1e-05, %v120_v23  ;;  %v129_v26 = vadd.f32 1e-05, %v121_v24 }
 0x12d   :  { %v114_v27 = vpop.xlane.xlu1 %113 }
 0x12e   :  { %10686 = vrsqrt.f32 %v128_v25  ;;  %v122_v30 = vmul.f32 0.03125, %v114_v27 }
 0x12f   :  { %v10677_v31 = vpop.eup %10676  ;;  %10688 = vrsqrt.f32 %v129_v26 }
 0x130   :  { %v130_v33 = vadd.f32 1e-05, %v122_v30  ;;  %v139_v34 = vmul.f32 %v10677_v31, %v10909_v20 }
 0x132   :  { %10690 = vrsqrt.f32 %v130_v33  ;;  %v154_v36 = vmul.f32 %v9814_v32, %v139_v34 }
 0x133   :  { %v10679_v37 = vpop.eup %10678 }
 0x134   :  { %v10681_v40 = vpop.eup %10680  ;;  %v169_v41 = vadd.f32 %v9815_v35, %v154_v36  ;;  %v140_v42 = vmul.f32 %v10679_v37, %v10917_v28  ;;  %v10825_v37 = vmov 1983009808  }
 0x135   :  { %v141_v43 = vmul.f32 %v10681_v40, %v10911_v21  ;;  %v435_v21 = vld [vmem:[%s13404_s5 + $0x10] sm:$0xff]  ;;  %v625_v40 = vunpack.c.l.s4 %v10825_v37 }
 0x136   :  { %10229 = vmatprep.mubr.msk.f32.mxu0 %vm41_vm0, %v169_v41  ;;  %10249 = vmatprep.mubr.msk.f32.mxu1 %vm41_vm0, %v169_v41  ;;  %v155_v44 = vmul.f32 %v9814_v32, %v140_v42 }
 0x137   :  { %v10683_v45 = vpop.eup %10682  ;;  %v156_v20 = vmul.f32 %v9814_v32, %v141_v43  ;;  %v10826_v43 = vmov 1934713408  }
 0x138   :  { %v10685_v46 = vpop.eup %10684  ;;  %v170_v47 = vadd.f32 %v9815_v35, %v155_v44  ;;  %v142_v50 = vmul.f32 %v10683_v45, %v10919_v29  ;;  %v657_v44 = vunpack.c.l.s4 %v10826_v43  ;;  %v626_v45 = vunpack.c.0.s8 %v625_v40 }
 0x139   :  { %v171_v51 = vadd.f32 %v9815_v35, %v156_v20  ;;  %v143_v52 = vmul.f32 %v10685_v46, %v10927_v38 }
 0x13a   :  { %10230 = vmatmul.mubr.msk.f32.vlgmr.msra.gmra.mxu0 %vm41_vm0, %v170_v47  ;;  %10250 = vmatmul.mubr.msk.f32.vlgmr.msra.gmra.mxu1 %vm41_vm0, %v170_v47  ;;  %v157_v28 = vmul.f32 %v9814_v32, %v142_v50 }
 0x13b   :  { %v10687_v53 = vpop.eup %10686  ;;  %10232 = vmatprep.mubr.msk.f32.mxu0 %vm41_vm0, %v171_v51  ;;  %10252 = vmatprep.mubr.msk.f32.mxu1 %vm41_vm0, %v171_v51  ;;  %v158_v54 = vmul.f32 %v9814_v32, %v143_v52 }
 0x13c   :  { %v10689_v55 = vpop.eup %10688  ;;  %v172_v29 = vadd.f32 %v9815_v35, %v157_v28  ;;  %v144_v56 = vmul.f32 %v10687_v53, %v10929_v39  ;;  %10262 = vmatpush3.msra.mxu0 %v10976_v0  ;;  %v433_v0 = vld [vmem:[%s13404_s5] sm:$0xff]  ;;  %s10820_s5 = smov 96  }
 0x13d   :  { %v173_v38 = vadd.f32 %v9815_v35, %v158_v54  ;;  %v145_v57 = vmul.f32 %v10689_v55, %v10937_v48  ;;  %10263 = vmatprep.subr.mxu0 %v435_v21 }
 0x13e   :  { %10233 = vmatmul.mubr.msk.f32.gmra.mxu0 %vm41_vm0, %v172_v29  ;;  %10253 = vmatmul.mubr.msk.f32.gmra.mxu1 %vm41_vm0, %v172_v29  ;;  %v159_v58 = vmul.f32 %v9814_v32, %v144_v56 }
 0x13f   :  { %v10691_v60 = vpop.eup %10690  ;;  %10235 = vmatprep.mubr.msk.f32.mxu0 %vm41_vm0, %v173_v38  ;;  %10255 = vmatprep.mubr.msk.f32.mxu1 %vm41_vm0, %v173_v38  ;;  %v160_v39 = vmul.f32 %v9814_v32, %v145_v57 }
 0x140   :  { %v174_v61 = vadd.f32 %v9815_v35, %v159_v58  ;;  %10264 = vmatpush3.msra.mxu0 %v435_v21  ;;  %v146_v48 = vmul.f32 %v10691_v60, %v10939_v49 }
 0x141   :  { %v175_v62 = vadd.f32 %v9815_v35, %v160_v39  ;;  %10265 = vmatprep.subr.mxu0 %v434_v59 }
 0x142   :  { %10236 = vmatmul.mubr.msk.f32.gmra.mxu0 %vm41_vm0, %v174_v61  ;;  %10256 = vmatmul.mubr.msk.f32.gmra.mxu1 %vm41_vm0, %v174_v61  ;;  %v161_v63 = vmul.f32 %v9814_v32, %v146_v48 }
 0x143   :  { %10238 = vmatprep.mubr.msk.f32.mxu0 %vm41_vm0, %v175_v62  ;;  %10258 = vmatprep.mubr.msk.f32.mxu1 %vm41_vm0, %v175_v62 }
 0x144   :  { %v176_v1 = vadd.f32 %v9815_v35, %v161_v63  ;;  %10266 = vmatpush3.msra.mxu0 %v434_v59 }
 0x145   :  { %10267 = vmatprep.subr.mxu0 %v433_v0 }
 0x146   :  { %10239 = vmatmul.mubr.msk.f32.gmra.mxu0 %vm41_vm0, %v176_v1  ;;  %10259 = vmatmul.mubr.msk.f32.gmra.mxu1 %vm41_vm0, %v176_v1 }
 0x147   :  { %10269 = vmatprep.mubr.msk.f32.mxu0 %vm41_vm0, %v169_v41  ;;  %10268 = vmatpush3.msra.mxu0 %v433_v0  ;;  %v13411_v41 = vlaneseq }
 0x148   :  { %10301 = vmatprep.subr.mxu0 %v13412_v8  ;;  %10283 = vmatprep.mubr.msk.f32.mxu1 %vm10824_vm1, %v13412_v8 }
 0x149   :  { %v11209_v20 = vshrl.u32 %v13411_v41, 7 }
 0x14a   :  { %10270 = vmatmul.mubr.msk.f32.vlgmr.msra.gmra.mxu0 %vm41_vm0, %v170_v47 }
 0x14b   :  { %10272 = vmatprep.mubr.msk.f32.mxu0 %vm41_vm0, %v171_v51  ;;  %13448 = vst [vmem:[#allocation7_spill] sm:$0xff] %v11209_v20  ;;  %v658_v51 = vunpack.c.0.s8 %v657_v44  ;;  %v11218_v52 = vsub.s32 %v626_v45, %v11209_v20 }
 0x14d   :  { %13450 = vst [vmem:[#allocation9_spill] sm:$0xff] %v11218_v52  ;;  %v11223_v56 = vsub.s32 %v658_v51, %v11209_v20 }
 0x14e   :  { %10273 = vmatmul.mubr.msk.f32.gmra.mxu0 %vm41_vm0, %v172_v29 }
 0x14f   :  { %10275 = vmatprep.mubr.msk.f32.mxu0 %vm41_vm0, %v173_v38  ;;  %13451 = vst [vmem:[#allocation10_spill] sm:$0xff] %v11223_v56 }
 0x152   :  { %10276 = vmatmul.mubr.msk.f32.gmra.mxu0 %vm41_vm0, %v174_v61 }
 0x153   :  { %10278 = vmatprep.mubr.msk.f32.mxu0 %vm41_vm0, %v175_v62 }
 0x156   :  { %10279 = vmatmul.mubr.msk.f32.gmra.mxu0 %vm41_vm0, %v176_v1 }
 0x157   :  { %10303 = vmatprep.mubr.msk.f32.mxu0 %vm10824_vm1, %v13412_v8 }
 0x1fa   :  { %v11030_v49 = vpop.f32.mrf.mxu1  ;;  %v10231_v4 = vpop.f32.mrf.mxu0 }
 0x1fb   :  { %1744 = vrot.lane.b32.xlu1 %v11030_v49, %s10820_s5  ;;  %1720 = vrot.lane.b32.xlu0 %v11030_v49, %s10821_s27  ;;  %v11049_v5 = vmul.f32 %v10231_v4, %v11042_v3 }
 0x1fc   :  { %v11036_v2 = vpop.f32.mrf.mxu1  ;;  %v276_v6 = vpop.f32.mrf.mxu0 }
 0x1fd   :  { %v11056_v7 = vmul.f32 %v11042_v3, %v276_v6 }
 0x1fe   :  { %v11064_v9 = vpop.f32.mrf.mxu1  ;;  %v10234_v11 = vpop.f32.mrf.mxu0 }
 0x1ff   :  { %1768 = vrot.lane.b32.xlu0 %v11030_v49, %s10822_s29  ;;  %1742 = vrot.lane.b32.xlu1 %v11036_v2, %s10820_s5  ;;  %v11089_v12 = vmul.f32 %v10234_v11, %v11042_v3 }
 0x200   :  { %v11074_v10 = vpop.f32.mrf.mxu1  ;;  %v286_v13 = vpop.f32.mrf.mxu0 }
 0x201   :  { %v11096_v14 = vmul.f32 %v11042_v3, %v286_v13 }
 0x202   :  { %v11102_v15 = vpop.f32.mrf.mxu1  ;;  %v10237_v17 = vpop.f32.mrf.mxu0 }
 0x203   :  { %1766 = vrot.lane.b32.xlu1 %v11036_v2, %s10822_s29  ;;  %1718 = vrot.lane.b32.xlu0 %v11036_v2, %s10821_s27  ;;  %v11123_v18 = vmul.f32 %v10237_v17, %v11042_v3 }
 0x204   :  { %v11112_v16 = vpop.f32.mrf.mxu1  ;;  %v296_v19 = vpop.f32.mrf.mxu0 }
 0x205   :  { %v11130_v22 = vmul.f32 %v11042_v3, %v296_v19 }
 0x206   :  { %v11136_v23 = vpop.f32.mrf.mxu1  ;;  %v10240_v24 = vpop.f32.mrf.mxu0 }
 0x207   :  { %576 = vrot.lane.b32.xlu0 %v11049_v5, %s10820_s5  ;;  %552 = vrot.lane.b32.xlu1 %v11049_v5, %s10821_s27  ;;  %v11164_v30 = vmul.f32 %v10240_v24, %v11042_v3 }
 0x208   :  { %v11142_v25 = vpop.f32.mrf.mxu1  ;;  %v306_v26 = vpop.f32.mrf.mxu0 }
 0x209   :  { %v11153_v27 = vmul.f32 %v11042_v3, %v306_v26 }
 0x20a   :  { %v11166_v31 = vpop.f32.mrf.mxu0 }
 0x20b   :  { %600 = vrot.lane.b32.xlu1 %v11049_v5, %s10822_s29  ;;  %574 = vrot.lane.b32.xlu0 %v11056_v7, %s10820_s5 }
 0x20c   :  { %v11172_v32 = vpop.f32.mrf.mxu0 }
 0x20e   :  { %v11178_v33 = vpop.f32.mrf.mxu0 }
 0x20f   :  { %550 = vrot.lane.b32.xlu1 %v11056_v7, %s10821_s27  ;;  %1724 = vrot.lane.b32.xlu0 %v11064_v9, %s10821_s27  ;;  %13444 = vst [vmem:[#allocation3_spill] sm:$0xff] %v11178_v33 }
 0x210   :  { %v11184_v34 = vpop.f32.mrf.mxu0 }
 0x212   :  { %v11190_v35 = vpop.f32.mrf.mxu0 }
 0x213   :  { %598 = vrot.lane.b32.xlu1 %v11056_v7, %s10822_s29  ;;  %1772 = vrot.lane.b32.xlu0 %v11064_v9, %s10822_s29  ;;  %13445 = vst [vmem:[#allocation4_spill] sm:$0xff] %v11190_v35 }
 0x214   :  { %v11196_v36 = vpop.f32.mrf.mxu0 }
 0x215   :  { %13446 = vst [vmem:[#allocation5_spill] sm:$0xff] %v11196_v36 }
 0x216   :  { %v11202_v42 = vpop.f32.mrf.mxu0 }
 0x217   :  { %1748 = vrot.lane.b32.xlu1 %v11064_v9, %s10820_s5  ;;  %1722 = vrot.lane.b32.xlu0 %v11074_v10, %s10821_s27  ;;  %13447 = vst [vmem:[#allocation6_spill] sm:$0xff] %v11202_v42 }
 0x218   :  { %v11211_v50 = vpop.f32.mrf.mxu0 }
 0x219   :  { %13449 = vst [vmem:[#allocation8_spill] sm:$0xff] %v11211_v50 }
 0x21b   :  { %1746 = vrot.lane.b32.xlu1 %v11074_v10, %s10820_s5  ;;  %1770 = vrot.lane.b32.xlu0 %v11074_v10, %s10822_s29 }
 0x21f   :  { %580 = vrot.lane.b32.xlu0 %v11089_v12, %s10820_s5  ;;  %556 = vrot.lane.b32.xlu1 %v11089_v12, %s10821_s27 }
 0x223   :  { %604 = vrot.lane.b32.xlu1 %v11089_v12, %s10822_s29  ;;  %578 = vrot.lane.b32.xlu0 %v11096_v14, %s10820_s5 }
 0x227   :  { %554 = vrot.lane.b32.xlu1 %v11096_v14, %s10821_s27  ;;  %1728 = vrot.lane.b32.xlu0 %v11102_v15, %s10821_s27 }
 0x22b   :  { %602 = vrot.lane.b32.xlu1 %v11096_v14, %s10822_s29  ;;  %1776 = vrot.lane.b32.xlu0 %v11102_v15, %s10822_s29 }
 0x22f   :  { %1752 = vrot.lane.b32.xlu1 %v11102_v15, %s10820_s5  ;;  %1726 = vrot.lane.b32.xlu0 %v11112_v16, %s10821_s27 }
 0x233   :  { %1750 = vrot.lane.b32.xlu1 %v11112_v16, %s10820_s5  ;;  %1774 = vrot.lane.b32.xlu0 %v11112_v16, %s10822_s29 }
 0x237   :  { %584 = vrot.lane.b32.xlu0 %v11123_v18, %s10820_s5  ;;  %560 = vrot.lane.b32.xlu1 %v11123_v18, %s10821_s27 }
 0x23b   :  { %608 = vrot.lane.b32.xlu1 %v11123_v18, %s10822_s29  ;;  %582 = vrot.lane.b32.xlu0 %v11130_v22, %s10820_s5 }
 0x23f   :  { %558 = vrot.lane.b32.xlu1 %v11130_v22, %s10821_s27  ;;  %1732 = vrot.lane.b32.xlu0 %v11136_v23, %s10821_s27 }
 0x243   :  { %606 = vrot.lane.b32.xlu1 %v11130_v22, %s10822_s29  ;;  %1730 = vrot.lane.b32.xlu0 %v11142_v25, %s10821_s27 }
 0x247   :  { %1756 = vrot.lane.b32.xlu1 %v11136_v23, %s10820_s5  ;;  %1778 = vrot.lane.b32.xlu0 %v11142_v25, %s10822_s29 }
 0x24b   :  { %1754 = vrot.lane.b32.xlu1 %v11142_v25, %s10820_s5  ;;  %586 = vrot.lane.b32.xlu0 %v11153_v27, %s10820_s5 }
 0x24f   :  { %1780 = vrot.lane.b32.xlu0 %v11136_v23, %s10822_s29  ;;  %562 = vrot.lane.b32.xlu1 %v11153_v27, %s10821_s27 }
 0x253   :  { %588 = vrot.lane.b32.xlu0 %v11164_v30, %s10820_s5  ;;  %610 = vrot.lane.b32.xlu1 %v11153_v27, %s10822_s29 }
 0x257   :  { %2888 = vrot.lane.b32.xlu0 %v11166_v31, %s10821_s27  ;;  %564 = vrot.lane.b32.xlu1 %v11164_v30, %s10821_s27 }
 0x25b   :  { %2910 = vrot.lane.b32.xlu0 %v11172_v32, %s10820_s5  ;;  %612 = vrot.lane.b32.xlu1 %v11164_v30, %s10822_s29 }
 0x25f   :  { %2892 = vrot.lane.b32.xlu0 %v11178_v33, %s10821_s27  ;;  %2912 = vrot.lane.b32.xlu1 %v11166_v31, %s10820_s5 }
 0x263   :  { %2914 = vrot.lane.b32.xlu0 %v11184_v34, %s10820_s5  ;;  %2936 = vrot.lane.b32.xlu1 %v11166_v31, %s10822_s29 }
 0x267   :  { %2896 = vrot.lane.b32.xlu0 %v11190_v35, %s10821_s27  ;;  %2886 = vrot.lane.b32.xlu1 %v11172_v32, %s10821_s27 }
 0x26b   :  { %2918 = vrot.lane.b32.xlu0 %v11196_v36, %s10820_s5  ;;  %2934 = vrot.lane.b32.xlu1 %v11172_v32, %s10822_s29 }
 0x26d   :  { %v1745_v46 = vpop.permute.xlu1 %1744  ;;  %v1721_v47 = vpop.permute.xlu0 %1720 }
 0x26e   :  { %v1858_v28 = vcombine.low %v11030_v49, %v1745_v46  ;;  %v1859_v21 = vcombine.high %v11030_v49, %v1745_v46 }
 0x26f   :  { %2922 = vrot.lane.b32.xlu0 %v11211_v50, %s10820_s5  ;;  %2916 = vrot.lane.b32.xlu1 %v11178_v33, %s10820_s5 }
 0x270   :  { %v1866_v38 = vrot.slane %v1858_v28, %v11218_v52  ;;  %v1873_v57 = vrot.slane %v1859_v21, %v11218_v52 }
 0x271   :  { %v1743_v53 = vpop.permute.xlu1 %1742  ;;  %v1769_v54 = vpop.permute.xlu0 %1768 }
 0x272   :  { %v1874_v55 = vcombine.low %v1721_v47, %v1769_v54  ;;  %v1875_v29 = vcombine.high %v1721_v47, %v1769_v54  ;;  %v1790_v60 = vcombine.low %v11036_v2, %v1743_v53  ;;  %v1791_v39 = vcombine.high %v11036_v2, %v1743_v53 }
 0x273   :  { %2940 = vrot.lane.b32.xlu1 %v11178_v33, %s10822_s29 }
 0x274   :  { %v1882_v58 = vrot.slane %v1874_v55, %v11218_v52  ;;  %v1889_v59 = vrot.slane %v1875_v29, %v11218_v52  ;;  %v1798_v2 = vrot.slane %v1790_v60, %v11218_v52  ;;  %v1805_v17 = vrot.slane %v1791_v39, %v11218_v52 }
 0x275   :  { %v1767_v61 = vpop.permute.xlu1 %1766  ;;  %v1719_v48 = vpop.permute.xlu0 %1718 }
 0x276   :  { %v1890_v62 = vcombine.low %v1866_v38, %v1882_v58  ;;  %v1891_v63 = vcombine.high %v1866_v38, %v1882_v58  ;;  %v1906_v0 = vcombine.low %v1873_v57, %v1889_v59  ;;  %v1907_v1 = vcombine.high %v1873_v57, %v1889_v59 }
 0x277   :  { %v1806_v49 = vcombine.low %v1719_v48, %v1767_v61  ;;  %v1807_v3 = vcombine.high %v1719_v48, %v1767_v61  ;;  %2890 = vrot.lane.b32.xlu1 %v11184_v34, %s10821_s27 }
 0x278   :  { %v1898_v4 = vrot.slane %v1890_v62, %v11223_v56  ;;  %v1905_v6 = vrot.slane %v1891_v63, %v11223_v56  ;;  %v1914_v11 = vrot.slane %v1906_v0, %v11223_v56  ;;  %v1921_v13 = vrot.slane %v1907_v1, %v11223_v56 }
 0x279   :  { %v1814_v19 = vrot.slane %v1806_v49, %v11218_v52  ;;  %v1821_v24 = vrot.slane %v1807_v3, %v11218_v52  ;;  %v553_v26 = vpop.permute.xlu1 %552  ;;  %v577_v37 = vpop.permute.xlu0 %576 }
 0x27a   :  { %v2402_v40 = vcombine.low %v1898_v4, %v1905_v6  ;;  %v9858_v43 = vcombine.high %v1898_v4, %v1905_v6  ;;  %v2418_v44 = vcombine.low %v1914_v11, %v1921_v13  ;;  %v9859_v45 = vcombine.high %v1914_v11, %v1921_v13 }
 0x27b   :  { %v1822_v46 = vcombine.low %v1798_v2, %v1814_v19  ;;  %v1823_v47 = vcombine.high %v1798_v2, %v1814_v19  ;;  %v1838_v51 = vcombine.low %v1805_v17, %v1821_v24  ;;  %v1839_v28 = vcombine.high %v1805_v17, %v1821_v24  ;;  %2938 = vrot.lane.b32.xlu1 %v11184_v34, %s10822_s29 }
 0x27c   :  { %v11246_v21 = vrot.slane %v2402_v40, %v11218_v52  ;;  %v11249_v53 = vrot.slane %v9858_v43, %v11218_v52  ;;  %v11252_v54 = vrot.slane %v2418_v44, %v11218_v52  ;;  %v11255_v55 = vrot.slane %v9859_v45, %v11218_v52 }
 0x27d   :  { %v1830_v29 = vrot.slane %v1822_v46, %v11223_v56  ;;  %v1837_v38 = vrot.slane %v1823_v47, %v11223_v56  ;;  %v1846_v57 = vrot.slane %v1838_v51, %v11223_v56  ;;  %v1853_v58 = vrot.slane %v1839_v28, %v11223_v56  ;;  %v601_v59 = vpop.permute.xlu1 %600  ;;  %v575_v60 = vpop.permute.xlu0 %574 }
 0x27e   :  { %v690_v62 = vcombine.low %v11049_v5, %v577_v37  ;;  %v691_v63 = vcombine.high %v11049_v5, %v577_v37  ;;  %v706_v0 = vcombine.low %v553_v26, %v601_v59  ;;  %v707_v1 = vcombine.high %v553_v26, %v601_v59 }
 0x27f   :  { %v2334_v39 = vcombine.low %v1830_v29, %v1837_v38  ;;  %v9856_v61 = vcombine.high %v1830_v29, %v1837_v38  ;;  %v2350_v48 = vcombine.low %v1846_v57, %v1853_v58  ;;  %2920 = vrot.lane.b32.xlu1 %v11190_v35, %s10820_s5  ;;  %v2434_v49 = vcombine.low %v11246_v21, %v11249_v53 }
 0x280   :  { %v2450_v4 = vcombine.low %v11252_v54, %v11255_v55  ;;  %v9857_v6 = vcombine.high %v1846_v57, %v1853_v58  ;;  %v698_v2 = vrot.slane %v690_v62, %v11218_v52  ;;  %v705_v17 = vrot.slane %v691_v63, %v11218_v52 }
 0x281   :  { %v551_v11 = vpop.permute.xlu1 %550  ;;  %v11271_v13 = vpop.permute.xlu0 %1724  ;;  %v714_v5 = vrot.slane %v706_v0, %v11218_v52  ;;  %v721_v19 = vrot.slane %v707_v1, %v11218_v52  ;;  %v11280_v26 = vrot.slane %v2334_v39, %v11218_v52  ;;  %v11283_v37 = vrot.slane %v9856_v61, %v11218_v52 }
 0x282   :  { %v11286_v40 = vrot.slane %v2350_v48, %v11218_v52  ;;  %v11291_v47 = vrot.slane %v9857_v6, %v11218_v52  ;;  %v622_v51 = vcombine.low %v11056_v7, %v575_v60  ;;  %v11295_v28 = vrot.slane %v2434_v49, %v11223_v56 }
 0x283   :  { %2944 = vrot.lane.b32.xlu1 %v11190_v35, %s10822_s29  ;;  %v722_v43 = vcombine.low %v698_v2, %v714_v5  ;;  %v723_v44 = vcombine.high %v698_v2, %v714_v5  ;;  %v738_v45 = vcombine.low %v705_v17, %v721_v19  ;;  %v739_v46 = vcombine.high %v705_v17, %v721_v19 }
 0x284   :  { %v11298_v29 = vrot.slane %v2450_v4, %v11223_v56  ;;  %v2366_v48 = vcombine.low %v11280_v26, %v11283_v37  ;;  %v623_v62 = vcombine.high %v11056_v7, %v575_v60  ;;  %v630_v17 = vrot.slane %v622_v51, %v11218_v52 }
 0x285   :  { %v599_v38 = vpop.permute.xlu1 %598  ;;  %v1773_v57 = vpop.permute.xlu0 %1772  ;;  %v730_v58 = vrot.slane %v722_v43, %v11223_v56  ;;  %v737_v59 = vrot.slane %v723_v44, %v11223_v56  ;;  %v746_v39 = vrot.slane %v738_v45, %v11223_v56  ;;  %v753_v61 = vrot.slane %v739_v46, %v11223_v56 }
 0x286   :  { %v2466_v63 = vcombine.low %v11295_v28, %v11298_v29  ;;  %v638_v0 = vcombine.low %v551_v11, %v599_v38  ;;  %v639_v5 = vcombine.high %v551_v11, %v599_v38  ;;  %v2382_v43 = vcombine.low %v11286_v40, %v11291_v47 }
 0x287   :  { %2894 = vrot.lane.b32.xlu1 %v11196_v36, %s10821_s27  ;;  %v1234_v1 = vcombine.low %v730_v58, %v737_v59  ;;  %v9842_v49 = vcombine.high %v730_v58, %v737_v59  ;;  %v1250_v4 = vcombine.low %v746_v39, %v753_v61  ;;  %v9843_v6 = vcombine.high %v746_v39, %v753_v61 }
 0x288   :  { %10302 = vmatpush3.xpose.msk.msra.mxu0 %vm4051_vm2, %v2466_v63  ;;  %v646_v7 = vrot.slane %v638_v0, %v11218_v52  ;;  %v2010_v46 = vcombine.low %v11271_v13, %v1773_v57  ;;  %v637_v11 = vrot.slane %v623_v62, %v11218_v52  ;;  %v653_v51 = vrot.slane %v639_v5, %v11218_v52 }
 0x289   :  { %v1749_v60 = vpop.permute.xlu1 %1748  ;;  %v11316_v19 = vpop.permute.xlu0 %1722  ;;  %v11321_v44 = vrot.slane %v1234_v1, %v11218_v52  ;;  %v11324_v45 = vrot.slane %v9842_v49, %v11218_v52  ;;  %10311 = vmatprep.subr.mxu0 %v13412_v8  ;;  %v11335_v39 = vrot.slane %v1250_v4, %v11218_v52  ;;  %v11338_v61 = vrot.slane %v9843_v6, %v11218_v52 }
 0x28a   :  { %v654_v38 = vcombine.low %v630_v17, %v646_v7  ;;  %v655_v58 = vcombine.high %v630_v17, %v646_v7  ;;  %v2011_v63 = vcombine.high %v11271_v13, %v1773_v57  ;;  %v670_v1 = vcombine.low %v637_v11, %v653_v51 }
 0x28b   :  { %2942 = vrot.lane.b32.xlu1 %v11196_v36, %s10822_s29  ;;  %v671_v49 = vcombine.high %v637_v11, %v653_v51  ;;  %v1266_v7 = vcombine.low %v11321_v44, %v11324_v45  ;;  %v2018_v41 = vrot.slane %v2010_v46, %v11218_v52  ;;  %v11349_v6 = vrot.slane %v2366_v48, %v11223_v56 }
 0x28c   :  { %v662_v62 = vrot.slane %v654_v38, %v11223_v56  ;;  %v669_v0 = vrot.slane %v655_v58, %v11223_v56  ;;  %v678_v13 = vrot.slane %v670_v1, %v11223_v56  ;;  %v1282_v11 = vcombine.low %v11335_v39, %v11338_v61 }
 0x28d   :  { %v1747_v17 = vpop.permute.xlu1 %1746  ;;  %v1771_v5 = vpop.permute.xlu0 %1770  ;;  %v685_v57 = vrot.slane %v671_v49, %v11223_v56  ;;  %v11358_v51 = vrot.slane %v2382_v43, %v11223_v56  ;;  %v1994_v46 = vcombine.low %v11064_v9, %v1749_v60  ;;  %v1995_v48 = vcombine.high %v11064_v9, %v1749_v60 }
 0x28e   :  { %v1166_v38 = vcombine.low %v662_v62, %v669_v0  ;;  %v9840_v58 = vcombine.high %v662_v62, %v669_v0  ;;  %v2025_v2 = vrot.slane %v2011_v63, %v11218_v52  ;;  %v11378_v60 = vrot.slane %v1266_v7, %v11223_v56 }
 0x28f   :  { %2898 = vrot.lane.b32.xlu1 %v11211_v50, %s10821_s27  ;;  %v1182_v62 = vcombine.low %v678_v13, %v685_v57  ;;  %v9841_v0 = vcombine.high %v678_v13, %v685_v57  ;;  %v2398_v43 = vcombine.low %v11349_v6, %v11358_v51  ;;  %v2002_v4 = vrot.slane %v1994_v46, %v11218_v52 }
 0x290   :  { %v11363_v59 = vrot.slane %v1166_v38, %v11218_v52  ;;  %v11366_v1 = vrot.slane %v9840_v58, %v11218_v52  ;;  %v2009_v24 = vrot.slane %v1995_v48, %v11218_v52  ;;  %v1926_v13 = vcombine.low %v11074_v10, %v1747_v17 }
 0x291   :  { %v11368_v49 = vpop.permute.xlu1 %556  ;;  %v11375_v9 = vpop.permute.xlu0 %580  ;;  %v1927_v57 = vcombine.high %v11074_v10, %v1747_v17  ;;  %10282 = vmatpush3.xpose.msk.msra.mxu1 %vm4051_vm2, %v2398_v43  ;;  %v2026_v63 = vcombine.low %v2002_v4, %v2018_v41  ;;  %v2027_v58 = vcombine.high %v2002_v4, %v2018_v41  ;;  %v11386_v48 = vrot.slane %v1282_v11, %v11223_v56 }
 0x292   :  { %v2042_v3 = vcombine.low %v2009_v24, %v2025_v2  ;;  %v2043_v46 = vcombine.high %v2009_v24, %v2025_v2  ;;  %v11389_v8 = vrot.slane %v1182_v62, %v11218_v52  ;;  %v11392_v7 = vrot.slane %v9841_v0, %v11218_v52 }
 0x293   :  { %v1198_v38 = vcombine.low %v11363_v59, %v11366_v1  ;;  %v13452_v10 = vmov 0.0   ;;  %v2034_v41 = vrot.slane %v2026_v63, %v11223_v56  ;;  %v2041_v24 = vrot.slane %v2027_v58, %v11223_v56 }
 0x294   :  { %10286 = vmatprep.subr.mxu1 %v13452_v10  ;;  %v2050_v2 = vrot.slane %v2042_v3, %v11223_v56  ;;  %v2057_v17 = vrot.slane %v2043_v46, %v11223_v56  ;;  %v1934_v4 = vrot.slane %v1926_v13, %v11218_v52  ;;  %v1941_v11 = vrot.slane %v1927_v57, %v11218_v52 }
 0x295   :  { %v11396_v42 = vpop.permute.xlu1 %604  ;;  %v1942_v62 = vcombine.low %v11316_v19, %v1771_v5  ;;  %v1943_v0 = vcombine.high %v11316_v19, %v1771_v5  ;;  %v2538_v43 = vcombine.low %v2034_v41, %v2041_v24  ;;  %v9862_v50 = vcombine.high %v2034_v41, %v2041_v24  ;;  %v11407_v33 = vpop.permute.xlu0 %578 }
 0x296   :  { %v2554_v20 = vcombine.low %v2050_v2, %v2057_v17  ;;  %v9863_v35 = vcombine.high %v2050_v2, %v2057_v17  ;;  %v1298_v13 = vcombine.low %v11378_v60, %v11386_v48  ;;  %v11418_v19 = vrot.slane %v1198_v38, %v11223_v56 }
 0x297   :  { %v1950_v3 = vrot.slane %v1942_v62, %v11218_v52  ;;  %v1957_v58 = vrot.slane %v1943_v0, %v11218_v52  ;;  %v1214_v5 = vcombine.low %v11389_v8, %v11392_v7  ;;  %v13453_v41 = vcombine.high %v11246_v21, %v11249_v53 }
 0x298   :  { %10304 = vmatmul.mubr.msk.f32.vlgmr.msra.gmra.mxu0 %vm4051_vm2, %v1298_v13  ;;  %v11432_v38 = vrot.slane %v2538_v43, %v11218_v52  ;;  %v11435_v63 = vrot.slane %v9862_v50, %v11218_v52  ;;  %v11438_v46 = vrot.slane %v2554_v20, %v11218_v52  ;;  %v11441_v36 = vrot.slane %v9863_v35, %v11218_v52 }
 0x299   :  { %v11415_v57 = vpop.permute.xlu1 %554  ;;  %v11428_v24 = vrot.slane %v13453_v41, %v11223_v56  ;;  %v1958_v2 = vcombine.low %v1934_v4, %v1950_v3  ;;  %v1959_v17 = vcombine.high %v1934_v4, %v1950_v3  ;;  %v1974_v62 = vcombine.low %v1941_v11, %v1957_v58  ;;  %10313 = vmatprep.mubr.msk.f32.mxu0 %vm10824_vm1, %v13452_v10  ;;  %v11465_v41 = vpop.permute.xlu0 %1728 }
 0x29a   :  { %v1975_v0 = vcombine.high %v1941_v11, %v1957_v58  ;;  %v13454_v20 = vcombine.high %v11252_v54, %v11255_v55  ;;  %v826_v35 = vcombine.low %v11089_v12, %v11375_v9  ;;  %v827_v3 = vcombine.high %v11089_v12, %v11375_v9 }
 0x29b   :  { %v1966_v21 = vrot.slane %v1958_v2, %v11223_v56  ;;  %v1973_v53 = vrot.slane %v1959_v17, %v11223_v56  ;;  %v1982_v4 = vrot.slane %v1974_v62, %v11223_v56  ;;  %v13455_v58 = vcombine.high %v11321_v44, %v11324_v45 }
 0x29c   :  { %v1989_v11 = vrot.slane %v1975_v0, %v11223_v56  ;;  %v11453_v50 = vrot.slane %v13454_v20, %v11223_v56  ;;  %v1222_v55 = vrot.slane %v1214_v5, %v11223_v56  ;;  %v13456_v44 = vcombine.high %v11335_v39, %v11338_v61 }
 0x29d   :  { %v603_v43 = vpop.permute.xlu1 %602  ;;  %v11463_v13 = vrot.slane %v13455_v58, %v11223_v56  ;;  %v2470_v2 = vcombine.low %v1966_v21, %v1973_v53  ;;  %v9860_v17 = vcombine.high %v1966_v21, %v1973_v53  ;;  %v834_v5 = vrot.slane %v826_v35, %v11218_v52 }
 0x29e   :  { %v2486_v62 = vcombine.low %v1982_v4, %v1989_v11  ;;  %v9861_v54 = vcombine.high %v1982_v4, %v1989_v11  ;;  %v2468_v12 = vcombine.low %v11428_v24, %v11453_v50  ;;  %v11476_v45 = vrot.slane %v13456_v44, %v11223_v56  ;;  %v11513_v44 = vpop.permute.xlu0 %1776 }
 0x29f   :  { %v841_v53 = vrot.slane %v827_v3, %v11218_v52  ;;  %v11487_v11 = vrot.slane %v2470_v2, %v11218_v52  ;;  %v842_v39 = vcombine.low %v11368_v49, %v11396_v42  ;;  %v843_v61 = vcombine.high %v11368_v49, %v11396_v42 }
 0x2a0   :  { %10312 = vmatpush3.xpose.msk.msra.mxu0 %vm4051_vm2, %v2468_v12  ;;  %v758_v20 = vcombine.low %v11096_v14, %v11407_v33  ;;  %v11497_v35 = vrot.slane %v9860_v17, %v11218_v52  ;;  %v11500_v3 = vrot.slane %v2486_v62, %v11218_v52  ;;  %v11503_v58 = vrot.slane %v9861_v54, %v11218_v52 }
 0x2a1   :  { %v11484_v4 = vpop.permute.xlu1 %1752  ;;  %v1300_v2 = vcombine.low %v11463_v13, %v11476_v45  ;;  %10321 = vmatprep.subr.mxu0 %v13452_v10  ;;  %v850_v12 = vrot.slane %v842_v39, %v11218_v52  ;;  %v857_v42 = vrot.slane %v843_v61, %v11218_v52  ;;  %v759_v49 = vcombine.high %v11096_v14, %v11407_v33 }
 0x2a2   :  { %v766_v17 = vrot.slane %v758_v20, %v11218_v52  ;;  %v1230_v62 = vcombine.low %v11418_v19, %v1222_v55  ;;  %v2399_v54 = vcombine.high %v11349_v6, %v11358_v51  ;;  %v1231_v9 = vcombine.high %v11418_v19, %v1222_v55 }
 0x2a3   :  { %10314 = vmatmul.mubr.msk.f32.vlgmr.msra.gmra.mxu0 %vm4051_vm2, %v1300_v2  ;;  %v13457_v39 = vcombine.high %v11280_v26, %v11283_v37  ;;  %v858_v33 = vcombine.low %v834_v5, %v850_v12  ;;  %v859_v20 = vcombine.high %v834_v5, %v850_v12  ;;  %v874_v21 = vcombine.low %v841_v53, %v857_v42 }
 0x2a4   :  { %v875_v0 = vcombine.high %v841_v53, %v857_v42  ;;  %10323 = vmatprep.mubr.msk.f32.mxu0 %vm10824_vm1, %v13452_v10  ;;  %v773_v2 = vrot.slane %v759_v49, %v11218_v52  ;;  %10284 = vmatmul.mubr.msk.f32.vlgmr.msra.gmra.mxu1 %vm4051_vm2, %v1230_v62  ;;  %v13458_v6 = vcombine.high %v11286_v40, %v11291_v47  ;;  %v11554_v49 = vpop.permute.xlu0 %1726 }
 0x2a5   :  { %v11524_v61 = vrot.slane %v13457_v39, %v11223_v56  ;;  %v11526_v14 = vpop.permute.xlu1 %1750  ;;  %v774_v37 = vcombine.low %v11415_v57, %v603_v43  ;;  %v775_v51 = vcombine.high %v11415_v57, %v603_v43  ;;  %v866_v19 = vrot.slane %v858_v33, %v11223_v56  ;;  %10287 = vmatpush3.xpose.msk.msra.mxu1 %vm4051_vm2, %v2399_v54 }
 0x2a6   :  { %v11536_v26 = vrot.slane %v13458_v6, %v11223_v56  ;;  %v873_v55 = vrot.slane %v859_v20, %v11223_v56  ;;  %v882_v5 = vrot.slane %v874_v21, %v11223_v56  ;;  %v889_v53 = vrot.slane %v875_v0, %v11223_v56  ;;  %10288 = vmatprep.mubr.msk.f32.mxu1 %vm10824_vm1, %v13452_v10 }
 0x2a7   :  { %10291 = vmatprep.subr.mxu1 %v13452_v10  ;;  %v782_v47 = vrot.slane %v774_v37, %v11218_v52  ;;  %v789_v57 = vrot.slane %v775_v51, %v11218_v52 }
 0x2a8   :  { %v2400_v40 = vcombine.low %v11524_v61, %v11536_v26  ;;  %v1370_v12 = vcombine.low %v866_v19, %v873_v55  ;;  %v9846_v21 = vcombine.high %v866_v19, %v873_v55  ;;  %v1386_v42 = vcombine.low %v882_v5, %v889_v53  ;;  %10289 = vmatmul.mubr.msk.f32.vlgmr.msra.gmra.mxu1 %vm4051_vm2, %v1231_v9 }
 0x2a9   :  { %v11552_v43 = vpop.permute.xlu1 %560  ;;  %v9847_v0 = vcombine.high %v882_v5, %v889_v53  ;;  %v790_v62 = vcombine.low %v766_v17, %v782_v47  ;;  %v791_v54 = vcombine.high %v766_v17, %v782_v47  ;;  %v806_v39 = vcombine.low %v773_v2, %v789_v57  ;;  %10293 = vmatprep.mubr.msk.f32.mxu1 %vm10824_vm1, %v13452_v10  ;;  %v1775_v53 = vpop.permute.xlu0 %1774 }
 0x2aa   :  { %v807_v33 = vcombine.high %v773_v2, %v789_v57  ;;  %v11558_v20 = vrot.slane %v1370_v12, %v11218_v52  ;;  %v11561_v6 = vrot.slane %v9846_v21, %v11218_v52  ;;  %v11564_v37 = vrot.slane %v1386_v42, %v11218_v52  ;;  %10292 = vmatpush3.xpose.msk.msra.mxu1 %vm4051_vm2, %v2400_v40 }
 0x2ab   :  { %v11567_v51 = vrot.slane %v9847_v0, %v11218_v52  ;;  %v798_v9 = vrot.slane %v790_v62, %v11223_v56  ;;  %v805_v17 = vrot.slane %v791_v54, %v11223_v56  ;;  %v814_v2 = vrot.slane %v806_v39, %v11223_v56  ;;  %10296 = vmatprep.subr.mxu1 %v13452_v10 }
 0x2ac   :  { %v821_v19 = vrot.slane %v807_v33, %v11223_v56  ;;  %v2502_v5 = vcombine.low %v11487_v11, %v11497_v35  ;;  %v2518_v40 = vcombine.low %v11500_v3, %v11503_v58  ;;  %v2146_v0 = vcombine.low %v11465_v41, %v11513_v44 }
 0x2ad   :  { %v11585_v47 = vpop.permute.xlu1 %608  ;;  %v1302_v57 = vcombine.low %v798_v9, %v805_v17  ;;  %v9844_v12 = vcombine.high %v798_v9, %v805_v17  ;;  %v2147_v62 = vcombine.high %v11465_v41, %v11513_v44  ;;  %v13459_v54 = vcombine.high %v11363_v59, %v11366_v1 }
 0x2ae   :  { %v1318_v21 = vcombine.low %v814_v2, %v821_v19  ;;  %v9845_v42 = vcombine.high %v814_v2, %v821_v19  ;;  %v13460_v33 = vcombine.high %v11389_v8, %v11392_v7  ;;  %v2519_v9 = vcombine.high %v11500_v3, %v11503_v58 }
 0x2af   :  { %v1213_v39 = vrot.slane %v13459_v54, %v11223_v56  ;;  %v1402_v17 = vcombine.low %v11558_v20, %v11561_v6  ;;  %v1418_v44 = vcombine.low %v11564_v37, %v11567_v51  ;;  %v11608_v59 = vrot.slane %v1302_v57, %v11218_v52 }
 0x2b0   :  { %v1229_v55 = vrot.slane %v13460_v33, %v11223_v56  ;;  %v11611_v1 = vrot.slane %v9844_v12, %v11218_v52  ;;  %v11614_v8 = vrot.slane %v1318_v21, %v11218_v52  ;;  %v11617_v2 = vrot.slane %v9845_v42, %v11218_v52 }
 0x2b1   :  { %v2154_v19 = vrot.slane %v2146_v0, %v11218_v52  ;;  %v2161_v54 = vrot.slane %v2147_v62, %v11218_v52  ;;  %v2401_v33 = vcombine.high %v11524_v61, %v11536_v26  ;;  %v11625_v57 = vrot.slane %v2502_v5, %v11223_v56  ;;  %v11634_v0 = vpop.permute.xlu1 %558 }
 0x2b2   :  { %v1232_v7 = vcombine.low %v1213_v39, %v1229_v55  ;;  %v11628_v12 = vrot.slane %v2518_v40, %v11223_v56  ;;  %v2130_v21 = vcombine.low %v11102_v15, %v11484_v4  ;;  %v2131_v42 = vcombine.high %v11102_v15, %v11484_v4 }
 0x2b3   :  { %v1233_v61 = vcombine.high %v1213_v39, %v1229_v55  ;;  %v2467_v26 = vcombine.high %v11295_v28, %v11298_v29  ;;  %v2062_v5 = vcombine.low %v11112_v16, %v11526_v14  ;;  %v2063_v4 = vcombine.high %v11112_v16, %v11526_v14 }
 0x2b4   :  { %10294 = vmatmul.mubr.msk.f32.vlgmr.msra.gmra.mxu1 %vm4051_vm2, %v1232_v7  ;;  %v2534_v40 = vcombine.low %v11625_v57, %v11628_v12  ;;  %v2138_v62 = vrot.slane %v2130_v21, %v11218_v52  ;;  %v2145_v15 = vrot.slane %v2131_v42, %v11218_v52  ;;  %v11650_v7 = vpop.permute.xlu0 %584  ;;  %v2078_v28 = vcombine.low %v11554_v49, %v1775_v53 }
 0x2b5   :  { %10297 = vmatpush3.xpose.msk.msra.mxu1 %vm4051_vm2, %v2401_v33  ;;  %10298 = vmatprep.mubr.msk.f32.mxu1 %vm10824_vm1, %v13452_v10  ;;  %v2070_v55 = vrot.slane %v2062_v5, %v11218_v52  ;;  %v2079_v29 = vcombine.high %v11554_v49, %v1775_v53  ;;  %v1299_v39 = vcombine.high %v11378_v60, %v11386_v48 }
 0x2b6   :  { %10306 = vmatprep.subr.mxu1 %v13452_v10  ;;  %10322 = vmatpush3.xpose.msk.msra.mxu0 %vm4051_vm2, %v2534_v40  ;;  %v2162_v33 = vcombine.low %v2138_v62, %v2154_v19  ;;  %v2163_v21 = vcombine.high %v2138_v62, %v2154_v19  ;;  %v2178_v42 = vcombine.low %v2145_v15, %v2161_v54 }
 0x2b7   :  { %v2179_v41 = vcombine.high %v2145_v15, %v2161_v54  ;;  %v2077_v16 = vrot.slane %v2063_v4, %v11218_v52  ;;  %v2086_v14 = vrot.slane %v2078_v28, %v11218_v52  ;;  %v2093_v5 = vrot.slane %v2079_v29, %v11218_v52  ;;  %v11669_v54 = vpop.permute.xlu1 %606  ;;  %10331 = vmatprep.subr.mxu0 %v13452_v10 }
 0x2b8   :  { %10299 = vmatmul.mubr.msk.f32.vlgmr.msra.gmra.mxu1 %vm4051_vm2, %v1233_v61  ;;  %v2469_v49 = vcombine.high %v11428_v24, %v11453_v50  ;;  %v2170_v53 = vrot.slane %v2162_v33, %v11223_v56  ;;  %v2177_v60 = vrot.slane %v2163_v21, %v11223_v56  ;;  %v2186_v48 = vrot.slane %v2178_v42, %v11223_v56  ;;  %v11674_v29 = vpop.permute.xlu0 %582 }
 0x2b9   :  { %v2193_v19 = vrot.slane %v2179_v41, %v11223_v56  ;;  %10307 = vmatpush3.xpose.msk.msra.mxu1 %vm4051_vm2, %v2467_v26  ;;  %v2094_v61 = vcombine.low %v2070_v55, %v2086_v14  ;;  %v2095_v40 = vcombine.high %v2070_v55, %v2086_v14  ;;  %v2110_v62 = vcombine.low %v2077_v16, %v2093_v5 }
 0x2ba   :  { %v2111_v15 = vcombine.high %v2077_v16, %v2093_v5  ;;  %10308 = vmatprep.mubr.msk.f32.mxu1 %vm10824_vm1, %v13452_v10  ;;  %v2674_v24 = vcombine.low %v2170_v53, %v2177_v60  ;;  %v9866_v50 = vcombine.high %v2170_v53, %v2177_v60  ;;  %10316 = vmatprep.subr.mxu1 %v13452_v10 }
 0x2bb   :  { %v2690_v4 = vcombine.low %v2186_v48, %v2193_v19  ;;  %v9867_v28 = vcombine.high %v2186_v48, %v2193_v19  ;;  %v2102_v41 = vrot.slane %v2094_v61, %v11223_v56  ;;  %v2109_v26 = vrot.slane %v2095_v40, %v11223_v56 }
 0x2bc   :  { %v2118_v33 = vrot.slane %v2110_v62, %v11223_v56  ;;  %v2125_v55 = vrot.slane %v2111_v15, %v11223_v56  ;;  %10309 = vmatmul.mubr.msk.f32.vlgmr.msra.gmra.mxu1 %vm4051_vm2, %v1299_v39  ;;  %v1419_v21 = vcombine.high %v11564_v37, %v11567_v51  ;;  %v11684_v42 = vrot.slane %v2674_v24, %v11218_v52 }
 0x2bd   :  { %v11687_v16 = vrot.slane %v9866_v50, %v11218_v52  ;;  %v11690_v14 = vrot.slane %v2690_v4, %v11218_v52  ;;  %10317 = vmatpush3.xpose.msk.msra.mxu1 %vm4051_vm2, %v2469_v49  ;;  %v11694_v5 = vrot.slane %v9867_v28, %v11218_v52  ;;  %v2606_v53 = vcombine.low %v2102_v41, %v2109_v26  ;;  %v11705_v49 = vpop.permute.xlu1 %1756  ;;  %v11726_v4 = vpop.permute.xlu0 %1732 }
 0x2be   :  { %v9864_v60 = vcombine.high %v2102_v41, %v2109_v26  ;;  %v2622_v39 = vcombine.low %v2118_v33, %v2125_v55  ;;  %10318 = vmatprep.mubr.msk.f32.mxu1 %vm10824_vm1, %v13452_v10  ;;  %v1334_v48 = vcombine.low %v11608_v59, %v11611_v1  ;;  %v1335_v19 = vcombine.high %v11608_v59, %v11611_v1 }
 0x2bf   :  { %v1350_v61 = vcombine.low %v11614_v8, %v11617_v2  ;;  %v9865_v40 = vcombine.high %v2118_v33, %v2125_v55  ;;  %10326 = vmatprep.subr.mxu1 %v13452_v10  ;;  %v1351_v62 = vcombine.high %v11614_v8, %v11617_v2  ;;  %v2706_v15 = vcombine.low %v11684_v42, %v11687_v16 }
 0x2c0   :  { %v11712_v24 = vrot.slane %v2606_v53, %v11218_v52  ;;  %v11715_v50 = vrot.slane %v9864_v60, %v11218_v52  ;;  %v962_v1 = vcombine.low %v11123_v18, %v11650_v7  ;;  %v963_v8 = vcombine.high %v11123_v18, %v11650_v7 }
 0x2c1   :  { %v1301_v2 = vcombine.high %v11463_v13, %v11476_v45  ;;  %v11733_v26 = vrot.slane %v2622_v39, %v11218_v52  ;;  %v2535_v33 = vcombine.high %v11625_v57, %v11628_v12  ;;  %v11738_v55 = vrot.slane %v9865_v40, %v11218_v52  ;;  %v11761_v40 = vpop.permute.xlu1 %1754 }
 0x2c2   :  { %v2638_v18 = vcombine.low %v11712_v24, %v11715_v50  ;;  %v978_v13 = vcombine.low %v11552_v43, %v11585_v47  ;;  %v979_v45 = vcombine.high %v11552_v43, %v11585_v47  ;;  %v970_v7 = vrot.slane %v962_v1, %v11218_v52 }
 0x2c3   :  { %10319 = vmatmul.mubr.msk.f32.vlgmr.msra.gmra.mxu1 %vm4051_vm2, %v1301_v2  ;;  %v977_v53 = vrot.slane %v963_v8, %v11218_v52  ;;  %v1342_v57 = vrot.slane %v1334_v48, %v11223_v56  ;;  %v1358_v39 = vrot.slane %v1350_v61, %v11223_v56  ;;  %v13461_v43 = vcombine.high %v11487_v11, %v11497_v35  ;;  %v11772_v35 = vpop.permute.xlu0 %1730 }
 0x2c4   :  { %10327 = vmatpush3.xpose.msk.msra.mxu1 %vm4051_vm2, %v2535_v33  ;;  %10328 = vmatprep.mubr.msk.f32.mxu1 %vm10824_vm1, %v13452_v10  ;;  %v986_v12 = vrot.slane %v978_v13, %v11218_v52  ;;  %v993_v60 = vrot.slane %v979_v45, %v11218_v52  ;;  %v894_v1 = vcombine.low %v11130_v22, %v11674_v29 }
 0x2c5   :  { %10336 = vmatprep.subr.mxu1 %v13452_v10  ;;  %v2517_v47 = vrot.slane %v13461_v43, %v11223_v56  ;;  %v895_v48 = vcombine.high %v11130_v22, %v11674_v29  ;;  %v2533_v8 = vrot.slane %v2519_v9, %v11223_v56  ;;  %v1349_v61 = vrot.slane %v1335_v19, %v11223_v56 }
 0x2c6   :  { %v994_v2 = vcombine.low %v970_v7, %v986_v12  ;;  %v995_v33 = vcombine.high %v970_v7, %v986_v12  ;;  %v1010_v13 = vcombine.low %v977_v53, %v993_v60  ;;  %v1011_v11 = vcombine.high %v977_v53, %v993_v60 }
 0x2c7   :  { %v1366_v45 = vcombine.low %v1342_v57, %v1358_v39  ;;  %v1367_v43 = vcombine.high %v1342_v57, %v1358_v39  ;;  %v2536_v41 = vcombine.low %v2517_v47, %v2533_v8  ;;  %v2537_v59 = vcombine.high %v2517_v47, %v2533_v8  ;;  %v11790_v47 = vpop.permute.xlu1 %562 }
 0x2c8   :  { %v1002_v28 = vrot.slane %v994_v2, %v11223_v56  ;;  %v1009_v22 = vrot.slane %v995_v33, %v11223_v56  ;;  %v1018_v29 = vrot.slane %v1010_v13, %v11223_v56  ;;  %v1025_v3 = vrot.slane %v1011_v11, %v11223_v56  ;;  %v11803_v11 = vpop.permute.xlu0 %1778 }
 0x2c9   :  { %10324 = vmatmul.mubr.msk.f32.vlgmr.msra.gmra.mxu0 %vm4051_vm2, %v1366_v45  ;;  %10329 = vmatmul.mubr.msk.f32.vlgmr.msra.gmra.mxu1 %vm4051_vm2, %v1367_v43  ;;  %v1365_v58 = vrot.slane %v1351_v62, %v11223_v56  ;;  %v13462_v9 = vcombine.low %v11432_v38, %v11435_v63  ;;  %v13463_v7 = vcombine.low %v11438_v46, %v11441_v36 }
 0x2ca   :  { %v1506_v57 = vcombine.low %v1002_v28, %v1009_v22  ;;  %v9850_v12 = vcombine.high %v1002_v28, %v1009_v22  ;;  %v1522_v60 = vcombine.low %v1018_v29, %v1025_v3  ;;  %v9851_v39 = vcombine.high %v1018_v29, %v1025_v3  ;;  %10332 = vmatpush3.xpose.msk.msra.mxu0 %vm4051_vm2, %v2536_v41 }
 0x2cb   :  { %v2578_v19 = vrot.slane %v13462_v9, %v11223_v56  ;;  %v2594_v53 = vrot.slane %v13463_v7, %v11223_v56  ;;  %v2639_v62 = vcombine.high %v11712_v24, %v11715_v50  ;;  %v2654_v8 = vcombine.low %v11733_v26, %v11738_v55  ;;  %10337 = vmatpush3.xpose.msk.msra.mxu1 %vm4051_vm2, %v2537_v59  ;;  %v11847_v7 = vpop.permute.xlu1 %610 }
 0x2cc   :  { %v902_v2 = vrot.slane %v894_v1, %v11218_v52  ;;  %10333 = vmatprep.mubr.msk.f32.mxu0 %vm10824_vm1, %v13452_v10  ;;  %v909_v28 = vrot.slane %v895_v48, %v11218_v52  ;;  %10338 = vmatprep.mubr.msk.f32.mxu1 %vm10824_vm1, %v13452_v10  ;;  %v1368_v41 = vcombine.low %v1349_v61, %v1365_v58 }
 0x2cd   :  { %v1369_v33 = vcombine.high %v1349_v61, %v1365_v58  ;;  %v2602_v13 = vcombine.low %v2578_v19, %v2594_v53  ;;  %v11806_v45 = vrot.slane %v1506_v57, %v11218_v52  ;;  %10341 = vmatprep.subr.mxu0 %v13452_v10  ;;  %10346 = vmatprep.subr.mxu1 %v13452_v10 }
 0x2ce   :  { %v910_v59 = vcombine.low %v11634_v0, %v11669_v54  ;;  %v911_v1 = vcombine.high %v11634_v0, %v11669_v54  ;;  %v11815_v48 = vrot.slane %v9850_v12, %v11218_v52  ;;  %v11818_v61 = vrot.slane %v1522_v60, %v11218_v52  ;;  %10334 = vmatmul.mubr.msk.f32.vlgmr.msra.gmra.mxu0 %vm4051_vm2, %v1368_v41 }
 0x2cf   :  { %v11821_v43 = vrot.slane %v9851_v39, %v11218_v52  ;;  %v2603_v22 = vcombine.high %v2578_v19, %v2594_v53  ;;  %10339 = vmatmul.mubr.msk.f32.vlgmr.msra.gmra.mxu1 %vm4051_vm2, %v1369_v33  ;;  %10342 = vmatpush3.xpose.msk.msra.mxu0 %vm4051_vm2, %v2602_v13  ;;  %v1410_v54 = vrot.slane %v1402_v17, %v11223_v56  ;;  %v11853_v39 = vpop.permute.xlu0 %586 }
 0x2d0   :  { %v918_v29 = vrot.slane %v910_v59, %v11218_v52  ;;  %v925_v0 = vrot.slane %v911_v1, %v11218_v52  ;;  %10343 = vmatprep.mubr.msk.f32.mxu0 %vm10824_vm1, %v13452_v10  ;;  %v1426_v3 = vrot.slane %v1418_v44, %v11223_v56  ;;  %v13464_v58 = vcombine.high %v11432_v38, %v11435_v63 }
 0x2d1   :  { %10347 = vmatpush3.xpose.msk.msra.mxu1 %vm4051_vm2, %v2603_v22  ;;  %v13465_v19 = vcombine.high %v11438_v46, %v11441_v36  ;;  %10348 = vmatprep.mubr.msk.f32.mxu1 %vm10824_vm1, %v13452_v10  ;;  %v2266_v33 = vcombine.low %v11136_v23, %v11705_v49  ;;  %v2267_v13 = vcombine.high %v11136_v23, %v11705_v49  ;;  %v11875_v49 = vpop.permute.xlu1 %564 }
 0x2d2   :  { %v2585_v9 = vrot.slane %v13464_v58, %v11223_v56  ;;  %v926_v53 = vcombine.low %v902_v2, %v918_v29  ;;  %v927_v57 = vcombine.high %v902_v2, %v918_v29  ;;  %v942_v12 = vcombine.low %v909_v28, %v925_v0  ;;  %10351 = vmatprep.subr.mxu0 %v13452_v10 }
 0x2d3   :  { %v2601_v17 = vrot.slane %v13465_v19, %v11223_v56  ;;  %v943_v60 = vcombine.high %v909_v28, %v925_v0  ;;  %10356 = vmatprep.subr.mxu1 %v13452_v10  ;;  %v1434_v63 = vcombine.low %v1410_v54, %v1426_v3  ;;  %v1435_v38 = vcombine.high %v1410_v54, %v1426_v3 }
 0x2d4   :  { %v934_v36 = vrot.slane %v926_v53, %v11223_v56  ;;  %v941_v46 = vrot.slane %v927_v57, %v11223_v56  ;;  %v950_v2 = vrot.slane %v942_v12, %v11223_v56  ;;  %v2655_v0 = vcombine.high %v11733_v26, %v11738_v55 }
 0x2d5   :  { %v2604_v44 = vcombine.low %v2585_v9, %v2601_v17  ;;  %v957_v28 = vrot.slane %v943_v60, %v11223_v56  ;;  %10344 = vmatmul.mubr.msk.f32.vlgmr.msra.gmra.mxu0 %vm4051_vm2, %v1434_v63  ;;  %10349 = vmatmul.mubr.msk.f32.vlgmr.msra.gmra.mxu1 %vm4051_vm2, %v1435_v38  ;;  %v2605_v41 = vcombine.high %v2585_v9, %v2601_v17  ;;  %v1781_v63 = vpop.permute.xlu0 %1780 }
 0x2d6   :  { %v1438_v59 = vcombine.low %v934_v36, %v941_v46  ;;  %v9848_v1 = vcombine.high %v934_v36, %v941_v46  ;;  %v1538_v54 = vcombine.low %v11806_v45, %v11815_v48  ;;  %v1539_v3 = vcombine.high %v11806_v45, %v11815_v48  ;;  %10353 = vmatprep.mubr.msk.f32.mxu0 %vm10824_vm1, %v13452_v10 }
 0x2d7   :  { %v1454_v22 = vcombine.low %v950_v2, %v957_v28  ;;  %v9849_v29 = vcombine.high %v950_v2, %v957_v28  ;;  %10352 = vmatpush3.xpose.msk.msra.mxu0 %vm4051_vm2, %v2604_v44  ;;  %10357 = vmatpush3.xpose.msk.msra.mxu1 %vm4051_vm2, %v2605_v41  ;;  %v2214_v23 = vcombine.low %v11772_v35, %v11803_v11 }
 0x2d8   :  { %v1554_v58 = vcombine.low %v11818_v61, %v11821_v43  ;;  %v11880_v9 = vrot.slane %v1438_v59, %v11218_v52  ;;  %v11883_v19 = vrot.slane %v9848_v1, %v11218_v52  ;;  %v2215_v17 = vcombine.high %v11772_v35, %v11803_v11  ;;  %10358 = vmatprep.mubr.msk.f32.mxu1 %vm10824_vm1, %v13452_v10 }
 0x2d9   :  { %v1555_v53 = vcombine.high %v11818_v61, %v11821_v43  ;;  %v2274_v57 = vrot.slane %v2266_v33, %v11218_v52  ;;  %10361 = vmatprep.subr.mxu0 %v13452_v10  ;;  %v13466_v12 = vcombine.high %v11558_v20, %v11561_v6  ;;  %v11900_v35 = vrot.slane %v1454_v22, %v11218_v52  ;;  %v11932_v33 = vpop.permute.xlu1 %612 }
 0x2da   :  { %v11903_v11 = vrot.slane %v9849_v29, %v11218_v52  ;;  %v2281_v38 = vrot.slane %v2267_v13, %v11218_v52  ;;  %v2222_v44 = vrot.slane %v2214_v23, %v11218_v52  ;;  %10366 = vmatprep.subr.mxu1 %v13452_v10  ;;  %v1433_v36 = vrot.slane %v1419_v21, %v11223_v56 }
 0x2db   :  { %v1417_v60 = vrot.slane %v13466_v12, %v11223_v56  ;;  %v2646_v20 = vrot.slane %v2638_v18, %v11223_v56  ;;  %v2662_v6 = vrot.slane %v2654_v8, %v11223_v56  ;;  %v2198_v46 = vcombine.low %v11142_v25, %v11761_v40 }
 0x2dc   :  { %v1470_v2 = vcombine.low %v11880_v9, %v11883_v19  ;;  %v2229_v28 = vrot.slane %v2215_v17, %v11218_v52  ;;  %v2199_v37 = vcombine.high %v11142_v25, %v11761_v40  ;;  %v2282_v51 = vcombine.low %v11726_v4, %v1781_v63 }
 0x2dd   :  { %v1436_v21 = vcombine.low %v1417_v60, %v1433_v36  ;;  %v1437_v18 = vcombine.high %v1417_v60, %v1433_v36  ;;  %v1030_v41 = vcombine.low %v11153_v27, %v11853_v39  ;;  %v1031_v8 = vcombine.high %v11153_v27, %v11853_v39 }
 0x2de   :  { %v2670_v13 = vcombine.low %v2646_v20, %v2662_v6  ;;  %v2671_v59 = vcombine.high %v2646_v20, %v2662_v6  ;;  %v2206_v1 = vrot.slane %v2198_v46, %v11218_v52  ;;  %v2213_v22 = vrot.slane %v2199_v37, %v11218_v52  ;;  %v11958_v37 = vpop.permute.xlu1 %2912 }
 0x2df   :  { %10354 = vmatmul.mubr.msk.f32.vlgmr.msra.gmra.mxu0 %vm4051_vm2, %v1436_v21  ;;  %10359 = vmatmul.mubr.msk.f32.vlgmr.msra.gmra.mxu1 %vm4051_vm2, %v1437_v18  ;;  %v2283_v25 = vcombine.high %v11726_v4, %v1781_v63  ;;  %v2290_v40 = vrot.slane %v2282_v51, %v11218_v52  ;;  %v1046_v29 = vcombine.low %v11790_v47, %v11847_v7 }
 0x2e0   :  { %10362 = vmatpush3.xpose.msk.msra.mxu0 %vm4051_vm2, %v2670_v13  ;;  %10367 = vmatpush3.xpose.msk.msra.mxu1 %vm4051_vm2, %v2671_v59  ;;  %v2230_v27 = vcombine.low %v2206_v1, %v2222_v44  ;;  %v2231_v39 = vcombine.high %v2206_v1, %v2222_v44  ;;  %v2246_v23 = vcombine.low %v2213_v22, %v2229_v28 }
 0x2e1   :  { %v2247_v17 = vcombine.high %v2213_v22, %v2229_v28  ;;  %v2297_v12 = vrot.slane %v2283_v25, %v11218_v52  ;;  %v2298_v60 = vcombine.low %v2274_v57, %v2290_v40  ;;  %v2299_v36 = vcombine.high %v2274_v57, %v2290_v40  ;;  %10363 = vmatprep.mubr.msk.f32.mxu0 %vm10824_vm1, %v13452_v10 }
 0x2e2   :  { %v2238_v4 = vrot.slane %v2230_v27, %v11223_v56  ;;  %v2245_v63 = vrot.slane %v2231_v39, %v11223_v56  ;;  %v2254_v20 = vrot.slane %v2246_v23, %v11223_v56  ;;  %v1047_v6 = vcombine.high %v11790_v47, %v11847_v7  ;;  %10368 = vmatprep.mubr.msk.f32.mxu1 %vm10824_vm1, %v13452_v10 }
 0x2e3   :  { %v2261_v44 = vrot.slane %v2247_v17, %v11223_v56  ;;  %v2306_v46 = vrot.slane %v2298_v60, %v11223_v56  ;;  %v2313_v57 = vrot.slane %v2299_v36, %v11223_v56  ;;  %v2314_v28 = vcombine.low %v2281_v38, %v2297_v12  ;;  %10371 = vmatprep.subr.mxu0 %v13452_v10 }
 0x2e4   :  { %v2742_v51 = vcombine.low %v2238_v4, %v2245_v63  ;;  %v9868_v21 = vcombine.high %v2238_v4, %v2245_v63  ;;  %v2315_v18 = vcombine.high %v2281_v38, %v2297_v12  ;;  %v1054_v13 = vrot.slane %v1046_v29, %v11218_v52  ;;  %10376 = vmatprep.subr.mxu1 %v13452_v10 }
 0x2e5   :  { %v2758_v47 = vcombine.low %v2254_v20, %v2261_v44  ;;  %v9869_v7 = vcombine.high %v2254_v20, %v2261_v44  ;;  %v2322_v59 = vrot.slane %v2314_v28, %v11223_v56  ;;  %v2810_v1 = vcombine.low %v2306_v46, %v2313_v57 }
 0x2e6   :  { %v11964_v22 = vrot.slane %v2742_v51, %v11218_v52  ;;  %v11967_v25 = vrot.slane %v9868_v21, %v11218_v52  ;;  %v2329_v40 = vrot.slane %v2315_v18, %v11223_v56  ;;  %v9870_v27 = vcombine.high %v2306_v46, %v2313_v57  ;;  %v11988_v46 = vpop.permute.xlu1 %2936 }
 0x2e7   :  { %v11971_v38 = vrot.slane %v2758_v47, %v11218_v52  ;;  %v11974_v29 = vrot.slane %v9869_v7, %v11218_v52  ;;  %v1038_v39 = vrot.slane %v1030_v41, %v11218_v52  ;;  %v1061_v23 = vrot.slane %v1047_v6, %v11218_v52  ;;  %v589_v41 = vpop.permute.xlu0 %588 }
 0x2e8   :  { %v1471_v17 = vcombine.high %v11880_v9, %v11883_v19  ;;  %v1486_v12 = vcombine.low %v11900_v35, %v11903_v11  ;;  %v1487_v60 = vcombine.high %v11900_v35, %v11903_v11  ;;  %v2826_v36 = vcombine.low %v2322_v59, %v2329_v40 }
 0x2e9   :  { %v1045_v4 = vrot.slane %v1031_v8, %v11218_v52  ;;  %v11986_v63 = vrot.slane %v2810_v1, %v11218_v52  ;;  %v9871_v20 = vcombine.high %v2322_v59, %v2329_v40  ;;  %v1062_v44 = vcombine.low %v1038_v39, %v1054_v13 }
 0x2ea   :  { %v2774_v6 = vcombine.low %v11964_v22, %v11967_v25  ;;  %v2775_v57 = vcombine.high %v11964_v22, %v11967_v25  ;;  %v11995_v28 = vrot.slane %v9870_v27, %v11218_v52  ;;  %v1063_v35 = vcombine.high %v1038_v39, %v1054_v13  ;;  %v12028_v19 = vpop.permute.xlu1 %2886 }
 0x2eb   :  { %v2790_v11 = vcombine.low %v11971_v38, %v11974_v29  ;;  %v1070_v8 = vrot.slane %v1062_v44, %v11223_v56  ;;  %v1078_v51 = vcombine.low %v1045_v4, %v1061_v23  ;;  %v1079_v21 = vcombine.high %v1045_v4, %v1061_v23  ;;  %v12026_v9 = vpop.permute.xlu0 %2888 }
 0x2ec   :  { %v12001_v18 = vrot.slane %v2826_v36, %v11218_v52  ;;  %v12004_v47 = vrot.slane %v9871_v20, %v11218_v52  ;;  %v1077_v7 = vrot.slane %v1063_v35, %v11223_v56  ;;  %v1098_v59 = vcombine.low %v11164_v30, %v589_v41 }
 0x2ed   :  { %v1086_v1 = vrot.slane %v1078_v51, %v11223_v56  ;;  %v1093_v13 = vrot.slane %v1079_v21, %v11223_v56  ;;  %v1099_v40 = vcombine.high %v11164_v30, %v589_v41  ;;  %v1478_v27 = vrot.slane %v1470_v2, %v11223_v56 }
 0x2ee   :  { %v2791_v39 = vcombine.high %v11971_v38, %v11974_v29  ;;  %v2842_v23 = vcombine.low %v11986_v63, %v11995_v28  ;;  %v1574_v4 = vcombine.low %v1070_v8, %v1077_v7  ;;  %v9852_v20 = vcombine.high %v1070_v8, %v1077_v7 }
 0x2ef   :  { %v1590_v44 = vcombine.low %v1086_v1, %v1093_v13  ;;  %v1494_v35 = vrot.slane %v1486_v12, %v11223_v56  ;;  %v2653_v30 = vrot.slane %v2639_v62, %v11223_v56  ;;  %v1106_v8 = vrot.slane %v1098_v59, %v11218_v52 }
 0x2f0   :  { %v2669_v12 = vrot.slane %v2655_v0, %v11223_v56  ;;  %v1113_v24 = vrot.slane %v1099_v40, %v11218_v52  ;;  %v1485_v51 = vrot.slane %v1471_v17, %v11223_v56  ;;  %v12042_v21 = vrot.slane %v1574_v4, %v11218_v52 }
 0x2f1   :  { %v1502_v50 = vcombine.low %v1478_v27, %v1494_v35  ;;  %v1503_v62 = vcombine.high %v1478_v27, %v1494_v35  ;;  %v9853_v7 = vcombine.high %v1086_v1, %v1093_v13  ;;  %v12045_v41 = vrot.slane %v9852_v20, %v11218_v52  ;;  %v12073_v27 = vpop.permute.xlu1 %2934 }
 0x2f2   :  { %v2672_v36 = vcombine.low %v2653_v30, %v2669_v12  ;;  %v2673_v2 = vcombine.high %v2653_v30, %v2669_v12  ;;  %v12048_v59 = vrot.slane %v1590_v44, %v11218_v52  ;;  %v1501_v26 = vrot.slane %v1487_v60, %v11223_v56 }
 0x2f3   :  { %10364 = vmatmul.mubr.msk.f32.vlgmr.msra.gmra.mxu0 %vm4051_vm2, %v1502_v50  ;;  %10369 = vmatmul.mubr.msk.f32.vlgmr.msra.gmra.mxu1 %vm4051_vm2, %v1503_v62  ;;  %v2714_v55 = vrot.slane %v2706_v15, %v11223_v56  ;;  %v13467_v0 = vcombine.low %v11690_v14, %v11694_v5  ;;  %v1114_v1 = vcombine.low %v11875_v49, %v11932_v33  ;;  %v12071_v15 = vpop.permute.xlu0 %2910 }
 0x2f4   :  { %10372 = vmatpush3.xpose.msk.msra.mxu0 %vm4051_vm2, %v2672_v36  ;;  %10377 = vmatpush3.xpose.msk.msra.mxu1 %vm4051_vm2, %v2673_v2  ;;  %v1504_v60 = vcombine.low %v1485_v51, %v1501_v26  ;;  %v1505_v13 = vcombine.high %v1485_v51, %v1501_v26  ;;  %v1115_v40 = vcombine.high %v11875_v49, %v11932_v33 }
 0x2f5   :  { %v2730_v17 = vrot.slane %v13467_v0, %v11223_v56  ;;  %10373 = vmatprep.mubr.msk.f32.mxu0 %vm10824_vm1, %v13452_v10  ;;  %10378 = vmatprep.mubr.msk.f32.mxu1 %vm10824_vm1, %v13452_v10  ;;  %v1122_v20 = vrot.slane %v1114_v1, %v11218_v52  ;;  %v12079_v44 = vrot.slane %v9853_v7, %v11218_v52 }
 0x2f6   :  { %10381 = vmatprep.subr.mxu0 %v13452_v10  ;;  %10386 = vmatprep.subr.mxu1 %v13452_v10  ;;  %v1606_v35 = vcombine.low %v12042_v21, %v12045_v41  ;;  %v1129_v49 = vrot.slane %v1115_v40, %v11218_v52  ;;  %v1546_v2 = vrot.slane %v1538_v54, %v11223_v56 }
 0x2f7   :  { %v2738_v36 = vcombine.low %v2714_v55, %v2730_v17  ;;  %v2739_v4 = vcombine.high %v2714_v55, %v2730_v17  ;;  %10374 = vmatmul.mubr.msk.f32.vlgmr.msra.gmra.mxu0 %vm4051_vm2, %v1504_v60  ;;  %10379 = vmatmul.mubr.msk.f32.vlgmr.msra.gmra.mxu1 %vm4051_vm2, %v1505_v13  ;;  %v1130_v33 = vcombine.low %v1106_v8, %v1122_v20  ;;  %v12118_v60 = vpop.permute.xlu0 %2892  ;;  %v12120_v13 = vpop.permute.xlu1 %2916 }
 0x2f8   :  { %v1131_v30 = vcombine.high %v1106_v8, %v1122_v20  ;;  %v1607_v12 = vcombine.high %v12042_v21, %v12045_v41  ;;  %v1146_v50 = vcombine.low %v1113_v24, %v1129_v49  ;;  %v1147_v62 = vcombine.high %v1113_v24, %v1129_v49  ;;  %10383 = vmatprep.mubr.msk.f32.mxu0 %vm10824_vm1, %v13452_v10 }
 0x2f9   :  { %10382 = vmatpush3.xpose.msk.msra.mxu0 %vm4051_vm2, %v2738_v36  ;;  %10387 = vmatpush3.xpose.msk.msra.mxu1 %vm4051_vm2, %v2739_v4  ;;  %v2958_v51 = vcombine.low %v11172_v32, %v12071_v15  ;;  %v1138_v7 = vrot.slane %v1130_v33, %v11223_v56  ;;  %v1562_v54 = vrot.slane %v1554_v58, %v11223_v56 }
 0x2fa   :  { %v1145_v8 = vrot.slane %v1131_v30, %v11223_v56  ;;  %10388 = vmatprep.mubr.msk.f32.mxu1 %vm10824_vm1, %v13452_v10  ;;  %10391 = vmatprep.subr.mxu0 %v13452_v10  ;;  %v1154_v24 = vrot.slane %v1146_v50, %v11223_v56  ;;  %v1161_v26 = vrot.slane %v1147_v62, %v11223_v56 }
 0x2fb   :  { %10396 = vmatprep.subr.mxu1 %v13452_v10  ;;  %v13468_v55 = vcombine.high %v11684_v42, %v11687_v16  ;;  %v13469_v17 = vcombine.high %v11690_v14, %v11694_v5  ;;  %v1570_v36 = vcombine.low %v1546_v2, %v1562_v54  ;;  %v1571_v4 = vcombine.high %v1546_v2, %v1562_v54 }
 0x2fc   :  { %v1642_v58 = vcombine.low %v1138_v7, %v1145_v8  ;;  %v9854_v40 = vcombine.high %v1138_v7, %v1145_v8  ;;  %v1658_v20 = vcombine.low %v1154_v24, %v1161_v26  ;;  %v9855_v49 = vcombine.high %v1154_v24, %v1161_v26 }
 0x2fd   :  { %v2721_v0 = vrot.slane %v13468_v55, %v11223_v56  ;;  %v2737_v1 = vrot.slane %v13469_v17, %v11223_v56  ;;  %10384 = vmatmul.mubr.msk.f32.vlgmr.msra.gmra.mxu0 %vm4051_vm2, %v1570_v36  ;;  %10389 = vmatmul.mubr.msk.f32.vlgmr.msra.gmra.mxu1 %vm4051_vm2, %v1571_v4  ;;  %v3026_v14 = vcombine.low %v11166_v31, %v11958_v37 }
 0x2fe   :  { %v12123_v42 = vrot.slane %v1642_v58, %v11218_v52  ;;  %v12126_v16 = vrot.slane %v9854_v40, %v11218_v52  ;;  %v12133_v5 = vrot.slane %v1658_v20, %v11218_v52  ;;  %v12136_v2 = vrot.slane %v9855_v49, %v11218_v52  ;;  %10393 = vmatprep.mubr.msk.f32.mxu0 %vm10824_vm1, %v13452_v10 }
 0x2ff   :  { %v2740_v33 = vcombine.low %v2721_v0, %v2737_v1  ;;  %v2741_v30 = vcombine.high %v2721_v0, %v2737_v1  ;;  %v3027_v50 = vcombine.high %v11166_v31, %v11958_v37  ;;  %v1622_v62 = vcombine.low %v12048_v59, %v12079_v44  ;;  %10398 = vmatprep.mubr.msk.f32.mxu1 %vm10824_vm1, %v13452_v10 }
 0x300   :  { %v1623_v7 = vcombine.high %v12048_v59, %v12079_v44  ;;  %v2959_v8 = vcombine.high %v11172_v32, %v12071_v15  ;;  %v1674_v54 = vcombine.low %v12123_v42, %v12126_v16  ;;  %v12155_v31 = vrot.slane %v2958_v51, %v11218_v52  ;;  %v12160_v59 = vpop.permute.xlu0 %2914  ;;  %v12162_v44 = vpop.permute.xlu1 %2940 }
 0x301   :  { %10392 = vmatpush3.xpose.msk.msra.mxu0 %vm4051_vm2, %v2740_v33  ;;  %10397 = vmatpush3.xpose.msk.msra.mxu1 %vm4051_vm2, %v2741_v30  ;;  %v3034_v37 = vrot.slane %v3026_v14, %v11218_v52  ;;  %v1553_v24 = vrot.slane %v1539_v3, %v11223_v56  ;;  %v1569_v51 = vrot.slane %v1555_v53, %v11223_v56 }
 0x302   :  { %10401 = vmatprep.subr.mxu0 %v13452_v10  ;;  %10406 = vmatprep.subr.mxu1 %v13452_v10  ;;  %v2782_v26 = vrot.slane %v2774_v6, %v11223_v56  ;;  %v2798_v55 = vrot.slane %v2790_v11, %v11223_v56  ;;  %v1690_v0 = vcombine.low %v12133_v5, %v12136_v2 }
 0x303   :  { %v3041_v45 = vrot.slane %v3027_v50, %v11218_v52  ;;  %v3042_v48 = vcombine.low %v12026_v9, %v11988_v46  ;;  %v3043_v61 = vcombine.high %v12026_v9, %v11988_v46  ;;  %v1572_v43 = vcombine.low %v1553_v24, %v1569_v51 }
 0x304   :  { %v1573_v3 = vcombine.high %v1553_v24, %v1569_v51  ;;  %v3094_v53 = vcombine.low %v11184_v34, %v12160_v59  ;;  %v3095_v6 = vcombine.high %v11184_v34, %v12160_v59  ;;  %v2806_v11 = vcombine.low %v2782_v26, %v2798_v55  ;;  %v12206_v20 = vpop.permute.xlu1 %2890  ;;  %v12219_v30 = vpop.permute.xlu0 %2896 }
 0x305   :  { %v2807_v17 = vcombine.high %v2782_v26, %v2798_v55  ;;  %v3050_v1 = vrot.slane %v3042_v48, %v11218_v52  ;;  %v3057_v58 = vrot.slane %v3043_v61, %v11218_v52  ;;  %10394 = vmatmul.mubr.msk.f32.vlgmr.msra.gmra.mxu0 %vm4051_vm2, %v1572_v43  ;;  %v1614_v46 = vrot.slane %v1606_v35, %v11223_v56 }
 0x306   :  { %10399 = vmatmul.mubr.msk.f32.vlgmr.msra.gmra.mxu1 %vm4051_vm2, %v1573_v3  ;;  %v1630_v9 = vrot.slane %v1622_v62, %v11223_v56  ;;  %v2789_v34 = vrot.slane %v2775_v57, %v11223_v56  ;;  %10402 = vmatpush3.xpose.msk.msra.mxu0 %vm4051_vm2, %v2806_v11  ;;  %v2805_v50 = vrot.slane %v2791_v39, %v11223_v56 }
 0x307   :  { %10407 = vmatpush3.xpose.msk.msra.mxu1 %vm4051_vm2, %v2807_v17  ;;  %v3058_v40 = vcombine.low %v3034_v37, %v3050_v1  ;;  %v3059_v36 = vcombine.high %v3034_v37, %v3050_v1  ;;  %v3074_v4 = vcombine.low %v3041_v45, %v3057_v58  ;;  %v3075_v49 = vcombine.high %v3041_v45, %v3057_v58  ;;  %v13471_v58 = vld [vmem:[#allocation5_spill] sm:$0xff] }
 0x308   :  { %10403 = vmatprep.mubr.msk.f32.mxu0 %vm10824_vm1, %v13452_v10  ;;  %10408 = vmatprep.mubr.msk.f32.mxu1 %vm10824_vm1, %v13452_v10  ;;  %v1638_v35 = vcombine.low %v1614_v46, %v1630_v9  ;;  %v1639_v33 = vcombine.high %v1614_v46, %v1630_v9  ;;  %v1621_v62 = vrot.slane %v1607_v12, %v11223_v56  ;;  %v12254_v26 = vpop.permute.xlu1 %2938  ;;  %v2919_v43 = vpop.permute.xlu0 %2918 }
 0x309   :  { %v3066_v22 = vrot.slane %v3058_v40, %v11223_v56  ;;  %v3073_v25 = vrot.slane %v3059_v36, %v11223_v56  ;;  %v12215_v57 = vrot.slane %v3074_v4, %v11223_v56  ;;  %10411 = vmatprep.subr.mxu0 %v13452_v10  ;;  %10416 = vmatprep.subr.mxu1 %v13452_v10 }
 0x30a   :  { %v12222_v14 = vrot.slane %v3075_v49, %v11223_v56  ;;  %10404 = vmatmul.mubr.msk.f32.vlgmr.msra.gmra.mxu0 %vm4051_vm2, %v1638_v35  ;;  %10409 = vmatmul.mubr.msk.f32.vlgmr.msra.gmra.mxu1 %vm4051_vm2, %v1639_v33  ;;  %v1637_v24 = vrot.slane %v1623_v7, %v11223_v56  ;;  %v2808_v29 = vcombine.low %v2789_v34, %v2805_v50 }
 0x30b   :  { %v3570_v37 = vcombine.low %v3066_v22, %v3073_v25  ;;  %v9874_v59 = vcombine.high %v3066_v22, %v3073_v25  ;;  %10413 = vmatprep.mubr.msk.f32.mxu0 %vm10824_vm1, %v13452_v10  ;;  %10418 = vmatprep.mubr.msk.f32.mxu1 %vm10824_vm1, %v13452_v10  ;;  %v2809_v39 = vcombine.high %v2789_v34, %v2805_v50 }
 0x30c   :  { %v3586_v51 = vcombine.low %v12215_v57, %v12222_v14  ;;  %v9875_v38 = vcombine.high %v12215_v57, %v12222_v14  ;;  %v1675_v41 = vcombine.high %v12123_v42, %v12126_v16  ;;  %v1691_v21 = vcombine.high %v12133_v5, %v12136_v2  ;;  %10412 = vmatpush3.xpose.msk.msra.mxu0 %vm4051_vm2, %v2808_v29  ;;  %v12302_v34 = vpop.permute.xlu1 %2920 }
 0x30d   :  { %v2973_v12 = vrot.slane %v2959_v8, %v11218_v52  ;;  %v12252_v7 = vrot.slane %v3094_v53, %v11218_v52  ;;  %10417 = vmatpush3.xpose.msk.msra.mxu1 %vm4051_vm2, %v2809_v39  ;;  %v1640_v55 = vcombine.low %v1621_v62, %v1637_v24  ;;  %v1641_v45 = vcombine.high %v1621_v62, %v1637_v24  ;;  %v13474_v39 = vld [vmem:[#allocation3_spill] sm:$0xff] }
 0x30e   :  { %v2850_v48 = vrot.slane %v2842_v23, %v11223_v56  ;;  %10421 = vmatprep.subr.mxu0 %v13452_v10  ;;  %10426 = vmatprep.subr.mxu1 %v13452_v10  ;;  %v13470_v32 = vcombine.low %v12001_v18, %v12004_v47  ;;  %v2974_v8 = vcombine.low %v12028_v19, %v12073_v27 }
 0x30f   :  { %v2975_v61 = vcombine.high %v12028_v19, %v12073_v27  ;;  %v12273_v3 = vrot.slane %v3570_v37, %v11218_v52  ;;  %v12276_v23 = vrot.slane %v3095_v6, %v11218_v52  ;;  %v1682_v53 = vrot.slane %v1674_v54, %v11223_v56  ;;  %10414 = vmatmul.mubr.msk.f32.vlgmr.msra.gmra.mxu0 %vm4051_vm2, %v1640_v55 }
 0x310   :  { %v2866_v15 = vrot.slane %v13470_v32, %v11223_v56  ;;  %v1698_v11 = vrot.slane %v1690_v0, %v11223_v56  ;;  %10419 = vmatmul.mubr.msk.f32.vlgmr.msra.gmra.mxu1 %vm4051_vm2, %v1641_v45  ;;  %v2982_v17 = vrot.slane %v2974_v8, %v11218_v52  ;;  %v12290_v6 = vrot.slane %v9874_v59, %v11218_v52 }
 0x311   :  { %v2989_v1 = vrot.slane %v2975_v61, %v11218_v52  ;;  %v3230_v54 = vcombine.low %v13471_v58, %v2919_v43  ;;  %10423 = vmatprep.mubr.msk.f32.mxu0 %vm10824_vm1, %v13452_v10  ;;  %10428 = vmatprep.mubr.msk.f32.mxu1 %vm10824_vm1, %v13452_v10  ;;  %v13472_v33 = vcombine.high %v11986_v63, %v11995_v28 }
 0x312   :  { %v2874_v19 = vcombine.low %v2850_v48, %v2866_v15  ;;  %v2875_v27 = vcombine.high %v2850_v48, %v2866_v15  ;;  %v2990_v0 = vcombine.low %v12155_v31, %v2982_v17  ;;  %v2991_v46 = vcombine.high %v12155_v31, %v2982_v17  ;;  %v12343_v48 = vpop.permute.xlu1 %2944 }
 0x313   :  { %v1706_v9 = vcombine.low %v1682_v53, %v1698_v11  ;;  %v3006_v40 = vcombine.low %v2973_v12, %v2989_v1  ;;  %v3007_v36 = vcombine.high %v2973_v12, %v2989_v1  ;;  %v1707_v4 = vcombine.high %v1682_v53, %v1698_v11 }
 0x314   :  { %10422 = vmatpush3.xpose.msk.msra.mxu0 %vm4051_vm2, %v2874_v19  ;;  %10427 = vmatpush3.xpose.msk.msra.mxu1 %vm4051_vm2, %v2875_v27  ;;  %v2998_v49 = vrot.slane %v2990_v0, %v11223_v56  ;;  %v3005_v35 = vrot.slane %v2991_v46, %v11223_v56  ;;  %v2857_v22 = vrot.slane %v13472_v33, %v11223_v56 }
 0x315   :  { %10431 = vmatprep.subr.mxu0 %v13452_v10  ;;  %10436 = vmatprep.subr.mxu1 %v13452_v10  ;;  %v13473_v31 = vcombine.high %v12001_v18, %v12004_v47  ;;  %v3014_v50 = vrot.slane %v3006_v40, %v11223_v56  ;;  %v3021_v62 = vrot.slane %v3007_v36, %v11223_v56 }
 0x316   :  { %v3231_v37 = vcombine.high %v13471_v58, %v2919_v43  ;;  %v3502_v59 = vcombine.low %v2998_v49, %v3005_v35  ;;  %v9872_v24 = vcombine.high %v2998_v49, %v3005_v35  ;;  %v12324_v28 = vrot.slane %v3586_v51, %v11218_v52  ;;  %v2895_v17 = vpop.permute.xlu1 %2894 }
 0x317   :  { %v2873_v25 = vrot.slane %v13473_v31, %v11223_v56  ;;  %10424 = vmatmul.mubr.msk.f32.vlgmr.msra.gmra.mxu0 %vm4051_vm2, %v1706_v9  ;;  %10429 = vmatmul.mubr.msk.f32.vlgmr.msra.gmra.mxu1 %vm4051_vm2, %v1707_v4  ;;  %v3518_v18 = vcombine.low %v3014_v50, %v3021_v62  ;;  %v9873_v47 = vcombine.high %v3014_v50, %v3021_v62 }
 0x318   :  { %10433 = vmatprep.mubr.msk.f32.mxu0 %vm10824_vm1, %v13452_v10  ;;  %v3162_v12 = vcombine.low %v13474_v39, %v12120_v13  ;;  %10438 = vmatprep.mubr.msk.f32.mxu1 %vm10824_vm1, %v13452_v10  ;;  %v12334_v55 = vrot.slane %v9875_v38, %v11218_v52  ;;  %v12337_v45 = vrot.slane %v3230_v54, %v11218_v52 }
 0x319   :  { %v2876_v29 = vcombine.low %v2857_v22, %v2873_v25  ;;  %v2877_v63 = vcombine.high %v2857_v22, %v2873_v25  ;;  %v3163_v51 = vcombine.high %v13474_v39, %v12120_v13  ;;  %v12346_v32 = vrot.slane %v3502_v59, %v11218_v52 }
 0x31a   :  { %v12349_v15 = vrot.slane %v9872_v24, %v11218_v52  ;;  %v12352_v57 = vrot.slane %v3518_v18, %v11218_v52  ;;  %v12355_v14 = vrot.slane %v3231_v37, %v11218_v52  ;;  %v12359_v38 = vrot.slane %v9873_v47, %v11218_v52  ;;  %v2943_v18 = vpop.permute.xlu1 %2942 }
 0x31b   :  { %10432 = vmatpush3.xpose.msk.msra.mxu0 %vm4051_vm2, %v2876_v29  ;;  %10437 = vmatpush3.xpose.msk.msra.mxu1 %vm4051_vm2, %v2877_v63  ;;  %v1689_v13 = vrot.slane %v1675_v41, %v11223_v56  ;;  %v1705_v8 = vrot.slane %v1691_v21, %v11223_v56  ;;  %v3178_v61 = vcombine.low %v12118_v60, %v12162_v44 }
 0x31c   :  { %10441 = vmatprep.subr.mxu0 %v13452_v10  ;;  %10446 = vmatprep.subr.mxu1 %v13452_v10  ;;  %v3170_v43 = vrot.slane %v3162_v12, %v11218_v52  ;;  %v3179_v53 = vcombine.high %v12118_v60, %v12162_v44  ;;  %v3110_v11 = vcombine.low %v12206_v20, %v12254_v26 }
 0x31d   :  { %v3111_v42 = vcombine.high %v12206_v20, %v12254_v26  ;;  %v3177_v16 = vrot.slane %v3163_v51, %v11218_v52  ;;  %v1708_v5 = vcombine.low %v1689_v13, %v1705_v8  ;;  %v1709_v2 = vcombine.high %v1689_v13, %v1705_v8 }
 0x31e   :  { %v3186_v41 = vrot.slane %v3178_v61, %v11218_v52  ;;  %v3193_v21 = vrot.slane %v3179_v53, %v11218_v52  ;;  %v3118_v19 = vrot.slane %v3110_v11, %v11218_v52  ;;  %v3534_v60 = vcombine.low %v12346_v32, %v12349_v15 }
 0x31f   :  { %v3125_v27 = vrot.slane %v3111_v42, %v11218_v52  ;;  %10434 = vmatmul.mubr.msk.f32.vlgmr.msra.gmra.mxu0 %vm4051_vm2, %v1708_v5  ;;  %10439 = vmatmul.mubr.msk.f32.vlgmr.msra.gmra.mxu1 %vm4051_vm2, %v1709_v2  ;;  %v3550_v26 = vcombine.low %v12352_v57, %v12359_v38  ;;  %v3314_v42 = vcombine.low %v12219_v30, %v12343_v48 }
 0x320   :  { %v3194_v44 = vcombine.low %v3170_v43, %v3186_v41  ;;  %v3195_v20 = vcombine.high %v3170_v43, %v3186_v41  ;;  %v3210_v1 = vcombine.low %v3177_v16, %v3193_v21  ;;  %v3211_v58 = vcombine.high %v3177_v16, %v3193_v21  ;;  %10443 = vmatprep.mubr.msk.f32.mxu0 %vm10824_vm1, %v13452_v10  ;;  %v13475_v43 = vld [vmem:[#allocation4_spill] sm:$0xff] }
 0x321   :  { %v3126_v54 = vcombine.low %v12252_v7, %v3118_v19  ;;  %v3127_v0 = vcombine.high %v12252_v7, %v3118_v19  ;;  %v3142_v40 = vcombine.low %v12276_v23, %v3125_v27  ;;  %v3143_v36 = vcombine.high %v12276_v23, %v3125_v27  ;;  %10448 = vmatprep.mubr.msk.f32.mxu1 %vm10824_vm1, %v13452_v10 }
 0x322   :  { %v3202_v46 = vrot.slane %v3194_v44, %v11223_v56  ;;  %v3209_v9 = vrot.slane %v3195_v20, %v11223_v56  ;;  %v3218_v4 = vrot.slane %v3210_v1, %v11223_v56  ;;  %v3225_v49 = vrot.slane %v3211_v58, %v11223_v56 }
 0x323   :  { %v3134_v7 = vrot.slane %v3126_v54, %v11223_v56  ;;  %v3141_v35 = vrot.slane %v3127_v0, %v11223_v56  ;;  %v3150_v31 = vrot.slane %v3142_v40, %v11223_v56  ;;  %v3157_v25 = vrot.slane %v3143_v36, %v11223_v56 }
 0x324   :  { %v3706_v33 = vcombine.low %v3202_v46, %v3209_v9  ;;  %v9878_v22 = vcombine.high %v3202_v46, %v3209_v9  ;;  %v3722_v50 = vcombine.low %v3218_v4, %v3225_v49  ;;  %v9879_v62 = vcombine.high %v3218_v4, %v3225_v49 }
 0x325   :  { %v3638_v23 = vcombine.low %v3134_v7, %v3141_v35  ;;  %v9876_v37 = vcombine.high %v3134_v7, %v3141_v35  ;;  %v3654_v24 = vcombine.low %v3150_v31, %v3157_v25  ;;  %v9877_v29 = vcombine.high %v3150_v31, %v3157_v25 }
 0x326   :  { %v12407_v59 = vrot.slane %v3706_v33, %v11218_v52  ;;  %v3542_v63 = vrot.slane %v3534_v60, %v11223_v56  ;;  %v12411_v47 = vrot.slane %v9878_v22, %v11218_v52  ;;  %v12414_v39 = vrot.slane %v3722_v50, %v11218_v52 }
 0x327   :  { %v12417_v12 = vrot.slane %v9879_v62, %v11218_v52  ;;  %v12420_v51 = vrot.slane %v3638_v23, %v11218_v52  ;;  %v12423_v13 = vrot.slane %v9876_v37, %v11218_v52  ;;  %v12426_v8 = vrot.slane %v3654_v24, %v11218_v52 }
 0x328   :  { %v3558_v61 = vrot.slane %v3550_v26, %v11223_v56  ;;  %v3298_v53 = vcombine.low %v13475_v43, %v12302_v34  ;;  %v3299_v11 = vcombine.high %v13475_v43, %v12302_v34  ;;  %v3315_v16 = vcombine.high %v12219_v30, %v12343_v48 }
 0x329   :  { %v3246_v5 = vcombine.low %v2895_v17, %v2943_v18  ;;  %v3247_v19 = vcombine.high %v2895_v17, %v2943_v18  ;;  %v3322_v60 = vrot.slane %v3314_v42, %v11218_v52  ;;  %v12443_v20 = vrot.slane %v9877_v29, %v11218_v52 }
 0x32a   :  { %v3566_v2 = vcombine.low %v3542_v63, %v3558_v61  ;;  %v3567_v41 = vcombine.high %v3542_v63, %v3558_v61  ;;  %v3306_v21 = vrot.slane %v3298_v53, %v11218_v52  ;;  %v3313_v27 = vrot.slane %v3299_v11, %v11218_v52 }
 0x32b   :  { %v3329_v44 = vrot.slane %v3315_v16, %v11218_v52  ;;  %v3254_v34 = vrot.slane %v3246_v5, %v11218_v52  ;;  %v3261_v30 = vrot.slane %v3247_v19, %v11218_v52  ;;  %v3535_v48 = vcombine.high %v12346_v32, %v12349_v15 }
 0x32c   :  { %10442 = vmatpush3.msra.mxu0 %v3566_v2  ;;  %10447 = vmatpush3.msra.mxu1 %v3567_v41  ;;  %v3330_v26 = vcombine.low %v3306_v21, %v3322_v60  ;;  %v3331_v17 = vcombine.high %v3306_v21, %v3322_v60  ;;  %v3551_v11 = vcombine.high %v12352_v57, %v12359_v38 }
 0x32d   :  { %v3346_v1 = vcombine.low %v3313_v27, %v3329_v44  ;;  %v3347_v58 = vcombine.high %v3313_v27, %v3329_v44  ;;  %10451 = vmatprep.subr.mxu0 %v13452_v10  ;;  %v3262_v54 = vcombine.low %v12337_v45, %v3254_v34  ;;  %v3263_v0 = vcombine.high %v12337_v45, %v3254_v34 }
 0x32e   :  { %v3278_v46 = vcombine.low %v12355_v14, %v3261_v30  ;;  %v3279_v9 = vcombine.high %v12355_v14, %v3261_v30  ;;  %10456 = vmatprep.subr.mxu1 %v13452_v10  ;;  %v3338_v40 = vrot.slane %v3330_v26, %v11223_v56  ;;  %v3345_v32 = vrot.slane %v3331_v17, %v11223_v56 }
 0x32f   :  { %v3354_v15 = vrot.slane %v3346_v1, %v11223_v56  ;;  %v3361_v36 = vrot.slane %v3347_v58, %v11223_v56  ;;  %v3270_v4 = vrot.slane %v3262_v54, %v11223_v56  ;;  %v3277_v49 = vrot.slane %v3263_v0, %v11223_v56 }
 0x330   :  { %v3286_v45 = vrot.slane %v3278_v46, %v11223_v56  ;;  %v3293_v7 = vrot.slane %v3279_v9, %v11223_v56  ;;  %v3842_v35 = vcombine.low %v3338_v40, %v3345_v32  ;;  %v9882_v14 = vcombine.high %v3338_v40, %v3345_v32 }
 0x331   :  { %v3858_v33 = vcombine.low %v3354_v15, %v3361_v36  ;;  %v9883_v22 = vcombine.high %v3354_v15, %v3361_v36  ;;  %v3774_v31 = vcombine.low %v3270_v4, %v3277_v49  ;;  %v9880_v25 = vcombine.high %v3270_v4, %v3277_v49 }
 0x332   :  { %v3790_v50 = vcombine.low %v3286_v45, %v3293_v7  ;;  %v9881_v62 = vcombine.high %v3286_v45, %v3293_v7  ;;  %v12463_v23 = vrot.slane %v3842_v35, %v11218_v52  ;;  %v12466_v37 = vrot.slane %v9882_v14, %v11218_v52 }
 0x333   :  { %v12469_v24 = vrot.slane %v3858_v33, %v11218_v52  ;;  %v12472_v29 = vrot.slane %v9883_v22, %v11218_v52  ;;  %v3781_v63 = vrot.slane %v3774_v31, %v11218_v52  ;;  %v3789_v18 = vrot.slane %v9880_v25, %v11218_v52 }
 0x334   :  { %v3797_v61 = vrot.slane %v3790_v50, %v11218_v52  ;;  %v3805_v43 = vrot.slane %v9881_v62, %v11218_v52  ;;  %v12479_v53 = vrot.slane %v3535_v48, %v11223_v56  ;;  %v3602_v42 = vcombine.low %v12273_v3, %v12290_v6 }
 0x335   :  { %v3618_v16 = vcombine.low %v12324_v28, %v12334_v55  ;;  %v3603_v5 = vcombine.high %v12273_v3, %v12290_v6  ;;  %v3619_v2 = vcombine.high %v12324_v28, %v12334_v55  ;;  %v3670_v41 = vcombine.low %v12420_v51, %v12423_v13 }
 0x336   :  { %v3686_v21 = vcombine.low %v12426_v8, %v12443_v20  ;;  %v12496_v57 = vrot.slane %v3551_v11, %v11223_v56  ;;  %v12499_v38 = vrot.slane %v3602_v42, %v11223_v56  ;;  %v3671_v3 = vcombine.high %v12420_v51, %v12423_v13 }
 0x337   :  { %v12502_v19 = vrot.slane %v3618_v16, %v11223_v56  ;;  %v12507_v6 = vrot.slane %v3603_v5, %v11223_v56  ;;  %v12510_v28 = vrot.slane %v3619_v2, %v11223_v56  ;;  %v12513_v55 = vrot.slane %v3670_v41, %v11223_v56 }
 0x338   :  { %v12516_v27 = vrot.slane %v3686_v21, %v11223_v56  ;;  %v12533_v26 = vrot.slane %v3671_v3, %v11223_v56  ;;  %v3687_v17 = vcombine.high %v12426_v8, %v12443_v20  ;;  %v3738_v1 = vcombine.low %v12407_v59, %v12411_v47  ;;  %v13484_v21 = vld [vmem:[#allocation7_spill] sm:$0xff]  ;;  %v12823_v3 = vpop.permute.xlu1 %2898 }
 0x339   :  { %v3754_v58 = vcombine.low %v12414_v39, %v12417_v12  ;;  %v3739_v0 = vcombine.high %v12407_v59, %v12411_v47  ;;  %v3755_v46 = vcombine.high %v12414_v39, %v12417_v12  ;;  %v3806_v9 = vcombine.low %v3781_v63, %v3789_v18  ;;  %13488 = vst [vmem:[#allocation15_spill] sm:$0xff] %v12823_v3 }
 0x33a   :  { %v3822_v40 = vcombine.low %v3797_v61, %v3805_v43  ;;  %v12548_v32 = vrot.slane %v3687_v17, %v11223_v56  ;;  %v12551_v8 = vrot.slane %v3738_v1, %v11223_v56  ;;  %v3807_v15 = vcombine.high %v3781_v63, %v3789_v18 }
 0x33b   :  { %v12554_v20 = vrot.slane %v3754_v58, %v11223_v56  ;;  %v12557_v36 = vrot.slane %v3739_v0, %v11223_v56  ;;  %v12560_v59 = vrot.slane %v3755_v46, %v11223_v56  ;;  %v12563_v47 = vrot.slane %v3806_v9, %v11223_v56 }
 0x33c   :  { %v12566_v39 = vrot.slane %v3822_v40, %v11223_v56  ;;  %v12581_v14 = vrot.slane %v3807_v15, %v11223_v56  ;;  %v3823_v33 = vcombine.high %v3797_v61, %v3805_v43  ;;  %v3874_v31 = vcombine.low %v12463_v23, %v12466_v37 }
 0x33d   :  { %v3890_v25 = vcombine.low %v12469_v24, %v12472_v29  ;;  %v3875_v50 = vcombine.high %v12463_v23, %v12466_v37  ;;  %v3891_v63 = vcombine.high %v12469_v24, %v12472_v29  ;;  %v13483_v2 = vlaneseq }
 0x33e   :  { %13476 = vst [vmem:[#allocation5_spill] sm:$0xff] %v12566_v39  ;;  %13477 = vst [vmem:[#allocation3_spill] sm:$0xff] %v12581_v14  ;;  %v12592_v62 = vrot.slane %v3823_v33, %v11223_v56  ;;  %v12599_v61 = vrot.slane %v3874_v31, %v11223_v56 }
 0x33f   :  { %v12602_v43 = vrot.slane %v3890_v25, %v11223_v56  ;;  %v12605_v11 = vrot.slane %v3875_v50, %v11223_v56  ;;  %v12610_v37 = vrot.slane %v3891_v63, %v11223_v56  ;;  %v4049_v41 = vand.u32 127, %v13483_v2 }
 0x340   :  { %13478 = vst [vmem:[#allocation4_spill] sm:$0xff] %v12592_v62  ;;  %13479 = vst [vmem:[#allocation11_spill] sm:$0xff] %v12599_v61 }
 0x341   :  { %13480 = vst [vmem:[#allocation12_spill] sm:$0xff] %v12602_v43  ;;  %13481 = vst [vmem:[#allocation13_spill] sm:$0xff] %v12605_v11  ;;  %vm12624_vm3 = vcmp.eq.s32.totalorder %v13484_v21, %v4049_v41 }
 0x342   :  { %13482 = vst [vmem:[#allocation14_spill] sm:$0xff] %v12610_v37 }
 0x358   :  { %v4428_v17 = vpop.f32.mrf.mxu0 }
 0x359   :  { %v12630_v1 = vsel %vm12624_vm3, -1e+30, %v4428_v17 }
 0x35a   :  { %v10305_v58 = vpop.f32.mrf.mxu0  ;;  %v6531_v0 = vsel %vm6518_vm4, %v12630_v1, -inf }
 0x35b   :  { %6532 = vmax.xlane.f32.xlu0 %v6531_v0 }
 0x363   :  { %v4580_v46 = vpop.f32.mrf.mxu0 }
 0x364   :  { %v4124_v40 = vpop.f32.mrf.mxu1  ;;  %v12642_v25 = vsel %vm12624_vm3, -1e+30, %v4580_v46 }
 0x365   :  { %v10315_v9 = vpop.f32.mrf.mxu0  ;;  %v12636_v15 = vsel %vm12624_vm3, -1e+30, %v4124_v40  ;;  %v6537_v41 = vsel %vm6518_vm4, %v12642_v25, -inf }
 0x366   :  { %v10285_v33 = vpop.f32.mrf.mxu1  ;;  %v6519_v31 = vsel %vm6518_vm4, %v12636_v15, -inf }
 0x367   :  { %6520 = vmax.xlane.f32.xlu0 %v6519_v31 }
 0x368   :  { %v4200_v50 = vpop.f32.mrf.mxu1 }
 0x369   :  { %v12646_v63 = vsel %vm12624_vm3, -1e+30, %v4200_v50 }
 0x36a   :  { %v10290_v2 = vpop.f32.mrf.mxu1  ;;  %v6522_v21 = vsel %vm6518_vm4, %v12646_v63, -inf }
 0x36b   :  { %6538 = vmax.xlane.f32.xlu0 %v6537_v41  ;;  %6523 = vmax.xlane.f32.xlu1 %v6522_v21 }
 0x374   :  { %v4276_v17 = vpop.f32.mrf.mxu1 }
 0x376   :  { %v10295_v58 = vpop.f32.mrf.mxu1 }
 0x378   :  { %v4352_v0 = vpop.f32.mrf.mxu1 }
 0x379   :  { %v12696_v18 = vsel %vm12624_vm3, -1e+30, %v4352_v0 }
 0x37a   :  { %v10300_v46 = vpop.f32.mrf.mxu1 }
 0x37c   :  { %v4504_v9 = vpop.f32.mrf.mxu1 }
 0x37d   :  { %v12654_v40 = vsel %vm12624_vm3, -1e+30, %v4504_v9 }
 0x37e   :  { %v10310_v33 = vpop.f32.mrf.mxu1  ;;  %v6534_v31 = vsel %vm6518_vm4, %v12654_v40, -inf }
 0x37f   :  { %6535 = vmax.xlane.f32.xlu1 %v6534_v31 }
 0x383   :  { %v4656_v50 = vpop.f32.mrf.mxu1 }
 0x384   :  { %v12660_v2 = vsel %vm12624_vm3, -1e+30, %v4656_v50 }
 0x385   :  { %v10320_v41 = vpop.f32.mrf.mxu1  ;;  %v6540_v21 = vsel %vm6518_vm4, %v12660_v2, -inf }
 0x386   :  { %6541 = vmax.xlane.f32.xlu1 %v6540_v21  ;;  %v12678_v21 = vsel %vm12624_vm3, -1e+30, %v4276_v17 }
 0x389   :  { %v4732_v58 = vpop.f32.mrf.mxu0  ;;  %v4808_v46 = vpop.f32.mrf.mxu1 }
 0x38a   :  { %v12666_v9 = vsel %vm12624_vm3, -1e+30, %v4732_v58  ;;  %v12670_v33 = vsel %vm12624_vm3, -1e+30, %v4808_v46  ;;  %v6525_v46 = vsel %vm6518_vm4, %v12678_v21, -inf }
 0x38b   :  { %v6546_v31 = vsel %vm6518_vm4, %v12670_v33, -inf  ;;  %v10325_v50 = vpop.f32.mrf.mxu0  ;;  %v10330_v5 = vpop.f32.mrf.mxu1  ;;  %v6543_v41 = vsel %vm6518_vm4, %v12666_v9, -inf }
 0x38c   :  { %6547 = vmax.xlane.f32.xlu1 %v6546_v31  ;;  %6544 = vmax.xlane.f32.xlu0 %v6543_v41 }
 0x38e   :  { %v4884_v58 = vpop.f32.mrf.mxu0 }
 0x38f   :  { %v4960_v42 = vpop.f32.mrf.mxu1  ;;  %v12684_v24 = vsel %vm12624_vm3, -1e+30, %v4884_v58 }
 0x390   :  { %v12688_v5 = vsel %vm12624_vm3, -1e+30, %v4960_v42  ;;  %v10335_v50 = vpop.f32.mrf.mxu0  ;;  %6526 = vmax.xlane.f32.xlu0 %v6525_v46  ;;  %v6549_v41 = vsel %vm6518_vm4, %v12684_v24, -inf }
 0x391   :  { %v6552_v17 = vsel %vm6518_vm4, %v12688_v5, -inf  ;;  %v10340_v31 = vpop.f32.mrf.mxu1 }
 0x392   :  { %6553 = vmax.xlane.f32.xlu1 %v6552_v17  ;;  %v6528_v17 = vsel %vm6518_vm4, %v12696_v18, -inf }
 0x394   :  { %6550 = vmax.xlane.f32.xlu0 %v6549_v41 }
 0x395   :  { %v5036_v58 = vpop.f32.mrf.mxu0  ;;  %v5112_v22 = vpop.f32.mrf.mxu1 }
 0x396   :  { %v12700_v42 = vsel %vm12624_vm3, -1e+30, %v5112_v22  ;;  %v12708_v0 = vsel %vm12624_vm3, -1e+30, %v5036_v58 }
 0x397   :  { %v6558_v46 = vsel %vm6518_vm4, %v12700_v42, -inf  ;;  %v10345_v50 = vpop.f32.mrf.mxu0  ;;  %v10350_v31 = vpop.f32.mrf.mxu1  ;;  %v6555_v41 = vsel %vm6518_vm4, %v12708_v0, -inf }
 0x398   :  { %6559 = vmax.xlane.f32.xlu1 %v6558_v46  ;;  %6529 = vmax.xlane.f32.xlu0 %v6528_v17 }
 0x39c   :  { %6556 = vmax.xlane.f32.xlu0 %v6555_v41 }
 0x39f   :  { %v5188_v22 = vpop.f32.mrf.mxu0  ;;  %v5264_v16 = vpop.f32.mrf.mxu1 }
 0x3a0   :  { %v12714_v45 = vsel %vm12624_vm3, -1e+30, %v5188_v22  ;;  %v12718_v46 = vsel %vm12624_vm3, -1e+30, %v5264_v16 }
 0x3a1   :  { %v6564_v50 = vsel %vm6518_vm4, %v12718_v46, -inf  ;;  %v10355_v58 = vpop.f32.mrf.mxu0  ;;  %v10360_v31 = vpop.f32.mrf.mxu1  ;;  %v6561_v17 = vsel %vm6518_vm4, %v12714_v45, -inf }
 0x3a2   :  { %6565 = vmax.xlane.f32.xlu1 %v6564_v50  ;;  %6562 = vmax.xlane.f32.xlu0 %v6561_v17 }
 0x3b3   :  { %v5340_v41 = vpop.f32.mrf.mxu0  ;;  %v5416_v29 = vpop.f32.mrf.mxu1 }
 0x3b4   :  { %v12726_v22 = vsel %vm12624_vm3, -1e+30, %v5340_v41  ;;  %v12730_v16 = vsel %vm12624_vm3, -1e+30, %v5416_v29 }
 0x3b5   :  { %v6570_v49 = vsel %vm6518_vm4, %v12730_v16, -inf  ;;  %v10365_v58 = vpop.f32.mrf.mxu0  ;;  %v10370_v31 = vpop.f32.mrf.mxu1  ;;  %v6567_v23 = vsel %vm6518_vm4, %v12726_v22, -inf }
 0x3b6   :  { %6571 = vmax.xlane.f32.xlu1 %v6570_v49  ;;  %6568 = vmax.xlane.f32.xlu0 %v6567_v23 }
 0x3b7   :  { %v5492_v50 = vpop.f32.mrf.mxu0  ;;  %v5568_v17 = vpop.f32.mrf.mxu1 }
 0x3b8   :  { %v12738_v41 = vsel %vm12624_vm3, -1e+30, %v5492_v50  ;;  %v12742_v29 = vsel %vm12624_vm3, -1e+30, %v5568_v17 }
 0x3b9   :  { %v6576_v35 = vsel %vm6518_vm4, %v12742_v29, -inf  ;;  %v10375_v58 = vpop.f32.mrf.mxu0  ;;  %v10380_v31 = vpop.f32.mrf.mxu1  ;;  %v6573_v54 = vsel %vm6518_vm4, %v12738_v41, -inf }
 0x3ba   :  { %6577 = vmax.xlane.f32.xlu1 %v6576_v35  ;;  %6574 = vmax.xlane.f32.xlu0 %v6573_v54 }
 0x3bd   :  { %v5644_v49 = vpop.f32.mrf.mxu0  ;;  %v5720_v23 = vpop.f32.mrf.mxu1 }
 0x3be   :  { %v12750_v50 = vsel %vm12624_vm3, -1e+30, %v5644_v49  ;;  %v12754_v17 = vsel %vm12624_vm3, -1e+30, %v5720_v23 }
 0x3bf   :  { %v6579_v7 = vsel %vm6518_vm4, %v12750_v50, -inf  ;;  %v6582_v58 = vsel %vm6518_vm4, %v12754_v17, -inf  ;;  %v10385_v31 = vpop.f32.mrf.mxu0  ;;  %v10390_v4 = vpop.f32.mrf.mxu1 }
 0x3c0   :  { %6583 = vmax.xlane.f32.xlu1 %v6582_v58  ;;  %6580 = vmax.xlane.f32.xlu0 %v6579_v7 }
 0x3c5   :  { %v5796_v54 = vpop.f32.mrf.mxu0 }
 0x3c6   :  { %v5872_v35 = vpop.f32.mrf.mxu1  ;;  %v12762_v49 = vsel %vm12624_vm3, -1e+30, %v5796_v54 }
 0x3c7   :  { %v12766_v23 = vsel %vm12624_vm3, -1e+30, %v5872_v35  ;;  %v6585_v12 = vsel %vm6518_vm4, %v12762_v49, -inf  ;;  %v10395_v31 = vpop.f32.mrf.mxu0 }
 0x3c8   :  { %v6588_v48 = vsel %vm6518_vm4, %v12766_v23, -inf  ;;  %v10400_v4 = vpop.f32.mrf.mxu1  ;;  %6586 = vmax.xlane.f32.xlu0 %v6585_v12 }
 0x3c9   :  { %6589 = vmax.xlane.f32.xlu1 %v6588_v48 }
 0x3ca   :  { %v5948_v7 = vpop.f32.mrf.mxu0  ;;  %v6024_v58 = vpop.f32.mrf.mxu1 }
 0x3cb   :  { %v12774_v54 = vsel %vm12624_vm3, -1e+30, %v5948_v7  ;;  %v12778_v35 = vsel %vm12624_vm3, -1e+30, %v6024_v58 }
 0x3cc   :  { %v6591_v30 = vsel %vm6518_vm4, %v12774_v54, -inf  ;;  %v6594_v13 = vsel %vm6518_vm4, %v12778_v35, -inf  ;;  %v10405_v31 = vpop.f32.mrf.mxu0  ;;  %v10410_v4 = vpop.f32.mrf.mxu1 }
 0x3cd   :  { %6595 = vmax.xlane.f32.xlu1 %v6594_v13  ;;  %6592 = vmax.xlane.f32.xlu0 %v6591_v30 }
 0x3cf   :  { %v6100_v48 = vpop.f32.mrf.mxu0 }
 0x3d0   :  { %v6176_v12 = vpop.f32.mrf.mxu1  ;;  %v12786_v7 = vsel %vm12624_vm3, -1e+30, %v6100_v48 }
 0x3d1   :  { %v12790_v58 = vsel %vm12624_vm3, -1e+30, %v6176_v12  ;;  %v6597_v34 = vsel %vm6518_vm4, %v12786_v7, -inf  ;;  %v10415_v31 = vpop.f32.mrf.mxu0 }
 0x3d2   :  { %v6600_v51 = vsel %vm6518_vm4, %v12790_v58, -inf  ;;  %v10420_v4 = vpop.f32.mrf.mxu1  ;;  %6598 = vmax.xlane.f32.xlu0 %v6597_v34 }
 0x3d3   :  { %6601 = vmax.xlane.f32.xlu1 %v6600_v51 }
 0x3d7   :  { %v6252_v13 = vpop.f32.mrf.mxu0  ;;  %v6328_v30 = vpop.f32.mrf.mxu1 }
 0x3d8   :  { %v12798_v48 = vsel %vm12624_vm3, -1e+30, %v6252_v13  ;;  %v12802_v12 = vsel %vm12624_vm3, -1e+30, %v6328_v30 }
 0x3d9   :  { %v6603_v44 = vsel %vm6518_vm4, %v12798_v48, -inf  ;;  %v6606_v60 = vsel %vm6518_vm4, %v12802_v12, -inf  ;;  %v10425_v31 = vpop.f32.mrf.mxu0  ;;  %v10430_v4 = vpop.f32.mrf.mxu1 }
 0x3da   :  { %6607 = vmax.xlane.f32.xlu1 %v6606_v60  ;;  %6604 = vmax.xlane.f32.xlu0 %v6603_v44  ;;  %v12820_v60 = vpop.permute.xlu0 %2922 }
 0x3db   :  { %13487 = vst [vmem:[#allocation7_spill] sm:$0xff] %v12820_v60 }
 0x3df   :  { %v6404_v51 = vpop.f32.mrf.mxu0  ;;  %v6480_v34 = vpop.f32.mrf.mxu1 }
 0x3e0   :  { %v12810_v13 = vsel %vm12624_vm3, -1e+30, %v6404_v51  ;;  %v12814_v30 = vsel %vm12624_vm3, -1e+30, %v6480_v34 }
 0x3e1   :  { %v6609_v56 = vsel %vm6518_vm4, %v12810_v13, -inf  ;;  %v6612_v52 = vsel %vm6518_vm4, %v12814_v30, -inf  ;;  %v10435_v31 = vpop.f32.mrf.mxu0  ;;  %v10440_v4 = vpop.f32.mrf.mxu1 }
 0x3e2   :  { %6613 = vmax.xlane.f32.xlu1 %v6612_v52  ;;  %6610 = vmax.xlane.f32.xlu0 %v6609_v56 }
 0x3e4   :  { %v6533_v44 = vpop.xlane.xlu0 %6532 }
 0x3e5   :  { %v6619_v51 = vsub.f32 %v12630_v1, %v6533_v44 }
 0x3e7   :  { %v6655_v37 = vmul.f32 1.442695, %v6619_v51 }
 0x3e9   :  { %10692 = vpow2.f32 %v6655_v37 }
 0x3f0   :  { %v6521_v34 = vpop.xlane.xlu0 %6520 }
 0x3f1   :  { %v6615_v11 = vsub.f32 %v12636_v15, %v6521_v34 }
 0x3f3   :  { %v6647_v43 = vmul.f32 1.442695, %v6615_v11 }
 0x3f4   :  { %v6524_v61 = vpop.xlane.xlu1 %6523  ;;  %v6539_v62 = vpop.xlane.xlu0 %6538 }
 0x3f5   :  { %10694 = vpow2.f32 %v6647_v43  ;;  %v6616_v31 = vsub.f32 %v12646_v63, %v6524_v61  ;;  %v6621_v4 = vsub.f32 %v12642_v25, %v6539_v62 }
 0x3f6   :  { %v12828_v52 = vpop.eup %10692 }
 0x3f7   :  { %v6649_v56 = vmul.f32 1.442695, %v6616_v31  ;;  %v6659_v60 = vmul.f32 1.442695, %v6621_v4  ;;  %v6723_v37 = vsel %vm6518_vm4, %v12828_v52, 0.0 }
 0x3f8   :  { %6724 = vadd.xlane.f32.xlu0 %v6723_v37 }
 0x3f9   :  { %10696 = vpow2.f32 %v6649_v56 }
 0x3fa   :  { %10698 = vpow2.f32 %v6659_v60 }
 0x402   :  { %v12832_v1 = vpop.eup %10694 }
 0x403   :  { %v6711_v11 = vsel %vm6518_vm4, %v12832_v1, 0.0 }
 0x404   :  { %6712 = vadd.xlane.f32.xlu0 %v6711_v11 }
 0x406   :  { %v12836_v43 = vpop.eup %10696 }
 0x407   :  { %v12838_v61 = vpop.eup %10698  ;;  %v6714_v62 = vsel %vm6518_vm4, %v12836_v43, 0.0 }
 0x408   :  { %6715 = vadd.xlane.f32.xlu1 %v6714_v62  ;;  %v6729_v15 = vsel %vm6518_vm4, %v12838_v61, 0.0  ;;  %v6536_v31 = vpop.xlane.xlu1 %6535 }
 0x409   :  { %6730 = vadd.xlane.f32.xlu0 %v6729_v15  ;;  %v6620_v37 = vsub.f32 %v12654_v40, %v6536_v31 }
 0x40b   :  { %v6657_v3 = vmul.f32 1.442695, %v6620_v37 }
 0x415   :  { %v6545_v25 = vpop.xlane.xlu0 %6544 }
 0x416   :  { %v6623_v63 = vsub.f32 %v12666_v9, %v6545_v25 }
 0x418   :  { %v6663_v60 = vmul.f32 1.442695, %v6623_v63  ;;  %v6542_v63 = vpop.xlane.xlu1 %6541 }
 0x419   :  { %v6527_v44 = vpop.xlane.xlu0 %6526  ;;  %v6622_v40 = vsub.f32 %v12660_v2, %v6542_v63 }
 0x41a   :  { %v6617_v51 = vsub.f32 %v12678_v21, %v6527_v44  ;;  %10700 = vpow2.f32 %v6663_v60 }
 0x41c   :  { %v6651_v34 = vmul.f32 1.442695, %v6617_v51  ;;  %v6548_v31 = vpop.xlane.xlu1 %6547 }
 0x41d   :  { %v6551_v4 = vpop.xlane.xlu0 %6550 }
 0x41e   :  { %10702 = vpow2.f32 %v6651_v34  ;;  %v6625_v56 = vsub.f32 %v12684_v24, %v6551_v4 }
 0x420   :  { %v6667_v11 = vmul.f32 1.442695, %v6625_v56  ;;  %v6554_v37 = vpop.xlane.xlu1 %6553 }
 0x421   :  { %v6530_v62 = vpop.xlane.xlu0 %6529 }
 0x422   :  { %10704 = vpow2.f32 %v6667_v11  ;;  %v6618_v15 = vsub.f32 %v12696_v18, %v6530_v62 }
 0x424   :  { %v6653_v9 = vmul.f32 1.442695, %v6618_v15 }
 0x425   :  { %v6557_v25 = vpop.xlane.xlu0 %6556 }
 0x426   :  { %10706 = vpow2.f32 %v6653_v9  ;;  %v6627_v21 = vsub.f32 %v12708_v0, %v6557_v25  ;;  %v6560_v9 = vpop.xlane.xlu1 %6559 }
 0x427   :  { %v12850_v60 = vpop.eup %10700  ;;  %10708 = vpow2.f32 %v6657_v3  ;;  %v6661_v3 = vmul.f32 1.442695, %v6622_v40 }
 0x428   :  { %v6671_v44 = vmul.f32 1.442695, %v6627_v21  ;;  %v6735_v24 = vsel %vm6518_vm4, %v12850_v60, 0.0 }
 0x429   :  { %6736 = vadd.xlane.f32.xlu1 %v6735_v24 }
 0x42a   :  { %10710 = vpow2.f32 %v6671_v44  ;;  %v6624_v44 = vsub.f32 %v12670_v33, %v6548_v31 }
 0x42b   :  { %v6563_v51 = vpop.xlane.xlu0 %6562  ;;  %v12855_v18 = vpop.eup %10702 }
 0x42c   :  { %v6629_v34 = vsub.f32 %v12714_v45, %v6563_v51  ;;  %v6717_v0 = vsel %vm6518_vm4, %v12855_v18, 0.0  ;;  %v6566_v24 = vpop.xlane.xlu1 %6565 }
 0x42d   :  { %6718 = vadd.xlane.f32.xlu0 %v6717_v0 }
 0x42e   :  { %v6675_v4 = vmul.f32 1.442695, %v6629_v34 }
 0x42f   :  { %v12860_v56 = vpop.eup %10704 }
 0x430   :  { %10712 = vpow2.f32 %v6675_v4  ;;  %v6741_v2 = vsel %vm6518_vm4, %v12860_v56, 0.0  ;;  %v6626_v4 = vsub.f32 %v12688_v5, %v6554_v37 }
 0x431   :  { %6742 = vadd.xlane.f32.xlu0 %v6741_v2  ;;  %10714 = vpow2.f32 %v6661_v3  ;;  %v6665_v2 = vmul.f32 1.442695, %v6624_v44 }
 0x432   :  { %v6669_v14 = vmul.f32 1.442695, %v6626_v4 }
 0x433   :  { %v12864_v11 = vpop.eup %10706 }
 0x434   :  { %v6720_v45 = vsel %vm6518_vm4, %v12864_v11, 0.0  ;;  %v12868_v62 = vpop.eup %10708 }
 0x435   :  { %6721 = vadd.xlane.f32.xlu1 %v6720_v45  ;;  %v6726_v25 = vsel %vm6518_vm4, %v12868_v62, 0.0  ;;  %v6628_v45 = vsub.f32 %v12700_v42, %v6560_v9 }
 0x437   :  { %v12870_v15 = vpop.eup %10710 }
 0x438   :  { %v6747_v63 = vsel %vm6518_vm4, %v12870_v15, 0.0 }
 0x439   :  { %6727 = vadd.xlane.f32.xlu1 %v6726_v25  ;;  %6748 = vadd.xlane.f32.xlu0 %v6747_v63 }
 0x43d   :  { %v12876_v21 = vpop.eup %10712 }
 0x43e   :  { %v6753_v51 = vsel %vm6518_vm4, %v12876_v21, 0.0  ;;  %v12881_v34 = vpop.eup %10714 }
 0x43f   :  { %v6569_v40 = vpop.xlane.xlu0 %6568  ;;  %6754 = vadd.xlane.f32.xlu0 %v6753_v51  ;;  %v6572_v25 = vpop.xlane.xlu1 %6571  ;;  %v6732_v33 = vsel %vm6518_vm4, %v12881_v34, 0.0 }
 0x440   :  { %v6631_v0 = vsub.f32 %v12726_v22, %v6569_v40  ;;  %v6673_v22 = vmul.f32 1.442695, %v6628_v45  ;;  %v6632_v45 = vsub.f32 %v12730_v16, %v6572_v25 }
 0x442   :  { %v6679_v3 = vmul.f32 1.442695, %v6631_v0 }
 0x443   :  { %v6575_v63 = vpop.xlane.xlu0 %6574  ;;  %6733 = vadd.xlane.f32.xlu0 %v6732_v33  ;;  %v6578_v40 = vpop.xlane.xlu1 %6577 }
 0x444   :  { %v6633_v31 = vsub.f32 %v12738_v41, %v6575_v63  ;;  %10716 = vpow2.f32 %v6679_v3  ;;  %v6630_v41 = vsub.f32 %v12718_v46, %v6566_v24 }
 0x445   :  { %10718 = vpow2.f32 %v6665_v2 }
 0x446   :  { %v6683_v39 = vmul.f32 1.442695, %v6633_v31 }
 0x448   :  { %10720 = vpow2.f32 %v6683_v39 }
 0x449   :  { %10722 = vpow2.f32 %v6669_v14  ;;  %v6581_v5 = vpop.xlane.xlu0 %6580  ;;  %v6584_v9 = vpop.xlane.xlu1 %6583 }
 0x44a   :  { %10724 = vpow2.f32 %v6673_v22  ;;  %v6635_v42 = vsub.f32 %v12750_v50, %v6581_v5  ;;  %v6677_v50 = vmul.f32 1.442695, %v6630_v41  ;;  %v6681_v5 = vmul.f32 1.442695, %v6632_v45 }
 0x44b   :  { %v6636_v16 = vsub.f32 %v12754_v17, %v6584_v9  ;;  %v6634_v41 = vsub.f32 %v12742_v29, %v6578_v40 }
 0x44c   :  { %v6687_v37 = vmul.f32 1.442695, %v6635_v42 }
 0x44e   :  { %10726 = vpow2.f32 %v6687_v37 }
 0x451   :  { %v12890_v44 = vpop.eup %10716  ;;  %v6587_v51 = vpop.xlane.xlu0 %6586 }
 0x452   :  { %v6637_v0 = vsub.f32 %v12762_v49, %v6587_v51  ;;  %v6759_v4 = vsel %vm6518_vm4, %v12890_v44, 0.0  ;;  %v12896_v3 = vpop.eup %10718  ;;  %v6590_v39 = vpop.xlane.xlu1 %6589 }
 0x453   :  { %6760 = vadd.xlane.f32.xlu1 %v6759_v4  ;;  %v6738_v49 = vsel %vm6518_vm4, %v12896_v3, 0.0  ;;  %v6638_v40 = vsub.f32 %v12766_v23, %v6590_v39 }
 0x454   :  { %v6691_v14 = vmul.f32 1.442695, %v6637_v0  ;;  %v6689_v0 = vmul.f32 1.442695, %v6636_v16 }
 0x455   :  { %v12898_v2 = vpop.eup %10720 }
 0x456   :  { %v6593_v63 = vpop.xlane.xlu0 %6592  ;;  %v12901_v33 = vpop.eup %10722  ;;  %v6765_v24 = vsel %vm6518_vm4, %v12898_v2, 0.0  ;;  %10728 = vpow2.f32 %v6691_v14 }
 0x457   :  { %v6639_v46 = vsub.f32 %v12774_v54, %v6593_v63  ;;  %v12908_v31 = vpop.eup %10724  ;;  %6739 = vadd.xlane.f32.xlu1 %v6738_v49  ;;  %6766 = vadd.xlane.f32.xlu0 %v6765_v24  ;;  %10730 = vpow2.f32 %v6677_v50  ;;  %v6596_v25 = vpop.xlane.xlu1 %6595  ;;  %v6744_v42 = vsel %vm6518_vm4, %v12901_v33, 0.0  ;;  %v6685_v50 = vmul.f32 1.442695, %v6634_v41 }
 0x458   :  { %v6750_v54 = vsel %vm6518_vm4, %v12908_v31, 0.0  ;;  %v6640_v4 = vsub.f32 %v12778_v35, %v6596_v25 }
 0x459   :  { %v6695_v22 = vmul.f32 1.442695, %v6639_v46 }
 0x45a   :  { %v6697_v45 = vmul.f32 1.442695, %v6640_v4 }
 0x45b   :  { %10732 = vpow2.f32 %v6695_v22  ;;  %6751 = vadd.xlane.f32.xlu1 %v6750_v54  ;;  %6745 = vadd.xlane.f32.xlu0 %v6744_v42  ;;  %v12915_v37 = vpop.eup %10726  ;;  %v6599_v51 = vpop.xlane.xlu0 %6598 }
 0x45c   :  { %10734 = vpow2.f32 %v6681_v5  ;;  %v6641_v17 = vsub.f32 %v12786_v7, %v6599_v51  ;;  %v6771_v9 = vsel %vm6518_vm4, %v12915_v37, 0.0  ;;  %v6602_v7 = vpop.xlane.xlu1 %6601  ;;  %v6693_v5 = vmul.f32 1.442695, %v6638_v40 }
 0x45d   :  { %10736 = vpow2.f32 %v6689_v0  ;;  %v6642_v16 = vsub.f32 %v12790_v58, %v6602_v7  ;;  %v13489_v7 = vld [vmem:[#allocation8_spill] sm:$0xff] }
 0x45e   :  { %v6699_v14 = vmul.f32 1.442695, %v6641_v17 }
 0x45f   :  { %6772 = vadd.xlane.f32.xlu0 %v6771_v9  ;;  %v6701_v25 = vmul.f32 1.442695, %v6642_v16 }
 0x460   :  { %10738 = vpow2.f32 %v6699_v14 }
 0x461   :  { %10740 = vpow2.f32 %v6685_v50 }
 0x462   :  { %10742 = vpow2.f32 %v6697_v45 }
 0x463   :  { %v6605_v63 = vpop.xlane.xlu0 %6604  ;;  %v12923_v29 = vpop.eup %10728 }
 0x464   :  { %v6643_v46 = vsub.f32 %v12798_v48, %v6605_v63  ;;  %v6777_v49 = vsel %vm6518_vm4, %v12923_v29, 0.0  ;;  %v12928_v24 = vpop.eup %10730 }
 0x465   :  { %6778 = vadd.xlane.f32.xlu0 %v6777_v49  ;;  %v6756_v23 = vsel %vm6518_vm4, %v12928_v24, 0.0  ;;  %v6608_v49 = vpop.xlane.xlu1 %6607 }
 0x466   :  { %v6703_v35 = vmul.f32 1.442695, %v6643_v46 }
 0x468   :  { %v12930_v22 = vpop.eup %10732  ;;  %10744 = vpow2.f32 %v6703_v35 }
 0x469   :  { %v6783_v48 = vsel %vm6518_vm4, %v12930_v22, 0.0  ;;  %v12937_v39 = vpop.eup %10734  ;;  %6757 = vadd.xlane.f32.xlu0 %v6756_v23  ;;  %10746 = vpow2.f32 %v6693_v5  ;;  %v6644_v23 = vsub.f32 %v12802_v12, %v6608_v49 }
 0x46a   :  { %6784 = vadd.xlane.f32.xlu1 %v6783_v48  ;;  %v6762_v54 = vsel %vm6518_vm4, %v12937_v39, 0.0  ;;  %v12941_v42 = vpop.eup %10736  ;;  %10748 = vpow2.f32 %v6701_v25 }
 0x46b   :  { %v6774_v0 = vsel %vm6518_vm4, %v12941_v42, 0.0  ;;  %v6611_v35 = vpop.xlane.xlu0 %6610  ;;  %v6614_v16 = vpop.xlane.xlu1 %6613 }
 0x46d   :  { %v12943_v58 = vpop.eup %10738 }
 0x46e   :  { %6763 = vadd.xlane.f32.xlu1 %v6762_v54  ;;  %v6789_v41 = vsel %vm6518_vm4, %v12943_v58, 0.0  ;;  %v12947_v51 = vpop.eup %10740  ;;  %v6705_v54 = vmul.f32 1.442695, %v6644_v23 }
 0x46f   :  { %6790 = vadd.xlane.f32.xlu0 %v6789_v41  ;;  %v12951_v4 = vpop.eup %10742  ;;  %v6768_v17 = vsel %vm6518_vm4, %v12947_v51, 0.0  ;;  %v6646_v41 = vsub.f32 %v12814_v30, %v6614_v16  ;;  %v13491_v30 = vcombine.low %v12479_v53, %v12496_v57 }
 0x470   :  { %v6786_v14 = vsel %vm6518_vm4, %v12951_v4, 0.0 }
 0x472   :  { %6775 = vadd.xlane.f32.xlu1 %v6774_v0  ;;  %v13490_v0 = vld [vmem:[#allocation6_spill] sm:$0xff] }
 0x473   :  { %6769 = vadd.xlane.f32.xlu0 %v6768_v17  ;;  %v6709_v17 = vmul.f32 1.442695, %v6646_v41 }
 0x475   :  { %v12955_v9 = vpop.eup %10744 }
 0x476   :  { %6787 = vadd.xlane.f32.xlu1 %v6786_v14  ;;  %v6795_v50 = vsel %vm6518_vm4, %v12955_v9, 0.0  ;;  %v12961_v45 = vpop.eup %10746 }
 0x477   :  { %6796 = vadd.xlane.f32.xlu0 %v6795_v50  ;;  %v6780_v63 = vsel %vm6518_vm4, %v12961_v45, 0.0  ;;  %v12965_v46 = vpop.eup %10748 }
 0x478   :  { %v6792_v40 = vsel %vm6518_vm4, %v12965_v46, 0.0 }
 0x47b   :  { %6781 = vadd.xlane.f32.xlu0 %v6780_v63 }
 0x47f   :  { %6793 = vadd.xlane.f32.xlu0 %v6792_v40  ;;  %v6645_v40 = vsub.f32 %v12810_v13, %v6611_v35 }
 0x481   :  { %v6725_v5 = vpop.xlane.xlu0 %6724  ;;  %v6707_v16 = vmul.f32 1.442695, %v6645_v40 }
 0x487   :  { %2946 = vrot.lane.b32.xlu1 %v13489_v7, %s10822_s29 }
 0x48d   :  { %v6713_v48 = vpop.xlane.xlu0 %6712 }
 0x48e   :  { %10750 = vrcp.f32 %v6713_v48 }
 0x491   :  { %v6716_v25 = vpop.xlane.xlu1 %6715 }
 0x492   :  { %10752 = vrcp.f32 %v6716_v25 }
 0x493   :  { %10754 = vpow2.f32 %v6705_v54 }
 0x494   :  { %10756 = vpow2.f32 %v6709_v17 }
 0x495   :  { %2900 = vrot.lane.b32.xlu0 %v13490_v0, %s10821_s27  ;;  %10758 = vpow2.f32 %v6707_v16 }
 0x499   :  { %2924 = vrot.lane.b32.xlu0 %v13490_v0, %s10820_s5 }
 0x49b   :  { %v10751_v14 = vpop.eup %10750 }
 0x49c   :  { %v6808_v50 = vmul.f32 %v10751_v14, %v12832_v1  ;;  %v13492_v1 = vcombine.high %v12479_v53, %v12496_v57  ;;  %v6731_v57 = vpop.xlane.xlu0 %6730 }
 0x49d   :  { %2948 = vrot.lane.b32.xlu0 %v13490_v0, %s10822_s29 }
 0x49e   :  { %10444 = vmatmul.mubr.msk.f32.vlgmr.msra.gmra.mxu0 %vm6518_vm4, %v6808_v50 }
 0x49f   :  { %v10753_v12 = vpop.eup %10752  ;;  %10452 = vmatpush3.msra.mxu0 %v13491_v30  ;;  %10453 = vmatprep.mubr.msk.f32.mxu0 %vm10824_vm1, %v13452_v10 }
 0x4a0   :  { %v6810_v63 = vmul.f32 %v10753_v12, %v12836_v43  ;;  %10461 = vmatprep.subr.mxu0 %v13452_v10  ;;  %v12996_v49 = vpop.eup %10754 }
 0x4a1   :  { %v6798_v43 = vsel %vm6518_vm4, %v12996_v49, 0.0  ;;  %v13000_v48 = vpop.eup %10756 }
 0x4a2   :  { %10449 = vmatmul.mubr.msk.f32.vlgmr.msra.gmra.mxu1 %vm6518_vm4, %v6810_v63  ;;  %v6804_v53 = vsel %vm6518_vm4, %v13000_v48, 0.0  ;;  %v13004_v13 = vpop.eup %10758  ;;  %v13493_v63 = vcombine.low %v12499_v38, %v12502_v19 }
 0x4a3   :  { %10457 = vmatpush3.msra.mxu1 %v13492_v1  ;;  %10458 = vmatprep.mubr.msk.f32.mxu1 %vm10824_vm1, %v13452_v10  ;;  %v6801_v25 = vsel %vm6518_vm4, %v13004_v13, 0.0 }
 0x4a4   :  { %10466 = vmatprep.subr.mxu1 %v13452_v10 }
 0x4ab   :  { %6799 = vadd.xlane.f32.xlu1 %v6798_v43  ;;  %v13494_v43 = vcombine.low %v12507_v6, %v12510_v28 }
 0x4af   :  { %6805 = vadd.xlane.f32.xlu1 %v6804_v53 }
 0x4b2   :  { %v6737_v35 = vpop.xlane.xlu1 %6736 }
 0x4b6   :  { %v6719_v23 = vpop.xlane.xlu0 %6718 }
 0x4b7   :  { %10760 = vrcp.f32 %v6719_v23 }
 0x4b8   :  { %10762 = vrcp.f32 %v6725_v5 }
 0x4b9   :  { %10764 = vrcp.f32 %v6731_v57 }
 0x4ba   :  { %v6743_v54 = vpop.xlane.xlu0 %6742 }
 0x4bc   :  { %6802 = vadd.xlane.f32.xlu0 %v6801_v25  ;;  %v13496_v25 = vcombine.low %v12513_v55, %v12516_v27 }
 0x4be   :  { %v6722_v41 = vpop.xlane.xlu1 %6721 }
 0x4bf   :  { %10766 = vrcp.f32 %v6722_v41 }
 0x4c0   :  { %10768 = vrcp.f32 %v6737_v35  ;;  %v13495_v35 = vcombine.high %v12499_v38, %v12502_v19  ;;  %v13497_v38 = vcombine.high %v12507_v6, %v12510_v28  ;;  %v13498_v19 = vcombine.low %v12533_v26, %v12548_v32 }
 0x4c1   :  { %v13499_v6 = vcombine.low %v12551_v8, %v12554_v20 }
 0x4c2   :  { %v6728_v17 = vpop.xlane.xlu1 %6727  ;;  %v6749_v14 = vpop.xlane.xlu0 %6748 }
 0x4c3   :  { %10770 = vrcp.f32 %v6728_v17 }
 0x4c4   :  { %v10761_v50 = vpop.eup %10760  ;;  %10772 = vrcp.f32 %v6743_v54 }
 0x4c5   :  { %v6812_v12 = vmul.f32 %v10761_v50, %v12855_v18  ;;  %v10763_v5 = vpop.eup %10762  ;;  %10774 = vrcp.f32 %v6749_v14  ;;  %v13500_v50 = vcombine.low %v12557_v36, %v12560_v59 }
 0x4c6   :  { %v6816_v1 = vmul.f32 %v10763_v5, %v12828_v52  ;;  %v10765_v40 = vpop.eup %10764 }
 0x4c7   :  { %10454 = vmatmul.mubr.msk.f32.vlgmr.msra.gmra.mxu0 %vm6518_vm4, %v6812_v12  ;;  %v6820_v52 = vmul.f32 %v10765_v40, %v12838_v61 }
 0x4c8   :  { %v6755_v30 = vpop.xlane.xlu0 %6754  ;;  %10462 = vmatpush3.msra.mxu0 %v13493_v63  ;;  %10463 = vmatprep.mubr.msk.f32.mxu0 %vm10824_vm1, %v13452_v10 }
 0x4c9   :  { %10471 = vmatprep.subr.mxu0 %v13452_v10  ;;  %10776 = vrcp.f32 %v6755_v30  ;;  %v13502_v30 = vld [vmem:[#allocation5_spill] sm:$0xff] }
 0x4ca   :  { %v13503_v63 = vcombine.low %v12563_v47, %v13502_v30 }
 0x4cb   :  { %10464 = vmatmul.mubr.msk.f32.vlgmr.msra.gmra.mxu0 %vm6518_vm4, %v6816_v1 }
 0x4cc   :  { %v10767_v18 = vpop.eup %10766  ;;  %v6734_v16 = vpop.xlane.xlu0 %6733  ;;  %10472 = vmatpush3.msra.mxu0 %v13494_v43  ;;  %10473 = vmatprep.mubr.msk.f32.mxu0 %vm10824_vm1, %v13452_v10  ;;  %v13505_v43 = vld [vmem:[#allocation4_spill] sm:$0xff] }
 0x4cd   :  { %10778 = vrcp.f32 %v6734_v16  ;;  %10481 = vmatprep.subr.mxu0 %v13452_v10  ;;  %v6814_v53 = vmul.f32 %v10767_v18, %v12864_v11  ;;  %v10769_v57 = vpop.eup %10768  ;;  %v13504_v16 = vld [vmem:[#allocation3_spill] sm:$0xff] }
 0x4ce   :  { %v6824_v11 = vmul.f32 %v10769_v57, %v12850_v60 }
 0x4cf   :  { %10459 = vmatmul.mubr.msk.f32.vlgmr.msra.gmra.mxu1 %vm6518_vm4, %v6814_v53  ;;  %10474 = vmatmul.mubr.msk.f32.vlgmr.msra.gmra.mxu0 %vm6518_vm4, %v6820_v52  ;;  %v13506_v53 = vcombine.low %v13504_v16, %v13505_v43 }
 0x4d0   :  { %v10771_v23 = vpop.eup %10770  ;;  %10467 = vmatpush3.msra.mxu1 %v13495_v35  ;;  %10482 = vmatpush3.msra.mxu0 %v13496_v25  ;;  %v13507_v35 = vcombine.high %v12533_v26, %v12548_v32 }
 0x4d1   :  { %10468 = vmatprep.mubr.msk.f32.mxu1 %vm10824_vm1, %v13452_v10  ;;  %10476 = vmatprep.subr.mxu1 %v13452_v10  ;;  %v6818_v61 = vmul.f32 %v10771_v23, %v12868_v62  ;;  %v10773_v54 = vpop.eup %10772 }
 0x4d2   :  { %10483 = vmatprep.mubr.msk.f32.mxu0 %vm10824_vm1, %v13452_v10  ;;  %10491 = vmatprep.subr.mxu0 %v13452_v10  ;;  %v6828_v60 = vmul.f32 %v10773_v54, %v12860_v56  ;;  %v10775_v62 = vpop.eup %10774  ;;  %v13508_v54 = vld [vmem:[#allocation11_spill] sm:$0xff] }
 0x4d3   :  { %10469 = vmatmul.mubr.msk.f32.vlgmr.msra.gmra.mxu1 %vm6518_vm4, %v6818_v61  ;;  %10484 = vmatmul.mubr.msk.f32.vlgmr.msra.gmra.mxu0 %vm6518_vm4, %v6824_v11  ;;  %v6832_v56 = vmul.f32 %v10775_v62, %v12870_v15 }
 0x4d4   :  { %10477 = vmatpush3.msra.mxu1 %v13497_v38  ;;  %10492 = vmatpush3.msra.mxu0 %v13498_v19  ;;  %v13509_v38 = vld [vmem:[#allocation12_spill] sm:$0xff] }
 0x4d5   :  { %10493 = vmatprep.mubr.msk.f32.mxu0 %vm10824_vm1, %v13452_v10  ;;  %10501 = vmatprep.subr.mxu0 %v13452_v10  ;;  %v13510_v19 = vcombine.low %v13508_v54, %v13509_v38 }
 0x4d6   :  { %10478 = vmatprep.mubr.msk.f32.mxu1 %vm10824_vm1, %v13452_v10  ;;  %10486 = vmatprep.subr.mxu1 %v13452_v10  ;;  %v10777_v28 = vpop.eup %10776 }
 0x4d7   :  { %10494 = vmatmul.mubr.msk.f32.vlgmr.msra.gmra.mxu0 %vm6518_vm4, %v6828_v60  ;;  %v6836_v15 = vmul.f32 %v10777_v28, %v12876_v21  ;;  %v13511_v60 = vcombine.high %v12551_v8, %v12554_v20  ;;  %v13512_v28 = vld [vmem:[#allocation13_spill] sm:$0xff]  ;;  %v13515_v20 = vcombine.high %v12557_v36, %v12560_v59  ;;  %v13516_v36 = vld [vmem:[#allocation7_spill] sm:$0xff] }
 0x4d8   :  { %10502 = vmatpush3.msra.mxu0 %v13499_v6  ;;  %10503 = vmatprep.mubr.msk.f32.mxu0 %vm10824_vm1, %v13452_v10  ;;  %v3366_v59 = vcombine.low %v13489_v7, %v13516_v36 }
 0x4d9   :  { %10511 = vmatprep.subr.mxu0 %v13452_v10 }
 0x4da   :  { %v10779_v41 = vpop.eup %10778 }
 0x4db   :  { %v6822_v17 = vmul.f32 %v10779_v41, %v12881_v34  ;;  %10504 = vmatmul.mubr.msk.f32.vlgmr.msra.gmra.mxu0 %vm6518_vm4, %v6832_v56  ;;  %v13501_v34 = vcombine.high %v12513_v55, %v12516_v27  ;;  %v13513_v56 = vld [vmem:[#allocation14_spill] sm:$0xff] }
 0x4dc   :  { %v6761_v14 = vpop.xlane.xlu1 %6760  ;;  %10512 = vmatpush3.msra.mxu0 %v13500_v50  ;;  %10513 = vmatprep.mubr.msk.f32.mxu0 %vm10824_vm1, %v13452_v10  ;;  %v13514_v41 = vcombine.low %v13512_v28, %v13513_v56 }
 0x4dd   :  { %10780 = vrcp.f32 %v6761_v14  ;;  %10479 = vmatmul.mubr.msk.f32.vlgmr.msra.gmra.mxu1 %vm6518_vm4, %v6822_v17  ;;  %10521 = vmatprep.subr.mxu0 %v13452_v10 }
 0x4de   :  { %10487 = vmatpush3.msra.mxu1 %v13501_v34  ;;  %10488 = vmatprep.mubr.msk.f32.mxu1 %vm10824_vm1, %v13452_v10 }
 0x4df   :  { %10496 = vmatprep.subr.mxu1 %v13452_v10  ;;  %10514 = vmatmul.mubr.msk.f32.vlgmr.msra.gmra.mxu0 %vm6518_vm4, %v6836_v15  ;;  %v3367_v15 = vcombine.high %v13489_v7, %v13516_v36 }
 0x4e0   :  { %v6740_v12 = vpop.xlane.xlu1 %6739  ;;  %v6767_v5 = vpop.xlane.xlu0 %6766  ;;  %10522 = vmatpush3.msra.mxu0 %v13503_v63  ;;  %10523 = vmatprep.mubr.msk.f32.mxu0 %vm10824_vm1, %v13452_v10 }
 0x4e1   :  { %10782 = vrcp.f32 %v6740_v12  ;;  %10531 = vmatprep.subr.mxu0 %v13452_v10 }
 0x4e2   :  { %10784 = vrcp.f32 %v6767_v5  ;;  %v13517_v5 = vld [vmem:[#allocation15_spill] sm:$0xff] }
 0x4e4   :  { %v6746_v55 = vpop.xlane.xlu0 %6745  ;;  %v6752_v27 = vpop.xlane.xlu1 %6751 }
 0x4e5   :  { %10786 = vrcp.f32 %v6746_v55 }
 0x4e6   :  { %10788 = vrcp.f32 %v6752_v27 }
 0x4e8   :  { %v6773_v21 = vpop.xlane.xlu0 %6772 }
 0x4e9   :  { %10790 = vrcp.f32 %v6773_v21  ;;  %v13518_v21 = vld [vmem:[#allocation9_spill] sm:$0xff] }
 0x4ea   :  { %v10781_v1 = vpop.eup %10780 }
 0x4eb   :  { %v6840_v40 = vmul.f32 %v10781_v1, %v12890_v44  ;;  %v3374_v1 = vrot.slane %v3366_v59, %v13518_v21 }
 0x4ed   :  { %10524 = vmatmul.mubr.msk.f32.vlgmr.msra.gmra.mxu0 %vm6518_vm4, %v6840_v40  ;;  %v3381_v40 = vrot.slane %v3367_v15, %v13518_v21 }
 0x4ee   :  { %v10783_v18 = vpop.eup %10782  ;;  %10532 = vmatpush3.msra.mxu0 %v13506_v53  ;;  %10533 = vmatprep.mubr.msk.f32.mxu0 %vm10824_vm1, %v13452_v10  ;;  %v6779_v57 = vpop.xlane.xlu0 %6778 }
 0x4ef   :  { %v10785_v52 = vpop.eup %10784  ;;  %v6826_v23 = vmul.f32 %v10783_v18, %v12896_v3  ;;  %10541 = vmatprep.subr.mxu0 %v13452_v10  ;;  %10792 = vrcp.f32 %v6779_v57 }
 0x4f0   :  { %v6844_v44 = vmul.f32 %v10785_v52, %v12898_v2 }
 0x4f1   :  { %10489 = vmatmul.mubr.msk.f32.vlgmr.msra.gmra.mxu1 %vm6518_vm4, %v6826_v23 }
 0x4f2   :  { %10497 = vmatpush3.msra.mxu1 %v13507_v35  ;;  %10498 = vmatprep.mubr.msk.f32.mxu1 %vm10824_vm1, %v13452_v10  ;;  %v10787_v25 = vpop.eup %10786  ;;  %v6758_v11 = vpop.xlane.xlu0 %6757 }
 0x4f3   :  { %v6785_v61 = vpop.xlane.xlu1 %6784  ;;  %10506 = vmatprep.subr.mxu1 %v13452_v10  ;;  %10534 = vmatmul.mubr.msk.f32.vlgmr.msra.gmra.mxu0 %vm6518_vm4, %v6844_v44  ;;  %v6830_v3 = vmul.f32 %v10787_v25, %v12901_v33  ;;  %v10789_v26 = vpop.eup %10788  ;;  %10794 = vrcp.f32 %v6758_v11  ;;  %v13520_v25 = vld [vmem:[#allocation10_spill] sm:$0xff] }
 0x4f4   :  { %10542 = vmatpush3.msra.mxu0 %v13510_v19  ;;  %10543 = vmatprep.mubr.msk.f32.mxu0 %vm10824_vm1, %v13452_v10  ;;  %v6834_v62 = vmul.f32 %v10789_v26, %v12908_v31  ;;  %v13521_v19 = vcombine.high %v13504_v16, %v13505_v43 }
 0x4f5   :  { %10551 = vmatprep.subr.mxu0 %v13452_v10  ;;  %10499 = vmatmul.mubr.msk.f32.vlgmr.msra.gmra.mxu1 %vm6518_vm4, %v6830_v3 }
 0x4f6   :  { %v10791_v32 = vpop.eup %10790  ;;  %10507 = vmatpush3.msra.mxu1 %v13511_v60  ;;  %10508 = vmatprep.mubr.msk.f32.mxu1 %vm10824_vm1, %v13452_v10 }
 0x4f7   :  { %v6764_v2 = vpop.xlane.xlu1 %6763  ;;  %v6848_v33 = vmul.f32 %v10791_v32, %v12915_v37  ;;  %10516 = vmatprep.subr.mxu1 %v13452_v10 }
 0x4f8   :  { %10796 = vrcp.f32 %v6764_v2  ;;  %v6791_v6 = vpop.xlane.xlu0 %6790 }
 0x4f9   :  { %10544 = vmatmul.mubr.msk.f32.vlgmr.msra.gmra.mxu0 %vm6518_vm4, %v6848_v33  ;;  %10509 = vmatmul.mubr.msk.f32.vlgmr.msra.gmra.mxu1 %vm6518_vm4, %v6834_v62 }
 0x4fa   :  { %10552 = vmatpush3.msra.mxu0 %v13514_v41  ;;  %10517 = vmatpush3.msra.mxu1 %v13515_v20  ;;  %v13522_v20 = vcombine.high %v13508_v54, %v13509_v38 }
 0x4fb   :  { %v6776_v8 = vpop.xlane.xlu1 %6775  ;;  %10518 = vmatprep.mubr.msk.f32.mxu1 %vm10824_vm1, %v13452_v10  ;;  %10526 = vmatprep.subr.mxu1 %v13452_v10 }
 0x4fc   :  { %10553 = vmatprep.mubr.msk.f32.mxu0 %vm10824_vm1, %v13452_v10  ;;  %v10793_v31 = vpop.eup %10792  ;;  %10561 = vmatprep.subr.mxu0 %v13452_v10  ;;  %v6770_v37 = vpop.xlane.xlu0 %6769 }
 0x4fd   :  { %v6852_v17 = vmul.f32 %v10793_v31, %v12923_v29  ;;  %10798 = vrcp.f32 %v6770_v37 }
 0x4fe   :  { %10800 = vrcp.f32 %v6776_v8 }
 0x4ff   :  { %v6788_v14 = vpop.xlane.xlu1 %6787  ;;  %10554 = vmatmul.mubr.msk.f32.vlgmr.msra.gmra.mxu0 %vm6518_vm4, %v6852_v17  ;;  %10802 = vrcp.f32 %v6785_v61 }
 0x500   :  { %10563 = vmatprep.mubr.msk.f32.mxu0 %vm10824_vm1, %v13452_v10  ;;  %v10795_v50 = vpop.eup %10794  ;;  %v13144_v34 = vpop.xlane.xlu0 %6796  ;;  %10804 = vrcp.f32 %v6791_v6 }
 0x501   :  { %v6838_v29 = vmul.f32 %v10795_v50, %v12928_v24  ;;  %v13519_v24 = vcombine.high %v12563_v47, %v13502_v30 }
 0x503   :  { %v2947_v12 = vpop.permute.xlu1 %2946  ;;  %10519 = vmatmul.mubr.msk.f32.vlgmr.msra.gmra.mxu1 %vm6518_vm4, %v6838_v29 }
 0x504   :  { %v3382_v63 = vcombine.low %v13517_v5, %v2947_v12  ;;  %v3383_v55 = vcombine.high %v13517_v5, %v2947_v12  ;;  %v6782_v53 = vpop.xlane.xlu0 %6781  ;;  %10527 = vmatpush3.msra.mxu1 %v13519_v24  ;;  %10528 = vmatprep.mubr.msk.f32.mxu1 %vm10824_vm1, %v13452_v10 }
 0x505   :  { %v10797_v27 = vpop.eup %10796  ;;  %10806 = vrcp.f32 %v6782_v53  ;;  %10536 = vmatprep.subr.mxu1 %v13452_v10 }
 0x506   :  { %v3390_v7 = vrot.slane %v3382_v63, %v13518_v21  ;;  %v3397_v18 = vrot.slane %v3383_v55, %v13518_v21  ;;  %v6842_v52 = vmul.f32 %v10797_v27, %v12937_v39  ;;  %10808 = vrcp.f32 %v6788_v14 }
 0x508   :  { %v3398_v57 = vcombine.low %v3374_v1, %v3390_v7  ;;  %v3399_v23 = vcombine.high %v3374_v1, %v3390_v7  ;;  %v3414_v44 = vcombine.low %v3381_v40, %v3397_v18  ;;  %v3415_v35 = vcombine.high %v3381_v40, %v3397_v18  ;;  %10529 = vmatmul.mubr.msk.f32.vlgmr.msra.gmra.mxu1 %vm6518_vm4, %v6842_v52  ;;  %v6794_v3 = vpop.xlane.xlu0 %6793 }
 0x509   :  { %10537 = vmatpush3.msra.mxu1 %v13521_v19  ;;  %10538 = vmatprep.mubr.msk.f32.mxu1 %vm10824_vm1, %v13452_v10  ;;  %10810 = vrcp.f32 %v6794_v3 }
 0x50a   :  { %v3406_v61 = vrot.slane %v3398_v57, %v13520_v25  ;;  %v3413_v47 = vrot.slane %v3399_v23, %v13520_v25  ;;  %v3422_v30 = vrot.slane %v3414_v44, %v13520_v25  ;;  %v3429_v11 = vrot.slane %v3415_v35, %v13520_v25  ;;  %10546 = vmatprep.subr.mxu1 %v13452_v10  ;;  %v10799_v39 = vpop.eup %10798 }
 0x50b   :  { %v6846_v33 = vmul.f32 %v10799_v39, %v12947_v51  ;;  %v10801_v62 = vpop.eup %10800  ;;  %10812 = vrcp.f32 %v13144_v34 }
 0x50c   :  { %v3910_v26 = vcombine.low %v3406_v61, %v3413_v47  ;;  %v9884_v32 = vcombine.high %v3406_v61, %v3413_v47  ;;  %v3926_v2 = vcombine.low %v3422_v30, %v3429_v11  ;;  %v9885_v60 = vcombine.high %v3422_v30, %v3429_v11  ;;  %v2901_v8 = vpop.permute.xlu0 %2900  ;;  %v10803_v36 = vpop.eup %10802 }
 0x50d   :  { %10539 = vmatmul.mubr.msk.f32.vlgmr.msra.gmra.mxu1 %vm6518_vm4, %v6846_v33  ;;  %v6850_v17 = vmul.f32 %v10801_v62, %v12941_v42  ;;  %v10805_v38 = vpop.eup %10804  ;;  %v13523_v42 = vcombine.high %v13512_v28, %v13513_v56  ;;  %v6856_v27 = vmul.f32 %v10803_v36, %v12930_v22  ;;  %v9208_v36 = vld [vmem:[%s13408_s6 + $0x8] sm:$0xff] }
 0x50e   :  { %v3917_v6 = vrot.slane %v3910_v26, %v13518_v21  ;;  %v3925_v41 = vrot.slane %v9884_v32, %v13518_v21  ;;  %v3933_v16 = vrot.slane %v3926_v2, %v13518_v21  ;;  %v3941_v43 = vrot.slane %v9885_v60, %v13518_v21  ;;  %10547 = vmatpush3.msra.mxu1 %v13522_v20 }
 0x50f   :  { %10548 = vmatprep.mubr.msk.f32.mxu1 %vm10824_vm1, %v13452_v10  ;;  %10556 = vmatprep.subr.mxu1 %v13452_v10  ;;  %v6860_v22 = vmul.f32 %v10805_v38, %v12943_v58 }
 0x510   :  { %v3942_v51 = vcombine.low %v3917_v6, %v3925_v41  ;;  %v3958_v31 = vcombine.low %v3933_v16, %v3941_v43  ;;  %v3943_v37 = vcombine.high %v3917_v6, %v3925_v41  ;;  %v3959_v14 = vcombine.high %v3933_v16, %v3941_v43  ;;  %v2925_v59 = vpop.permute.xlu0 %2924 }
 0x511   :  { %10549 = vmatmul.mubr.msk.f32.vlgmr.msra.gmra.mxu1 %vm6518_vm4, %v6850_v17  ;;  %v3434_v5 = vcombine.low %v13490_v0, %v2925_v59  ;;  %v3435_v55 = vcombine.high %v13490_v0, %v2925_v59 }
 0x512   :  { %v3950_v50 = vrot.slane %v3942_v51, %v13520_v25  ;;  %v3966_v15 = vrot.slane %v3958_v31, %v13520_v25  ;;  %v3957_v54 = vrot.slane %v3943_v37, %v13520_v25  ;;  %v3973_v12 = vrot.slane %v3959_v14, %v13520_v25  ;;  %v10807_v29 = vpop.eup %10806  ;;  %10557 = vmatpush3.msra.mxu1 %v13523_v42 }
 0x513   :  { %10558 = vmatprep.mubr.msk.f32.mxu1 %vm10824_vm1, %v13452_v10  ;;  %10566 = vmatprep.subr.mxu1 %v13452_v10  ;;  %v6854_v1 = vmul.f32 %v10807_v29, %v12961_v45  ;;  %v10809_v40 = vpop.eup %10808  ;;  %v3442_v0 = vrot.slane %v3434_v5, %v13518_v21  ;;  %v3449_v45 = vrot.slane %v3435_v55, %v13518_v21 }
 0x514   :  { %v3974_v63 = vcombine.low %v3950_v50, %v3966_v15  ;;  %v2949_v7 = vpop.permute.xlu0 %2948  ;;  %v3976_v18 = vcombine.low %v3957_v54, %v3973_v12  ;;  %v3975_v53 = vcombine.high %v3950_v50, %v3966_v15  ;;  %v6858_v34 = vmul.f32 %v10809_v40, %v12951_v4 }
 0x515   :  { %v3450_v28 = vcombine.low %v2901_v8, %v2949_v7  ;;  %v3451_v56 = vcombine.high %v2901_v8, %v2949_v7  ;;  %10559 = vmatmul.mubr.msk.f32.vlgmr.msra.gmra.mxu1 %vm6518_vm4, %v6854_v1  ;;  %v3977_v23 = vcombine.high %v3957_v54, %v3973_v12  ;;  %v9210_v54 = vld [vmem:[%s13408_s6 + $0x18] sm:$0xff] }
 0x516   :  { %10562 = vmatpush3.msra.mxu0 %v3974_v63  ;;  %10567 = vmatpush3.msra.mxu1 %v3975_v53  ;;  %v10811_v57 = vpop.eup %10810  ;;  %v9214_v1 = vld [vmem:[%s13408_s6 + $0x38] sm:$0xff] }
 0x517   :  { %10564 = vmatmul.mubr.msk.f32.vlgmr.msra.gmra.mxu0 %vm6518_vm4, %v6856_v27  ;;  %10571 = vmatprep.subr.mxu0 %v13452_v10  ;;  %v3458_v24 = vrot.slane %v3450_v28, %v13518_v21  ;;  %v3465_v52 = vrot.slane %v3451_v56, %v13518_v21  ;;  %v6862_v4 = vmul.f32 %v10811_v57, %v12965_v46  ;;  %v9211_v28 = vld [vmem:[%s13408_s6 + $0x20] sm:$0xff]  ;;  %v9213_v57 = vld [vmem:[%s13408_s6 + $0x30] sm:$0xff] }
 0x518   :  { %10572 = vmatpush3.msra.mxu0 %v3976_v18  ;;  %10573 = vmatprep.mubr.msk.f32.mxu0 %vm10824_vm1, %v13452_v10  ;;  %v10813_v43 = vpop.eup %10812 }
 0x519   :  { %10568 = vmatprep.mubr.msk.f32.mxu1 %vm10824_vm1, %v13452_v10  ;;  %10576 = vmatprep.subr.mxu1 %v13452_v10  ;;  %v3466_v58 = vcombine.low %v3442_v0, %v3458_v24  ;;  %v3467_v44 = vcombine.high %v3442_v0, %v3458_v24  ;;  %v3482_v35 = vcombine.low %v3449_v45, %v3465_v52 }
 0x51a   :  { %v3483_v61 = vcombine.high %v3449_v45, %v3465_v52  ;;  %10569 = vmatmul.mubr.msk.f32.vlgmr.msra.gmra.mxu1 %vm6518_vm4, %v6858_v34  ;;  %10581 = vmatprep.subr.mxu0 %v13452_v10 }
 0x51b   :  { %10574 = vmatmul.mubr.msk.f32.vlgmr.msra.gmra.mxu0 %vm6518_vm4, %v6860_v22  ;;  %v3474_v47 = vrot.slane %v3466_v58, %v13520_v25  ;;  %v3481_v30 = vrot.slane %v3467_v44, %v13520_v25  ;;  %v3490_v11 = vrot.slane %v3482_v35, %v13520_v25  ;;  %10577 = vmatpush3.msra.mxu1 %v3977_v23 }
 0x51c   :  { %v3497_v3 = vrot.slane %v3483_v61, %v13520_v25  ;;  %10578 = vmatprep.mubr.msk.f32.mxu1 %vm10824_vm1, %v13452_v10  ;;  %10586 = vmatprep.subr.mxu1 %v13452_v10 }
 0x51d   :  { %v3978_v19 = vcombine.low %v3474_v47, %v3481_v30  ;;  %v9886_v39 = vcombine.high %v3474_v47, %v3481_v30  ;;  %10583 = vmatprep.mubr.msk.f32.mxu0 %vm10824_vm1, %v13452_v10 }
 0x51e   :  { %v3994_v26 = vcombine.low %v3490_v11, %v3497_v3  ;;  %v9887_v32 = vcombine.high %v3490_v11, %v3497_v3  ;;  %10579 = vmatmul.mubr.msk.f32.vlgmr.msra.gmra.mxu1 %vm6518_vm4, %v6862_v4 }
 0x51f   :  { %v3985_v2 = vrot.slane %v3978_v19, %v13518_v21  ;;  %v3993_v60 = vrot.slane %v9886_v39, %v13518_v21  ;;  %10588 = vmatprep.mubr.msk.f32.mxu1 %vm10824_vm1, %v13452_v10 }
 0x520   :  { %v4001_v33 = vrot.slane %v3994_v26, %v13518_v21  ;;  %v4009_v62 = vrot.slane %v9887_v32, %v13518_v21  ;;  %v6864_v21 = vmul.f32 %v10813_v43, %v12955_v9 }
 0x521   :  { %v4010_v46 = vcombine.low %v3985_v2, %v3993_v60  ;;  %v4011_v41 = vcombine.high %v3985_v2, %v3993_v60 }
 0x522   :  { %v4026_v6 = vcombine.low %v4001_v33, %v4009_v62  ;;  %v4027_v16 = vcombine.high %v4001_v33, %v4009_v62 }
 0x523   :  { %v4018_v8 = vrot.slane %v4010_v46, %v13520_v25  ;;  %v4025_v51 = vrot.slane %v4011_v41, %v13520_v25 }
 0x524   :  { %v4034_v20 = vrot.slane %v4026_v6, %v13520_v25  ;;  %v4041_v31 = vrot.slane %v4027_v16, %v13520_v25 }
 0x526   :  { %v4042_v37 = vcombine.low %v4018_v8, %v4034_v20  ;;  %v4043_v17 = vcombine.high %v4018_v8, %v4034_v20  ;;  %v4044_v14 = vcombine.low %v4025_v51, %v4041_v31  ;;  %v4045_v15 = vcombine.high %v4025_v51, %v4041_v31 }
 0x528   :  { %10582 = vmatpush3.msra.mxu0 %v4042_v37  ;;  %10587 = vmatpush3.msra.mxu1 %v4043_v17 }
 0x529   :  { %10584 = vmatmul.mubr.msk.f32.vlgmr.msra.gmra.mxu0 %vm6518_vm4, %v6864_v21  ;;  %10591 = vmatprep.subr.mxu0 %v13452_v10 }
 0x52a   :  { %10592 = vmatpush3.msra.mxu0 %v4044_v14  ;;  %10596 = vmatprep.subr.mxu1 %v13452_v10 }
 0x52b   :  { %10593 = vmatprep.mubr.msk.f32.mxu0 %vm10824_vm1, %v13452_v10  ;;  %10601 = vmatprep.subr.mxu0 %v9208_v36 }
 0x534   :  { %v6800_v25 = vpop.xlane.xlu1 %6799 }
 0x535   :  { %10814 = vrcp.f32 %v6800_v25 }
 0x538   :  { %v6806_v9 = vpop.xlane.xlu1 %6805 }
 0x539   :  { %10816 = vrcp.f32 %v6806_v9 }
 0x542   :  { %v10815_v59 = vpop.eup %10814 }
 0x543   :  { %v6866_v50 = vmul.f32 %v10815_v59, %v12996_v49  ;;  %v9209_v49 = vld [vmem:[%s13408_s6 + $0x10] sm:$0xff] }
 0x545   :  { %10589 = vmatmul.mubr.msk.f32.vlgmr.msra.gmra.mxu1 %vm6518_vm4, %v6866_v50  ;;  %v6803_v12 = vpop.xlane.xlu0 %6802 }
 0x546   :  { %v10817_v38 = vpop.eup %10816  ;;  %10597 = vmatpush3.msra.mxu1 %v4045_v15  ;;  %10598 = vmatprep.mubr.msk.f32.mxu1 %vm10824_vm1, %v13452_v10  ;;  %10818 = vrcp.f32 %v6803_v12  ;;  %v9207_v10 = vld [vmem:[%s13408_s6] sm:$0xff] }
 0x547   :  { %v6870_v29 = vmul.f32 %v10817_v38, %v13000_v48  ;;  %10617 = vmatprep.subr.mxu1 %v9210_v54 }
 0x549   :  { %10599 = vmatmul.mubr.msk.f32.vlgmr.msra.gmra.mxu1 %vm6518_vm4, %v6870_v29 }
 0x54a   :  { %10618 = vmatpush3.msra.mxu1 %v9210_v54 }
 0x54b   :  { %10619 = vmatprep.subr.mxu1 %v9209_v49 }
 0x54c   :  { %10620 = vmatpush3.msra.mxu1 %v9209_v49 }
 0x54d   :  { %10649 = vmatprep.subr.mxu1 %v9214_v1 }
 0x553   :  { %v10819_v5 = vpop.eup %10818 }
 0x554   :  { %v6868_v42 = vmul.f32 %v10819_v5, %v13004_v13  ;;  %v9212_v13 = vld [vmem:[%s13408_s6 + $0x28] sm:$0xff] }
 0x556   :  { %10594 = vmatmul.mubr.msk.f32.vlgmr.msra.gmra.mxu0 %vm6518_vm4, %v6868_v42 }
 0x557   :  { %10602 = vmatpush3.msra.mxu0 %v9208_v36 }
 0x558   :  { %10603 = vmatprep.subr.mxu0 %v9207_v10 }
 0x559   :  { %10604 = vmatpush3.msra.mxu0 %v9207_v10 }
 0x55a   :  { %10633 = vmatprep.subr.mxu0 %v9212_v13 }
 0x55e   :  { %v6940_v48 = vpop.f32.mrf.mxu0 }
 0x55f   :  { %10605 = vmatprep.mubr.msk.f32.mxu0 %vm4051_vm2, %v6940_v48 }
 0x560   :  { %v10445_v63 = vpop.f32.mrf.mxu0 }
 0x562   :  { %v7013_v55 = vpop.f32.mrf.mxu1 }
 0x563   :  { %10621 = vmatprep.mubr.msk.f32.mxu1 %vm4051_vm2, %v7013_v55 }
 0x564   :  { %v10450_v27 = vpop.f32.mrf.mxu1 }
 0x587   :  { %v13273_v40 = vpop.f32.mrf.mxu0 }
 0x589   :  { %v10455_v7 = vpop.f32.mrf.mxu0 }
 0x58b   :  { %v7232_v18 = vpop.f32.mrf.mxu0 }
 0x58c   :  { %10606 = vmatmul.mubr.msk.f32.vlgmr.msra.gmra.mxu0 %vm4051_vm2, %v7232_v18 }
 0x58d   :  { %v10465_v56 = vpop.f32.mrf.mxu0  ;;  %10634 = vmatpush3.msra.mxu0 %v9212_v13 }
 0x58e   :  { %10635 = vmatprep.subr.mxu0 %v9211_v28 }
 0x58f   :  { %v13279_v53 = vpop.f32.mrf.mxu1  ;;  %v13281_v0 = vpop.f32.mrf.mxu0  ;;  %10636 = vmatpush3.msra.mxu0 %v9211_v28 }
 0x591   :  { %v10460_v22 = vpop.f32.mrf.mxu1  ;;  %v10475_v45 = vpop.f32.mrf.mxu0 }
 0x593   :  { %v7305_v24 = vpop.f32.mrf.mxu1  ;;  %v7524_v52 = vpop.f32.mrf.mxu0 }
 0x594   :  { %10608 = vmatprep.mubr.msk.f32.mxu0 %vm4051_vm2, %v7524_v52  ;;  %10622 = vmatmul.mubr.msk.f32.vlgmr.msra.gmra.mxu1 %vm4051_vm2, %v7305_v24 }
 0x595   :  { %v10470_v34 = vpop.f32.mrf.mxu1  ;;  %v10485_v23 = vpop.f32.mrf.mxu0  ;;  %10650 = vmatpush3.msra.mxu1 %v9214_v1 }
 0x596   :  { %10651 = vmatprep.subr.mxu1 %v9213_v57 }
 0x597   :  { %v7670_v58 = vpop.f32.mrf.mxu0  ;;  %10652 = vmatpush3.msra.mxu1 %v9213_v57 }
 0x599   :  { %v10495_v44 = vpop.f32.mrf.mxu0 }
 0x59b   :  { %v7816_v35 = vpop.f32.mrf.mxu0 }
 0x59c   :  { %10609 = vmatmul.mubr.msk.f32.gmra.mxu0 %vm4051_vm2, %v7816_v35 }
 0x59d   :  { %v7451_v61 = vpop.f32.mrf.mxu1  ;;  %v10505_v47 = vpop.f32.mrf.mxu0 }
 0x59f   :  { %v10480_v30 = vpop.f32.mrf.mxu1  ;;  %v7962_v11 = vpop.f32.mrf.mxu0 }
 0x5a1   :  { %v10515_v3 = vpop.f32.mrf.mxu0 }
 0x5ad   :  { %v8108_v4 = vpop.f32.mrf.mxu0 }
 0x5ae   :  { %10611 = vmatprep.mubr.msk.f32.mxu0 %vm4051_vm2, %v8108_v4 }
 0x5af   :  { %v10525_v19 = vpop.f32.mrf.mxu0 }
 0x5b1   :  { %v7597_v39 = vpop.f32.mrf.mxu1 }
 0x5b2   :  { %10624 = vmatprep.mubr.msk.f32.mxu1 %vm4051_vm2, %v7597_v39 }
 0x5b3   :  { %v10490_v26 = vpop.f32.mrf.mxu1  ;;  %v8254_v32 = vpop.f32.mrf.mxu0 }
 0x5b5   :  { %v10535_v2 = vpop.f32.mrf.mxu0  ;;  %v7743_v60 = vpop.f32.mrf.mxu1 }
 0x5b7   :  { %v10500_v33 = vpop.f32.mrf.mxu1 }
 0x5b9   :  { %v8400_v62 = vpop.f32.mrf.mxu0  ;;  %v7889_v46 = vpop.f32.mrf.mxu1 }
 0x5ba   :  { %10612 = vmatmul.mubr.msk.f32.gmra.mxu0 %vm4051_vm2, %v8400_v62  ;;  %10625 = vmatmul.mubr.msk.f32.gmra.mxu1 %vm4051_vm2, %v7889_v46 }
 0x5bb   :  { %v10545_v6 = vpop.f32.mrf.mxu0  ;;  %v10510_v41 = vpop.f32.mrf.mxu1 }
 0x5bf   :  { %v8546_v16 = vpop.f32.mrf.mxu0 }
 0x5c1   :  { %v10555_v43 = vpop.f32.mrf.mxu0 }
 0x5c3   :  { %v8035_v8 = vpop.f32.mrf.mxu1 }
 0x5c5   :  { %v10520_v20 = vpop.f32.mrf.mxu1 }
 0x5c8   :  { %v8181_v51 = vpop.f32.mrf.mxu1 }
 0x5c9   :  { %10627 = vmatprep.mubr.msk.f32.mxu1 %vm4051_vm2, %v8181_v51 }
 0x5ca   :  { %v10530_v31 = vpop.f32.mrf.mxu1 }
 0x5cd   :  { %v8327_v37 = vpop.f32.mrf.mxu1 }
 0x5cf   :  { %v10540_v17 = vpop.f32.mrf.mxu1 }
 0x5d1   :  { %v8473_v21 = vpop.f32.mrf.mxu1 }
 0x5d2   :  { %10628 = vmatmul.mubr.msk.f32.gmra.mxu1 %vm4051_vm2, %v8473_v21 }
 0x5d3   :  { %v10550_v14 = vpop.f32.mrf.mxu1 }
 0x5d5   :  { %v8619_v25 = vpop.f32.mrf.mxu1 }
 0x5d7   :  { %v8692_v36 = vpop.f32.mrf.mxu0  ;;  %v10560_v59 = vpop.f32.mrf.mxu1 }
 0x5d8   :  { %10614 = vmatprep.mubr.msk.f32.mxu0 %vm4051_vm2, %v8692_v36 }
 0x5d9   :  { %v10565_v9 = vpop.f32.mrf.mxu0 }
 0x5da   :  { %v8765_v15 = vpop.f32.mrf.mxu1 }
 0x5db   :  { %v8838_v50 = vpop.f32.mrf.mxu0  ;;  %10630 = vmatprep.mubr.msk.f32.mxu1 %vm4051_vm2, %v8765_v15 }
 0x5dc   :  { %v10570_v38 = vpop.f32.mrf.mxu1 }
 0x5dd   :  { %v10575_v54 = vpop.f32.mrf.mxu0 }
 0x5de   :  { %v8911_v12 = vpop.f32.mrf.mxu1 }
 0x5e0   :  { %v10580_v29 = vpop.f32.mrf.mxu1 }
 0x5e9   :  { %v8984_v49 = vpop.f32.mrf.mxu0 }
 0x5ea   :  { %10615 = vmatmul.mubr.msk.f32.gmra.mxu0 %vm4051_vm2, %v8984_v49 }
 0x5eb   :  { %v10585_v5 = vpop.f32.mrf.mxu0  ;;  %10637 = vmatprep.mubr.msk.f32.mxu0 %vm4051_vm2, %v13273_v40 }
 0x5ee   :  { %10638 = vmatmul.mubr.msk.f32.vlgmr.msra.gmra.mxu0 %vm4051_vm2, %v13281_v0 }
 0x5ef   :  { %10640 = vmatprep.mubr.msk.f32.mxu0 %vm4051_vm2, %v7670_v58 }
 0x5f2   :  { %10641 = vmatmul.mubr.msk.f32.gmra.mxu0 %vm4051_vm2, %v7962_v11 }
 0x5f3   :  { %10643 = vmatprep.mubr.msk.f32.mxu0 %vm4051_vm2, %v8254_v32 }
 0x5f6   :  { %10644 = vmatmul.mubr.msk.f32.gmra.mxu0 %vm4051_vm2, %v8546_v16  ;;  %v13336_v16 = vld [vmem:[%s13409_s7] ss:$0 sm:$0xff] }
 0x5f7   :  { %10646 = vmatprep.mubr.msk.f32.mxu0 %vm4051_vm2, %v8838_v50 }
 0x605   :  { %v9057_v42 = vpop.f32.mrf.mxu1 }
 0x606   :  { %10631 = vmatmul.mubr.msk.f32.gmra.mxu1 %vm4051_vm2, %v9057_v42 }
 0x607   :  { %v10590_v10 = vpop.f32.mrf.mxu1  ;;  %10653 = vmatprep.mubr.msk.f32.mxu1 %vm4051_vm2, %v13279_v53 }
 0x609   :  { %v9203_v48 = vpop.f32.mrf.mxu1 }
 0x60a   :  { %10654 = vmatmul.mubr.msk.f32.vlgmr.msra.gmra.mxu1 %vm4051_vm2, %v7451_v61 }
 0x60b   :  { %v10600_v63 = vpop.f32.mrf.mxu1  ;;  %10656 = vmatprep.mubr.msk.f32.mxu1 %vm4051_vm2, %v7743_v60 }
 0x60e   :  { %10657 = vmatmul.mubr.msk.f32.gmra.mxu1 %vm4051_vm2, %v8035_v8 }
 0x60f   :  { %10659 = vmatprep.mubr.msk.f32.mxu1 %vm4051_vm2, %v8327_v37 }
 0x612   :  { %10660 = vmatmul.mubr.msk.f32.gmra.mxu1 %vm4051_vm2, %v8619_v25 }
 0x613   :  { %10662 = vmatprep.mubr.msk.f32.mxu1 %vm4051_vm2, %v8911_v12 }
 0x616   :  { %10663 = vmatmul.mubr.msk.f32.gmra.mxu1 %vm4051_vm2, %v9203_v48  ;;  %v9130_v55 = vpop.f32.mrf.mxu0 }
 0x617   :  { %10647 = vmatmul.mubr.msk.f32.gmra.mxu0 %vm4051_vm2, %v9130_v55 }
 0x618   :  { %v10595_v27 = vpop.f32.mrf.mxu0 }
 0x64c   :  { %v10607_v13 = vpop.f32.mrf.mxu0 }
 0x64d   :  { %v9738_v47 = vsel %vm41_vm0, %v10607_v13, 0.0 }
 0x64e   :  { %v9305_v1 = vpop.f32.mrf.mxu0 }
 0x64f   :  { %v9731_v19 = vsel %vm41_vm0, %v9305_v1, 0.0 }
 0x654   :  { %v10623_v53 = vpop.f32.mrf.mxu1 }
 0x655   :  { %v9739_v44 = vsel %vm41_vm0, %v10623_v53, 0.0 }
 0x656   :  { %v9434_v22 = vpop.f32.mrf.mxu1  ;;  %v9740_v3 = vadd.f32 %v9739_v44, %v9738_v47 }
 0x657   :  { %v9732_v30 = vsel %vm41_vm0, %v9434_v22, 0.0 }
 0x658   :  { %v9733_v32 = vadd.f32 %v9732_v30, %v9731_v19 }
 0x65c   :  { %v10610_v40 = vpop.f32.mrf.mxu0 }
 0x65d   :  { %v9752_v62 = vsel %vm41_vm0, %v10610_v40, 0.0 }
 0x65e   :  { %v9315_v7 = vpop.f32.mrf.mxu0 }
 0x65f   :  { %v9745_v31 = vsel %vm41_vm0, %v9315_v7, 0.0 }
 0x67a   :  { %v10613_v18 = vpop.f32.mrf.mxu0  ;;  %v10626_v45 = vpop.f32.mrf.mxu1 }
 0x67b   :  { %v9753_v39 = vsel %vm41_vm0, %v10626_v45, 0.0  ;;  %v9766_v15 = vsel %vm41_vm0, %v10613_v18, 0.0 }
 0x67c   :  { %v9325_v28 = vpop.f32.mrf.mxu0  ;;  %v9444_v52 = vpop.f32.mrf.mxu1  ;;  %v9754_v43 = vadd.f32 %v9753_v39, %v9752_v62 }
 0x67d   :  { %v9746_v46 = vsel %vm41_vm0, %v9444_v52, 0.0  ;;  %v9759_v48 = vsel %vm41_vm0, %v9325_v28, 0.0 }
 0x67e   :  { %v9747_v14 = vadd.f32 %v9746_v46, %v9745_v31 }
 0x692   :  { %v10629_v34 = vpop.f32.mrf.mxu1 }
 0x693   :  { %v9767_v37 = vsel %vm41_vm0, %v10629_v34, 0.0 }
 0x694   :  { %v9454_v58 = vpop.f32.mrf.mxu1  ;;  %v9768_v29 = vadd.f32 %v9767_v37, %v9766_v15 }
 0x695   :  { %v9760_v54 = vsel %vm41_vm0, %v9454_v58, 0.0 }
 0x696   :  { %v9761_v27 = vadd.f32 %v9760_v54, %v9759_v48 }
 0x6aa   :  { %v13318_v56 = vpop.f32.mrf.mxu0 }
 0x6ab   :  { %v9780_v58 = vsel %vm41_vm0, %v13318_v56, 0.0 }
 0x6ac   :  { %v13320_v0 = vpop.f32.mrf.mxu0 }
 0x6ad   :  { %v9773_v30 = vsel %vm41_vm0, %v13320_v0, 0.0 }
 0x6ae   :  { %v10639_v24 = vpop.f32.mrf.mxu0 }
 0x6af   :  { %v9741_v11 = vsel %vm41_vm0, %v10639_v24, 0.0 }
 0x6b0   :  { %v9563_v57 = vpop.f32.mrf.mxu0  ;;  %v9742_v2 = vadd.f32 %v9741_v11, %v9740_v3 }
 0x6b1   :  { %v9734_v26 = vsel %vm41_vm0, %v9563_v57, 0.0 }
 0x6b2   :  { %v10642_v23 = vpop.f32.mrf.mxu0  ;;  %v9735_v8 = vadd.f32 %v9734_v26, %v9733_v32 }
 0x6b3   :  { %v9755_v6 = vsel %vm41_vm0, %v10642_v23, 0.0 }
 0x6b4   :  { %v9573_v35 = vpop.f32.mrf.mxu0  ;;  %v9756_v36 = vadd.f32 %v9755_v6, %v9754_v43 }
 0x6b5   :  { %v9748_v17 = vsel %vm41_vm0, %v9573_v35, 0.0 }
 0x6b6   :  { %v10645_v60 = vpop.f32.mrf.mxu0  ;;  %v9749_v49 = vadd.f32 %v9748_v17, %v9747_v14 }
 0x6b7   :  { %v9769_v38 = vsel %vm41_vm0, %v10645_v60, 0.0 }
 0x6b8   :  { %v9583_v25 = vpop.f32.mrf.mxu0  ;;  %v9770_v13 = vadd.f32 %v9769_v38, %v9768_v29 }
 0x6b9   :  { %v9762_v63 = vsel %vm41_vm0, %v9583_v25, 0.0 }
 0x6ba   :  { %v9763_v53 = vadd.f32 %v9762_v63, %v9761_v27 }
 0x6c6   :  { %v10632_v61 = vpop.f32.mrf.mxu1 }
 0x6c7   :  { %v9781_v52 = vsel %vm41_vm0, %v10632_v61, 0.0 }
 0x6c8   :  { %v9464_v4 = vpop.f32.mrf.mxu1  ;;  %v9782_v61 = vadd.f32 %v9781_v52, %v9780_v58 }
 0x6c9   :  { %v9774_v44 = vsel %vm41_vm0, %v9464_v4, 0.0 }
 0x6ca   :  { %v10655_v33 = vpop.f32.mrf.mxu1  ;;  %v9775_v11 = vadd.f32 %v9774_v44, %v9773_v30 }
 0x6cb   :  { %v9743_v41 = vsel %vm41_vm0, %v10655_v33, 0.0 }
 0x6cc   :  { %v9744_v20 = vadd.f32 %v9743_v41, %v9742_v2  ;;  %v9692_v51 = vpop.f32.mrf.mxu1 }
 0x6cd   :  { %v9736_v21 = vsel %vm41_vm0, %v9692_v51, 0.0 }
 0x6ce   :  { %v9795_v9 = vadd.f32 %v13336_v16, %v9744_v20  ;;  %v9737_v59 = vadd.f32 %v9736_v21, %v9735_v8  ;;  %v10658_v50 = vpop.f32.mrf.mxu1 }
 0x6cf   :  { %v9757_v12 = vsel %vm41_vm0, %v10658_v50, 0.0 }
 0x6d0   :  { %9803 = vst.msk [vmem:[%s13410_s9 + $0x8] sm:$0xff] %vm41_vm0, %v9795_v9  ;;  %v9794_v5 = vadd.f32 %v13336_v16, %v9737_v59  ;;  %v9758_v42 = vadd.f32 %v9757_v12, %v9756_v36  ;;  %v9702_v10 = vpop.f32.mrf.mxu1 }
 0x6d1   :  { %v9750_v55 = vsel %vm41_vm0, %v9702_v10, 0.0 }
 0x6d2   :  { %9802 = vst.msk [vmem:[%s13410_s9] sm:$0xff] %vm41_vm0, %v9794_v5  ;;  %v9797_v1 = vadd.f32 %v13336_v16, %v9758_v42  ;;  %v9751_v40 = vadd.f32 %v9750_v55, %v9749_v49  ;;  %v10661_v7 = vpop.f32.mrf.mxu1 }
 0x6d3   :  { %v9771_v18 = vsel %vm41_vm0, %v10661_v7, 0.0 }
 0x6d4   :  { %9805 = vst.msk [vmem:[%s13410_s9 + $0x18] sm:$0xff] %vm41_vm0, %v9797_v1  ;;  %v9796_v28 = vadd.f32 %v13336_v16, %v9751_v40  ;;  %v9772_v22 = vadd.f32 %v9771_v18, %v9770_v13  ;;  %v9712_v45 = vpop.f32.mrf.mxu1 }
 0x6d5   :  { %v9764_v24 = vsel %vm41_vm0, %v9712_v45, 0.0 }
 0x6d6   :  { %9804 = vst.msk [vmem:[%s13410_s9 + $0x10] sm:$0xff] %vm41_vm0, %v9796_v28  ;;  %v9799_v57 = vadd.f32 %v13336_v16, %v9772_v22  ;;  %v9765_v34 = vadd.f32 %v9764_v24, %v9763_v53  ;;  %v10664_v23 = vpop.f32.mrf.mxu1 }
 0x6d7   :  { %v10648_v47 = vpop.f32.mrf.mxu0  ;;  %v9785_v39 = vsel %vm41_vm0, %v10664_v23, 0.0 }
 0x6d8   :  { %9807 = vst.msk [vmem:[%s13410_s9 + $0x28] sm:$0xff] %vm41_vm0, %v9799_v57  ;;  %v9798_v35 = vadd.f32 %v13336_v16, %v9765_v34  ;;  %v9783_v56 = vsel %vm41_vm0, %v10648_v47, 0.0  ;;  %v9722_v3 = vpop.f32.mrf.mxu1 }
 0x6d9   :  { %v9784_v4 = vadd.f32 %v9783_v56, %v9782_v61  ;;  %v9593_v19 = vpop.f32.mrf.mxu0  ;;  %v9778_v60 = vsel %vm41_vm0, %v9722_v3, 0.0 }
 0x6da   :  { %9806 = vst.msk [vmem:[%s13410_s9 + $0x20] sm:$0xff] %vm41_vm0, %v9798_v35  ;;  %v9776_v26 = vsel %vm41_vm0, %v9593_v19, 0.0 }
 0x6db   :  { %v9786_v32 = vadd.f32 %v9785_v39, %v9784_v4  ;;  %v9777_v2 = vadd.f32 %v9776_v26, %v9775_v11 }
 0x6dd   :  { %v9801_v0 = vadd.f32 %v13336_v16, %v9786_v32  ;;  %v9779_v33 = vadd.f32 %v9778_v60, %v9777_v2 }
 0x6df   :  { %9809 = vst.msk [vmem:[%s13410_s9 + $0x38] sm:$0xff] %vm41_vm0, %v9801_v0  ;;  %v9800_v62 = vadd.f32 %v13336_v16, %v9779_v33 }
 0x6e1   :  { %9808 = vst.msk [vmem:[%s13410_s9 + $0x30] sm:$0xff] %vm41_vm0, %v9800_v62 }

</bundles_post_ra>
